<compile_context>
chip_gen: v7x
topology: tpu7x:2x2x1
jax: 0.10.0
libtpu: 0.0.40
codegen_flags: <defaults>
</compile_context>

<pallas_src>
import functools

import jax
import jax.numpy as jnp
from jax.experimental import pallas as pl
from jax.experimental.pallas import tpu as pltpu

_LANE = 128


# ----------------------------------------------------------------------------
# VMEM budget / tile-size helpers (generation aware)
# ----------------------------------------------------------------------------
@functools.lru_cache(maxsize=None)
def _vmem_limit():
    """Scoped-VMEM request: 3/4 of physical capacity, capped, with headroom."""
    cap = 64 * 1024 * 1024                       # conservative fallback (v7x-sized)
    try:
        info = pltpu.get_tpu_info()
        cap = int(getattr(info, "vmem_capacity_bytes", cap))
    except Exception:
        pass
    return max(32 * 1024 * 1024, min((cap * 3) // 4, 96 * 1024 * 1024))


def _lane_tile(n, cap):
    """Largest multiple of 128 that divides n (capped); else the full dim."""
    if n % _LANE != 0:
        return n
    start = min(n, max(cap, _LANE))
    start -= start % _LANE
    for cand in range(start, 0, -_LANE):
        if n % cand == 0:
            return cand
    return n


def _stream_lane_cap(rows, vmem_limit):
    """Lane-tile cap so (rows * ts * 4B * 2 buffers) stays within ~1/3 of VMEM."""
    hard_cap = 8192 if vmem_limit >= 64 * 1024 * 1024 else 4096
    budget = vmem_limit // 3
    cap = budget // (max(rows, 8) * 4 * 2)
    cap = max(_LANE, (cap // _LANE) * _LANE)
    return min(cap, hard_cap)


def _row_tile(r, cap=4096):
    """Largest multiple of 8 dividing r (capped); else full r."""
    if r % 8 != 0:
        return r
    start = min(r, max(cap, 8))
    start -= start % 8
    for cand in range(start, 0, -8):
        if r % cand == 0:
            return cand
    return r


def _cout_tile(cout, cap=32):
    for cand in range(min(cap, cout), 7, -1):
        if cand % 8 == 0 and cout % cand == 0:
            return cand
    return cout


def _gelu_tanh(y):
    c = jnp.float32(0.7978845608028654)  # sqrt(2/pi)
    return 0.5 * y * (1.0 + jnp.tanh(c * (y + 0.044715 * y * y * y)))


# ----------------------------------------------------------------------------
# Kernel 1a: GroupNorm(num_groups=1) statistics (block 0 only; later blocks
#            get their stats fused into the conv_fuse epilogue).
#   Fast path: x viewed as (B, R, 128); per-tile reduce over the major axis of
#   the (rt//8, 8, 128) view = pure VPU adds into an (8,128) scratch; the
#   cross-lane/sublane reduce to a scalar happens once in the finalize.
# ----------------------------------------------------------------------------
def _gn_stats_partial_kernel(x_ref, mean_ref, rstd_ref, sum_acc, sq_acc, *,
                             inv_n, eps):
    s = pl.program_id(1)

    @pl.when(s == 0)
    def _():
        sum_acc[...] = jnp.zeros_like(sum_acc)
        sq_acc[...] = jnp.zeros_like(sq_acc)

    x = x_ref[0]                                     # (rt, 128)
    xp = x.reshape(x.shape[0] // 8, 8, _LANE)        # natural vreg-tile view
    sum_acc[...] += jnp.sum(xp, axis=0)              # major-axis reduce: VPU only
    sq_acc[...] += jnp.sum(xp * xp, axis=0)

    @pl.when(s == pl.num_programs(1) - 1)
    def _():
        mu = jnp.sum(sum_acc[...]) * inv_n
        var = jnp.maximum(jnp.sum(sq_acc[...]) * inv_n - mu * mu, 0.0)
        rstd = jax.lax.rsqrt(var + eps)
        mean_ref[...] = jnp.broadcast_to(mu, mean_ref.shape)
        rstd_ref[...] = jnp.broadcast_to(rstd, rstd_ref.shape)


def _gn_stats_scalar_kernel(x_ref, mean_ref, rstd_ref, sum_acc, sq_acc, *,
                            inv_n, eps):
    # Fallback for shapes where C*S is not a multiple of 1024.
    s = pl.program_id(1)

    @pl.when(s == 0)
    def _():
        sum_acc[...] = jnp.zeros_like(sum_acc)
        sq_acc[...] = jnp.zeros_like(sq_acc)

    x = x_ref[0]                                     # (C, ts)
    sum_acc[...] += jnp.sum(x, keepdims=True)
    sq_acc[...] += jnp.sum(x * x, keepdims=True)

    @pl.when(s == pl.num_programs(1) - 1)
    def _():
        mu = sum_acc[0, 0] * inv_n
        var = jnp.maximum(sq_acc[0, 0] * inv_n - mu * mu, 0.0)
        rstd = jax.lax.rsqrt(var + eps)
        mean_ref[...] = jnp.broadcast_to(mu, mean_ref.shape)
        rstd_ref[...] = jnp.broadcast_to(rstd, rstd_ref.shape)


def group_norm_stats(x_bcs, eps=1e-5):
    B, C, S = x_bcs.shape
    n = C * S
    vmem = _vmem_limit()
    stat_shape = jax.ShapeDtypeStruct((B, 1, _LANE), jnp.float32)
    stat_spec = pl.BlockSpec((1, 1, _LANE), lambda b, s: (b, 0, 0))

    if n % (8 * _LANE) == 0:
        R = n // _LANE
        x_v = x_bcs.reshape(B, R, _LANE)             # free (contiguous) view
        rt = _row_tile(R, cap=4096)
        return pl.pallas_call(
            functools.partial(_gn_stats_partial_kernel,
                              inv_n=1.0 / float(n), eps=eps),
            out_shape=(stat_shape, stat_shape),
            grid=(B, R // rt),
            in_specs=[pl.BlockSpec((1, rt, _LANE), lambda b, s: (b, s, 0))],
            out_specs=(stat_spec, stat_spec),
            scratch_shapes=[pltpu.VMEM((8, _LANE), jnp.float32),
                            pltpu.VMEM((8, _LANE), jnp.float32)],
            compiler_params=pltpu.CompilerParams(
                dimension_semantics=("parallel", "arbitrary"),
                vmem_limit_bytes=vmem),
        )(x_v)

    ts = _lane_tile(S, _stream_lane_cap(C, vmem))
    return pl.pallas_call(
        functools.partial(_gn_stats_scalar_kernel,
                          inv_n=1.0 / float(n), eps=eps),
        out_shape=(stat_shape, stat_shape),
        grid=(B, S // ts),
        in_specs=[pl.BlockSpec((1, C, ts), lambda b, s: (b, 0, s))],
        out_specs=(stat_spec, stat_spec),
        scratch_shapes=[pltpu.VMEM((1, 1), jnp.float32),
                        pltpu.VMEM((1, 1), jnp.float32)],
        compiler_params=pltpu.CompilerParams(
            dimension_semantics=("parallel", "arbitrary"),
            vmem_limit_bytes=vmem),
    )(x_bcs)


# ----------------------------------------------------------------------------
# Kernel 1b: GroupNorm apply — lane-dense (C, ts) tiles, fully parallel grid.
# ----------------------------------------------------------------------------
def _gn_apply_kernel(x_ref, mean_ref, rstd_ref, g_ref, b_ref, o_ref):
    mu = mean_ref[0, 0, 0]
    rstd = rstd_ref[0, 0, 0]
    o_ref[0] = (x_ref[0] - mu) * rstd * g_ref[...] + b_ref[...]   # g,b: (C,1)


def group_norm_apply(x_bcs, mean, rstd, gamma, beta):
    B, C, S = x_bcs.shape
    vmem = _vmem_limit()
    ts = _lane_tile(S, _stream_lane_cap(2 * C, vmem))
    xspec = pl.BlockSpec((1, C, ts), lambda b, s: (b, 0, s))
    stat_spec = pl.BlockSpec((1, 1, _LANE), lambda b, s: (b, 0, 0))
    cspec = pl.BlockSpec((C, 1), lambda b, s: (0, 0))
    return pl.pallas_call(
        _gn_apply_kernel,
        out_shape=jax.ShapeDtypeStruct((B, C, S), jnp.float32),
        grid=(B, S // ts),
        in_specs=[xspec, stat_spec, stat_spec, cspec, cspec],
        out_specs=xspec,
        compiler_params=pltpu.CompilerParams(
            dimension_semantics=("parallel", "parallel"),
            vmem_limit_bytes=vmem),
    )(x_bcs, mean, rstd, gamma, beta)


# ----------------------------------------------------------------------------
# Kernel 2: complex channel mixing of retained Fourier modes.
#   out[k,b,o,m] = sum_i x[k,i,b,m] * w[k,i,o,m]   (complex, 4-mul MAC)
#   Grid: (corner, Cout tile, mode tile).  Inner contraction over Cin is a
#   lax.fori_loop (unrolled) slicing weight/activation rows straight from the
#   VMEM refs; per-batch accumulator bounded to <= ~96 KiB so nothing spills.
# ----------------------------------------------------------------------------
def _spectral_mul_kernel(xr_ref, xi_ref, wr_ref, wi_ref, or_ref, oi_ref):
    cin = xr_ref.shape[0]
    bsz = xr_ref.shape[1]
    tco, tm = or_ref.shape[1], or_ref.shape[2]
    unroll = max(1, min(8, cin))

    for b in range(bsz):                              # small static batch loop
        def body(i, accs):
            acc_r, acc_i = accs
            x_r = xr_ref[pl.ds(i, 1), pl.ds(b, 1), :]   # (1, 1, tm)
            x_i = xi_ref[pl.ds(i, 1), pl.ds(b, 1), :]
            w_r = wr_ref[i]                             # (tco, tm)
            w_i = wi_ref[i]
            acc_r = acc_r + x_r * w_r - x_i * w_i
            acc_i = acc_i + x_r * w_i + x_i * w_r
            return acc_r, acc_i

        z = jnp.zeros((1, tco, tm), jnp.float32)
        acc_r, acc_i = jax.lax.fori_loop(0, cin, body, (z, z), unroll=unroll)
        or_ref[pl.ds(b, 1), :, :] = acc_r
        oi_ref[pl.ds(b, 1), :, :] = acc_i


def spectral_mul(xr, xi, wr, wi, mode_cap=512, acc_budget_bytes=96 * 1024):
    K, Cin, B, M = xr.shape                           # x is (K, Cin, B, M)
    Cout = wr.shape[2]                                # w is (K, Cin, Cout, M)
    vmem = _vmem_limit()
    tm = _lane_tile(M, mode_cap)
    cap = 32
    tco = _cout_tile(Cout, cap)
    while 2 * tco * tm * 4 > acc_budget_bytes and cap > 8:
        cap //= 2
        tco = _cout_tile(Cout, cap)

    xspec = pl.BlockSpec((None, Cin, B, tm), lambda k, co, mt: (k, 0, 0, mt))
    wspec = pl.BlockSpec((None, Cin, tco, tm), lambda k, co, mt: (k, 0, co, mt))
    ospec = pl.BlockSpec((None, B, tco, tm), lambda k, co, mt: (k, 0, co, mt))
    oshape = jax.ShapeDtypeStruct((K, B, Cout, M), jnp.float32)
    return pl.pallas_call(
        _spectral_mul_kernel,
        out_shape=(oshape, oshape),
        grid=(K, Cout // tco, M // tm),
        in_specs=[xspec, xspec, wspec, wspec],
        out_specs=(ospec, ospec),
        compiler_params=pltpu.CompilerParams(
            dimension_semantics=("parallel", "parallel", "parallel"),
            vmem_limit_bytes=vmem),
    )(xr, xi, wr, wi)


# ----------------------------------------------------------------------------
# Kernel 3: fused 1x1x1 conv (W @ x on MXU) + bias + spectral path
#           + optional input injection + GELU(tanh), channel-major lane-dense.
#           Optionally also accumulates the NEXT block's GroupNorm statistics
#           of the freshly produced output (mean / rstd extra outputs).
# ----------------------------------------------------------------------------
def _make_conv_fuse_kernel(has_inj, compute_stats, inv_n=0.0, eps=1e-5):
    def kernel(*refs):
        it = iter(refs)
        x_ref = next(it)
        w_ref = next(it)
        b_ref = next(it)
        spec_ref = next(it)
        inj_ref = next(it) if has_inj else None
        o_ref = next(it)
        if compute_stats:
            mean_ref = next(it)
            rstd_ref = next(it)
            sum_acc = next(it)
            sq_acc = next(it)
            s = pl.program_id(1)

            @pl.when(s == 0)
            def _():
                sum_acc[...] = jnp.zeros_like(sum_acc)
                sq_acc[...] = jnp.zeros_like(sq_acc)

        y = jnp.dot(w_ref[...], x_ref[0],
                    preferred_element_type=jnp.float32)            # (Cout, ts)
        y = y + b_ref[...] + spec_ref[0]
        if has_inj:
            y = y + inj_ref[0]
        y = _gelu_tanh(y)
        o_ref[0] = y

        if compute_stats:
            # MXU + VPU dominate this kernel; the XLU reduce rides for free.
            sum_acc[...] += jnp.sum(y, keepdims=True)
            sq_acc[...] += jnp.sum(y * y, keepdims=True)

            @pl.when(s == pl.num_programs(1) - 1)
            def _():
                mu = sum_acc[0, 0] * inv_n
                var = jnp.maximum(sq_acc[0, 0] * inv_n - mu * mu, 0.0)
                rstd = jax.lax.rsqrt(var + eps)
                mean_ref[...] = jnp.broadcast_to(mu, mean_ref.shape)
                rstd_ref[...] = jnp.broadcast_to(rstd, rstd_ref.shape)

    return kernel


def conv_fuse(x_bcs, w, b, spec_bcs, inj_bcs=None, compute_stats=False,
              eps=1e-5):
    B, C, S = x_bcs.shape
    Cout = w.shape[0]
    vmem = _vmem_limit()
    rows = C + Cout * (3 if inj_bcs is not None else 2)   # streamed f32 rows
    ts = _lane_tile(S, _stream_lane_cap(rows, vmem))
    f32 = jnp.float32

    xspec = pl.BlockSpec((1, C, ts), lambda bi, si: (bi, 0, si))
    ospec = pl.BlockSpec((1, Cout, ts), lambda bi, si: (bi, 0, si))
    in_specs = [xspec,
                pl.BlockSpec((Cout, C), lambda bi, si: (0, 0)),
                pl.BlockSpec((Cout, 1), lambda bi, si: (0, 0)),
                ospec]
    args = [x_bcs, w, b, spec_bcs]
    if inj_bcs is not None:                           # never stream a zero tensor
        in_specs.append(ospec)
        args.append(inj_bcs)

    out_shape = jax.ShapeDtypeStruct((B, Cout, S), f32)
    out_specs = ospec
    scratch = []
    if compute_stats:
        stat_shape = jax.ShapeDtypeStruct((B, 1, _LANE), f32)
        stat_spec = pl.BlockSpec((1, 1, _LANE), lambda bi, si: (bi, 0, 0))
        out_shape = (out_shape, stat_shape, stat_shape)
        out_specs = (ospec, stat_spec, stat_spec)
        scratch = [pltpu.VMEM((1, 1), f32), pltpu.VMEM((1, 1), f32)]

    kernel = _make_conv_fuse_kernel(inj_bcs is not None, compute_stats,
                                    inv_n=1.0 / float(Cout * S), eps=eps)
    dim_sem = ("parallel", "arbitrary") if compute_stats else ("parallel", "parallel")
    return pl.pallas_call(
        kernel,
        out_shape=out_shape,
        grid=(B, S // ts),
        in_specs=in_specs,
        out_specs=out_specs,
        scratch_shapes=scratch,
        compiler_params=pltpu.CompilerParams(
            dimension_semantics=dim_sem, vmem_limit_bytes=vmem),
    )(*args)


# ----------------------------------------------------------------------------
# SpectralConv3d glue: rFFT / corner gather in XLA, channel mixing in Pallas.
# ----------------------------------------------------------------------------
def spectral_conv3d(xn, wr, wi):
    B, C, D, H, W = xn.shape
    m = wr.shape[3]
    M = m * m * m
    Wf = W // 2 + 1
    assert 2 * m <= D and 2 * m <= H and m <= Wf, "num_modes too large for the grid"

    # TODO(synk): the 3-D rFFT/irFFT has no Pallas primitive; it stays in jnp.fft.
    x_ft = jnp.fft.rfftn(xn, axes=(-3, -2, -1))       # (B,C,D,H,Wf) complex64

    corners = [
        (slice(0, m), slice(0, m)),
        (slice(D - m, D), slice(0, m)),
        (slice(0, m), slice(H - m, H)),
        (slice(D - m, D), slice(H - m, H)),
    ]
    xc = jnp.stack([x_ft[:, :, sd, sh, :m] for sd, sh in corners], axis=0)
    # (4,B,C,M) -> (4,C,B,M): Cin leads so the kernel's contraction slices are
    # clean leading-axis dynamic slices (small tensor, cheap XLA transpose).
    xr = jnp.transpose(jnp.real(xc).reshape(4, B, C, M), (0, 2, 1, 3)).astype(jnp.float32)
    xi = jnp.transpose(jnp.imag(xc).reshape(4, B, C, M), (0, 2, 1, 3)).astype(jnp.float32)

    o_r, o_i = spectral_mul(xr, xi, wr.reshape(4, C, C, M), wi.reshape(4, C, C, M))

    out_c = (o_r + 1j * o_i).reshape(4, B, C, m, m, m).astype(jnp.complex64)

    # Single-pass low-mode assembly (replaces 4 full dynamic-update-slices).
    zh = jnp.zeros((B, C, m, H - 2 * m, m), jnp.complex64)
    d_low = jnp.concatenate([out_c[0], zh, out_c[2]], axis=3)    # (B,C,m,H,m)
    d_high = jnp.concatenate([out_c[1], zh, out_c[3]], axis=3)
    zd = jnp.zeros((B, C, D - 2 * m, H, m), jnp.complex64)
    low = jnp.concatenate([d_low, zd, d_high], axis=2)           # (B,C,D,H,m)
    out_ft = jnp.pad(low, ((0, 0), (0, 0), (0, 0), (0, 0), (0, Wf - m)))
    return jnp.fft.irfftn(out_ft, s=(D, H, W), axes=(-3, -2, -1)).astype(jnp.float32)


# ----------------------------------------------------------------------------
# FNO_Middle forward (blocks chained; GN stats of block k+1 fused into block
# k's conv_fuse epilogue -> the standalone stats kernel runs only for block 0).
# ----------------------------------------------------------------------------
def fno_middle_forward(x, params, input_inj=None, normalize=True):
    B, C, D, H, W = x.shape
    S = D * H * W
    x_bcs = x.reshape(B, C, S)                        # NCDHW -> (B,C,S): free reshape
    inj_bcs = input_inj.reshape(B, C, S) if input_inj is not None else None

    n_blocks = len(params)
    mean = rstd = None
    for idx, p in enumerate(params):
        if normalize:
            if mean is None:                          # block 0 only
                mean, rstd = group_norm_stats(x_bcs)
            xn_bcs = group_norm_apply(x_bcs, mean, rstd, p["gn_w"], p["gn_b"])
        else:
            xn_bcs = x_bcs

        spec = spectral_conv3d(xn_bcs.reshape(B, C, D, H, W),
                               p["spec_wr"], p["spec_wi"])

        fuse_stats = normalize and (idx + 1 < n_blocks)
        res = conv_fuse(xn_bcs, p["filt_w"], p["filt_b"],
                        spec.reshape(B, C, S), inj_bcs,
                        compute_stats=fuse_stats)
        if fuse_stats:
            x_bcs, mean, rstd = res
        else:
            x_bcs = res
            mean = rstd = None
    return x_bcs.reshape(B, C, D, H, W)


# ----------------------------------------------------------------------------
# Deterministic parameter init (shapes from the module's __init__)
# ----------------------------------------------------------------------------
def init_params(key, latent_channels, modes_list, init_weight_scale=1.0):
    params = []
    C = latent_channels
    for mm in modes_list:
        key, k0, k1, k2, k3, k4, k5 = jax.random.split(key, 7)
        scale = init_weight_scale / (C * C)
        wshape = (4, C, C, mm, mm, mm)   # weights1..4 of SpectralConv3d (complex split)
        params.append(dict(
            gn_w=1.0 + 0.1 * jax.random.normal(k0, (C, 1), jnp.float32),
            gn_b=0.1 * jax.random.normal(k1, (C, 1), jnp.float32),
            spec_wr=scale * jax.random.uniform(k2, wshape, jnp.float32),
            spec_wi=scale * jax.random.uniform(k3, wshape, jnp.float32),
            # PyTorch Conv3d weight (Cout, Cin, 1,1,1) squeezed -> (Cout, Cin)
            filt_w=jax.random.normal(k4, (C, C), jnp.float32) / jnp.sqrt(C),
            filt_b=0.01 * jax.random.normal(k5, (C, 1), jnp.float32),
        ))
    return params


# ----------------------------------------------------------------------------
# Pure-JAX reference (same math, no Pallas) for a correctness check
# ----------------------------------------------------------------------------
def _ref_block(x, p, inj, normalize=True):
    B, C, D, H, W = x.shape
    if normalize:
        mean = jnp.mean(x, axis=(1, 2, 3, 4), keepdims=True)
        var = jnp.mean((x - mean) ** 2, axis=(1, 2, 3, 4), keepdims=True)
        xn = (x - mean) * jax.lax.rsqrt(var + 1e-5)
        xn = xn * p["gn_w"].reshape(1, C, 1, 1, 1) + p["gn_b"].reshape(1, C, 1, 1, 1)
    else:
        xn = x
    m = p["spec_wr"].shape[3]
    w = (p["spec_wr"] + 1j * p["spec_wi"]).astype(jnp.complex64)
    x_ft = jnp.fft.rfftn(xn, axes=(-3, -2, -1))
    out_ft = jnp.zeros((B, C, D, H, W // 2 + 1), jnp.complex64)
    corners = [(slice(0, m), slice(0, m)), (slice(D - m, D), slice(0, m)),
               (slice(0, m), slice(H - m, H)), (slice(D - m, D), slice(H - m, H))]
    for k, (sd, sh) in enumerate(corners):
        out_ft = out_ft.at[:, :, sd, sh, :m].set(
            jnp.einsum("bixyz,ioxyz->boxyz", x_ft[:, :, sd, sh, :m], w[k]))
    spec = jnp.fft.irfftn(out_ft, s=(D, H, W), axes=(-3, -2, -1)).astype(jnp.float32)
    filt = jnp.einsum("bidhw,oi->bodhw", xn, p["filt_w"]) + p["filt_b"].reshape(1, C, 1, 1, 1)
    y = spec + filt + (inj if inj is not None else 0.0)
    return _gelu_tanh(y)


def _ref_middle(x, params, inj, normalize=True):
    for p in params:
        x = _ref_block(x, p, inj, normalize)
    return x


# ----------------------------------------------------------------------------
if __name__ == "__main__":
    B, C, D, H, W = 2, 8, 8, 8, 8
    modes = (2, 3)                       # FNO_Middle(modes=(2,3), ...)

    key = jax.random.PRNGKey(0)
    kx, ki, kp = jax.random.split(key, 3)
    x = jax.random.normal(kx, (B, C, D, H, W), jnp.float32)
    input_inj = jax.random.normal(ki, (B, C, D, H, W), jnp.float32)
    params = init_params(kp, C, modes, init_weight_scale=1.0)

    fwd = jax.jit(lambda x_, inj_: fno_middle_forward(x_, params, inj_, normalize=True))
    out = jax.block_until_ready(fwd(x, input_inj))
    ref = jax.block_until_ready(_ref_middle(x, params, input_inj, normalize=True))
    assert out.shape == (B, C, D, H, W)
    assert float(jnp.max(jnp.abs(out - ref))) < 5e-4, float(jnp.max(jnp.abs(out - ref)))

    # also exercise the injection-free conv_fuse variant (and fused stats path)
    fwd2 = jax.jit(lambda x_: fno_middle_forward(x_, params, None, normalize=True))
    out2 = jax.block_until_ready(fwd2(x))
    ref2 = jax.block_until_ready(_ref_middle(x, params, None, normalize=True))
    assert float(jnp.max(jnp.abs(out2 - ref2))) < 5e-4, float(jnp.max(jnp.abs(out2 - ref2)))

    print("KERNEL_OK")
</pallas_src>

<mosaic_0001>
module attributes {stable_mosaic.version = 11 : i64} {
  func.func @_gn_apply_kernel(%arg0: i32, %arg1: i32, %arg2: memref<1x8x512xf32, #tpu.memory_space<vmem>>, %arg3: memref<1x1x128xf32, #tpu.memory_space<vmem>>, %arg4: memref<1x1x128xf32, #tpu.memory_space<vmem>>, %arg5: memref<8x1xf32, #tpu.memory_space<vmem>>, %arg6: memref<8x1xf32, #tpu.memory_space<vmem>>, %arg7: memref<1x8x512xf32, #tpu.memory_space<vmem>>) attributes {dimension_semantics = [#tpu.dimension_semantics<parallel>, #tpu.dimension_semantics<parallel>], iteration_bounds = array<i64: 2, 1>, scalar_prefetch = 0 : i64, scratch_operands = 0 : i64, tpu.core_type = #tpu.core_type<tc>, window_params = [{transform_indices = @transform_0, window_bounds = array<i64: 1, 8, 512>}, {transform_indices = @transform_1, window_bounds = array<i64: 1, 1, 128>}, {transform_indices = @transform_2, window_bounds = array<i64: 1, 1, 128>}, {pipeline_mode = #tpu.pipeline_mode<synchronous>, transform_indices = @transform_3, window_bounds = array<i64: 8, 1>}, {pipeline_mode = #tpu.pipeline_mode<synchronous>, transform_indices = @transform_4, window_bounds = array<i64: 8, 1>}, {transform_indices = @transform_5, window_bounds = array<i64: 1, 8, 512>}]} {
    %c0 = arith.constant 0 : index
    %c0_0 = arith.constant 0 : index
    %c0_1 = arith.constant 0 : index
    %0 = vector.load %arg3[%c0, %c0_0, %c0_1] : memref<1x1x128xf32, #tpu.memory_space<vmem>>, vector<1x1x1xf32>
    %1 = vector.extract %0[0, 0, 0] : f32 from vector<1x1x1xf32>
    %c0_2 = arith.constant 0 : index
    %c0_3 = arith.constant 0 : index
    %c0_4 = arith.constant 0 : index
    %2 = vector.load %arg4[%c0_2, %c0_3, %c0_4] : memref<1x1x128xf32, #tpu.memory_space<vmem>>, vector<1x1x1xf32>
    %3 = vector.extract %2[0, 0, 0] : f32 from vector<1x1x1xf32>
    %c0_5 = arith.constant 0 : index
    %c0_6 = arith.constant 0 : index
    %c0_7 = arith.constant 0 : index
    %4 = vector.load %arg2[%c0_5, %c0_6, %c0_7] : memref<1x8x512xf32, #tpu.memory_space<vmem>>, vector<1x8x512xf32>
    %5 = vector.shape_cast %4 : vector<1x8x512xf32> to vector<8x512xf32>
    %6 = vector.broadcast %1 : f32 to vector<8x512xf32>
    %7 = arith.subf %5, %6 : vector<8x512xf32>
    %8 = vector.broadcast %3 : f32 to vector<8x512xf32>
    %9 = arith.mulf %7, %8 : vector<8x512xf32>
    %c0_8 = arith.constant 0 : index
    %c0_9 = arith.constant 0 : index
    %10 = vector.load %arg5[%c0_8, %c0_9] : memref<8x1xf32, #tpu.memory_space<vmem>>, vector<8x1xf32>
    %11 = vector.broadcast %10 : vector<8x1xf32> to vector<8x512xf32>
    %12 = arith.mulf %9, %11 : vector<8x512xf32>
    %c0_10 = arith.constant 0 : index
    %c0_11 = arith.constant 0 : index
    %13 = vector.load %arg6[%c0_10, %c0_11] : memref<8x1xf32, #tpu.memory_space<vmem>>, vector<8x1xf32>
    %14 = vector.broadcast %13 : vector<8x1xf32> to vector<8x512xf32>
    %15 = arith.addf %12, %14 : vector<8x512xf32>
    %c0_12 = arith.constant 0 : index
    %c0_13 = arith.constant 0 : index
    %c0_14 = arith.constant 0 : index
    %16 = vector.load %arg7[%c0_12, %c0_13, %c0_14] : memref<1x8x512xf32, #tpu.memory_space<vmem>>, vector<1x8x512xf32>
    %17 = vector.shape_cast %16 : vector<1x8x512xf32> to vector<8x512xf32>
    %18 = vector.shape_cast %15 : vector<8x512xf32> to vector<1x8x512xf32>
    tpu.vector_store %arg7[%c0_12, %c0_13, %c0_14], %18 {strides = array<i32>} : memref<1x8x512xf32, #tpu.memory_space<vmem>>, vector<1x8x512xf32>,
    return
  }
  func.func @transform_0(%arg0: i32, %arg1: i32) -> (i32, i32, i32) {
    %c0_i32 = arith.constant 0 : i32
    %c0_i32_0 = arith.constant 0 : i32
    return %arg0, %c0_i32, %arg1 : i32, i32, i32
  }
  func.func @transform_1(%arg0: i32, %arg1: i32) -> (i32, i32, i32) {
    %c0_i32 = arith.constant 0 : i32
    %c0_i32_0 = arith.constant 0 : i32
    %c0_i32_1 = arith.constant 0 : i32
    return %arg0, %c0_i32, %c0_i32_0 : i32, i32, i32
  }
  func.func @transform_2(%arg0: i32, %arg1: i32) -> (i32, i32, i32) {
    %c0_i32 = arith.constant 0 : i32
    %c0_i32_0 = arith.constant 0 : i32
    %c0_i32_1 = arith.constant 0 : i32
    return %arg0, %c0_i32, %c0_i32_0 : i32, i32, i32
  }
  func.func @transform_3(%arg0: i32, %arg1: i32) -> (i32, i32) {
    %c0_i32 = arith.constant 0 : i32
    %c0_i32_0 = arith.constant 0 : i32
    %c0_i32_1 = arith.constant 0 : i32
    return %c0_i32, %c0_i32_0 : i32, i32
  }
  func.func @transform_4(%arg0: i32, %arg1: i32) -> (i32, i32) {
    %c0_i32 = arith.constant 0 : i32
    %c0_i32_0 = arith.constant 0 : i32
    %c0_i32_1 = arith.constant 0 : i32
    return %c0_i32, %c0_i32_0 : i32, i32
  }
  func.func @transform_5(%arg0: i32, %arg1: i32) -> (i32, i32, i32) {
    %c0_i32 = arith.constant 0 : i32
    %c0_i32_0 = arith.constant 0 : i32
    return %arg0, %c0_i32, %arg1 : i32, i32, i32
  }
}

module attributes {stable_mosaic.version = 11 : i64} {
  func.func @_gn_stats_partial_kernel(%arg0: i32, %arg1: i32, %arg2: memref<1x32x128xf32, #tpu.memory_space<vmem>>, %arg3: memref<1x1x128xf32, #tpu.memory_space<vmem>>, %arg4: memref<1x1x128xf32, #tpu.memory_space<vmem>>, %arg5: memref<8x128xf32, #tpu.memory_space<vmem>>, %arg6: memref<8x128xf32, #tpu.memory_space<vmem>>) attributes {dimension_semantics = [#tpu.dimension_semantics<parallel>, #tpu.dimension_semantics<arbitrary>], iteration_bounds = array<i64: 2, 1>, scalar_prefetch = 0 : i64, scratch_operands = 2 : i64, tpu.core_type = #tpu.core_type<tc>, window_params = [{transform_indices = @transform_0, window_bounds = array<i64: 1, 32, 128>}, {transform_indices = @transform_1, window_bounds = array<i64: 1, 1, 128>}, {transform_indices = @transform_2, window_bounds = array<i64: 1, 1, 128>}]} {
    %c0_i32 = arith.constant 0 : i32
    %0 = arith.cmpi eq, %arg1, %c0_i32 : i32
    %1 = arith.extui %0 : i1 to i32
    %c0_i32_0 = arith.constant 0 : i32
    %2 = arith.cmpi ne, %1, %c0_i32_0 : i32
    scf.if %2 {
      %cst_14 = arith.constant 0.000000e+00 : f32
      %18 = vector.broadcast %cst_14 : f32 to vector<8x128xf32>
      %c0_15 = arith.constant 0 : index
      %c0_16 = arith.constant 0 : index
      %19 = vector.load %arg5[%c0_15, %c0_16] : memref<8x128xf32, #tpu.memory_space<vmem>>, vector<8x128xf32>
      tpu.vector_store %arg5[%c0_15, %c0_16], %18 {strides = array<i32>} : memref<8x128xf32, #tpu.memory_space<vmem>>, vector<8x128xf32>,
      %cst_17 = arith.constant 0.000000e+00 : f32
      %20 = vector.broadcast %cst_17 : f32 to vector<8x128xf32>
      %c0_18 = arith.constant 0 : index
      %c0_19 = arith.constant 0 : index
      %21 = vector.load %arg6[%c0_18, %c0_19] : memref<8x128xf32, #tpu.memory_space<vmem>>, vector<8x128xf32>
      tpu.vector_store %arg6[%c0_18, %c0_19], %20 {strides = array<i32>} : memref<8x128xf32, #tpu.memory_space<vmem>>, vector<8x128xf32>,
    } else {
    }
    %c0 = arith.constant 0 : index
    %c0_1 = arith.constant 0 : index
    %c0_2 = arith.constant 0 : index
    %3 = vector.load %arg2[%c0, %c0_1, %c0_2] : memref<1x32x128xf32, #tpu.memory_space<vmem>>, vector<1x32x128xf32>
    %4 = vector.shape_cast %3 : vector<1x32x128xf32> to vector<32x128xf32>
    %5 = vector.shape_cast %4 : vector<32x128xf32> to vector<4x8x128xf32>
    %c0_3 = arith.constant 0 : index
    %c0_4 = arith.constant 0 : index
    %6 = vector.load %arg5[%c0_3, %c0_4] : memref<8x128xf32, #tpu.memory_space<vmem>>, vector<8x128xf32>
    %cst = arith.constant dense<0.000000e+00> : vector<8x128xf32>
    %7 = vector.multi_reduction <add>, %5, %cst [0] : vector<4x8x128xf32> to vector<8x128xf32>
    %8 = arith.addf %6, %7 : vector<8x128xf32>
    %c0_5 = arith.constant 0 : index
    %c0_6 = arith.constant 0 : index
    %9 = vector.load %arg5[%c0_5, %c0_6] : memref<8x128xf32, #tpu.memory_space<vmem>>, vector<8x128xf32>
    tpu.vector_store %arg5[%c0_5, %c0_6], %8 {strides = array<i32>} : memref<8x128xf32, #tpu.memory_space<vmem>>, vector<8x128xf32>,
    %c0_7 = arith.constant 0 : index
    %c0_8 = arith.constant 0 : index
    %10 = vector.load %arg6[%c0_7, %c0_8] : memref<8x128xf32, #tpu.memory_space<vmem>>, vector<8x128xf32>
    %11 = arith.mulf %5, %5 : vector<4x8x128xf32>
    %cst_9 = arith.constant dense<0.000000e+00> : vector<8x128xf32>
    %12 = vector.multi_reduction <add>, %11, %cst_9 [0] : vector<4x8x128xf32> to vector<8x128xf32>
    %13 = arith.addf %10, %12 : vector<8x128xf32>
    %c0_10 = arith.constant 0 : index
    %c0_11 = arith.constant 0 : index
    %14 = vector.load %arg6[%c0_10, %c0_11] : memref<8x128xf32, #tpu.memory_space<vmem>>, vector<8x128xf32>
    tpu.vector_store %arg6[%c0_10, %c0_11], %13 {strides = array<i32>} : memref<8x128xf32, #tpu.memory_space<vmem>>, vector<8x128xf32>,
    %c0_i32_12 = arith.constant 0 : i32
    %15 = arith.cmpi eq, %arg1, %c0_i32_12 : i32
    %16 = arith.extui %15 : i1 to i32
    %c0_i32_13 = arith.constant 0 : i32
    %17 = arith.cmpi ne, %16, %c0_i32_13 : i32
    scf.if %17 {
      %c0_14 = arith.constant 0 : index
      %c0_15 = arith.constant 0 : index
      %18 = vector.load %arg5[%c0_14, %c0_15] : memref<8x128xf32, #tpu.memory_space<vmem>>, vector<8x128xf32>
      %19 = vector.shape_cast %18 : vector<8x128xf32> to vector<1x8x128xf32>
      %cst_16 = arith.constant dense<0.000000e+00> : vector<1xf32>
      %20 = vector.multi_reduction <add>, %19, %cst_16 [1, 2] : vector<1x8x128xf32> to vector<1xf32>
      %21 = vector.shape_cast %20 : vector<1xf32> to vector<1x1x1xf32>
      %22 = vector.extract %21[0, 0, 0] : f32 from vector<1x1x1xf32>
      %cst_17 = arith.constant 2.44140625E-4 : f32
      %23 = arith.mulf %22, %cst_17 : f32
      %c0_18 = arith.constant 0 : index
      %c0_19 = arith.constant 0 : index
      %24 = vector.load %arg6[%c0_18, %c0_19] : memref<8x128xf32, #tpu.memory_space<vmem>>, vector<8x128xf32>
      %25 = vector.shape_cast %24 : vector<8x128xf32> to vector<1x8x128xf32>
      %cst_20 = arith.constant dense<0.000000e+00> : vector<1xf32>
      %26 = vector.multi_reduction <add>, %25, %cst_20 [1, 2] : vector<1x8x128xf32> to vector<1xf32>
      %27 = vector.shape_cast %26 : vector<1xf32> to vector<1x1x1xf32>
      %28 = vector.extract %27[0, 0, 0] : f32 from vector<1x1x1xf32>
      %cst_21 = arith.constant 2.44140625E-4 : f32
      %29 = arith.mulf %28, %cst_21 : f32
      %30 = arith.mulf %23, %23 : f32
      %31 = arith.subf %29, %30 : f32
      %cst_22 = arith.constant 0.000000e+00 : f32
      %32 = arith.maximumf %31, %cst_22 : f32
      %cst_23 = arith.constant 9.99999974E-6 : f32
      %33 = arith.addf %32, %cst_23 : f32
      %34 = math.rsqrt %33 : f32
      %35 = vector.broadcast %23 : f32 to vector<1x1x128xf32>
      %c0_24 = arith.constant 0 : index
      %c0_25 = arith.constant 0 : index
      %c0_26 = arith.constant 0 : index
      %36 = vector.load %arg3[%c0_24, %c0_25, %c0_26] : memref<1x1x128xf32, #tpu.memory_space<vmem>>, vector<1x1x128xf32>
      tpu.vector_store %arg3[%c0_24, %c0_25, %c0_26], %35 {strides = array<i32>} : memref<1x1x128xf32, #tpu.memory_space<vmem>>, vector<1x1x128xf32>,
      %37 = vector.broadcast %34 : f32 to vector<1x1x128xf32>
      %c0_27 = arith.constant 0 : index
      %c0_28 = arith.constant 0 : index
      %c0_29 = arith.constant 0 : index
      %38 = vector.load %arg4[%c0_27, %c0_28, %c0_29] : memref<1x1x128xf32, #tpu.memory_space<vmem>>, vector<1x1x128xf32>
      tpu.vector_store %arg4[%c0_27, %c0_28, %c0_29], %37 {strides = array<i32>} : memref<1x1x128xf32, #tpu.memory_space<vmem>>, vector<1x1x128xf32>,
    } else {
    }
    return
  }
  func.func @transform_0(%arg0: i32, %arg1: i32) -> (i32, i32, i32) {
    %c0_i32 = arith.constant 0 : i32
    %c0_i32_0 = arith.constant 0 : i32
    return %arg0, %arg1, %c0_i32 : i32, i32, i32
  }
  func.func @transform_1(%arg0: i32, %arg1: i32) -> (i32, i32, i32) {
    %c0_i32 = arith.constant 0 : i32
    %c0_i32_0 = arith.constant 0 : i32
    %c0_i32_1 = arith.constant 0 : i32
    return %arg0, %c0_i32, %c0_i32_0 : i32, i32, i32
  }
  func.func @transform_2(%arg0: i32, %arg1: i32) -> (i32, i32, i32) {
    %c0_i32 = arith.constant 0 : i32
    %c0_i32_0 = arith.constant 0 : i32
    %c0_i32_1 = arith.constant 0 : i32
    return %arg0, %c0_i32, %c0_i32_0 : i32, i32, i32
  }
}

module attributes {stable_mosaic.version = 11 : i64} {
  func.func @_spectral_mul_kernel(%arg0: i32, %arg1: i32, %arg2: i32, %arg3: memref<1x8x2x8xf32, #tpu.memory_space<vmem>>, %arg4: memref<1x8x2x8xf32, #tpu.memory_space<vmem>>, %arg5: memref<1x8x8x8xf32, #tpu.memory_space<vmem>>, %arg6: memref<1x8x8x8xf32, #tpu.memory_space<vmem>>, %arg7: memref<1x2x8x8xf32, #tpu.memory_space<vmem>>, %arg8: memref<1x2x8x8xf32, #tpu.memory_space<vmem>>) attributes {dimension_semantics = [#tpu.dimension_semantics<parallel>, #tpu.dimension_semantics<parallel>, #tpu.dimension_semantics<parallel>], iteration_bounds = array<i64: 4, 1, 1>, scalar_prefetch = 0 : i64, scratch_operands = 0 : i64, tpu.core_type = #tpu.core_type<tc>, window_params = [{transform_indices = @transform_0, window_bounds = array<i64: 1, 8, 2, 8>}, {transform_indices = @transform_1, window_bounds = array<i64: 1, 8, 2, 8>}, {transform_indices = @transform_2, window_bounds = array<i64: 1, 8, 8, 8>}, {transform_indices = @transform_3, window_bounds = array<i64: 1, 8, 8, 8>}, {transform_indices = @transform_4, window_bounds = array<i64: 1, 2, 8, 8>}, {transform_indices = @transform_5, window_bounds = array<i64: 1, 2, 8, 8>}]} {
    %cst = arith.constant 0.000000e+00 : f32
    %0 = vector.broadcast %cst : f32 to vector<1x8x8xf32>
    %c0_i32 = arith.constant 0 : i32
    %c0 = arith.constant 0 : index
    %1 = arith.index_cast %c0_i32 : i32 to index
    %c0_0 = arith.constant 0 : index
    %c0_1 = arith.constant 0 : index
    %2 = vector.load %arg3[%c0, %1, %c0_0, %c0_1] : memref<1x8x2x8xf32, #tpu.memory_space<vmem>>, vector<1x1x1x8xf32>
    %3 = vector.shape_cast %2 : vector<1x1x1x8xf32> to vector<1x1x8xf32>
    %c0_2 = arith.constant 0 : index
    %4 = arith.index_cast %c0_i32 : i32 to index
    %c0_3 = arith.constant 0 : index
    %c0_4 = arith.constant 0 : index
    %5 = vector.load %arg4[%c0_2, %4, %c0_3, %c0_4] : memref<1x8x2x8xf32, #tpu.memory_space<vmem>>, vector<1x1x1x8xf32>
    %6 = vector.shape_cast %5 : vector<1x1x1x8xf32> to vector<1x1x8xf32>
    %c0_5 = arith.constant 0 : index
    %7 = arith.index_cast %c0_i32 : i32 to index
    %c0_6 = arith.constant 0 : index
    %c0_7 = arith.constant 0 : index
    %8 = vector.load %arg5[%c0_5, %7, %c0_6, %c0_7] : memref<1x8x8x8xf32, #tpu.memory_space<vmem>>, vector<1x1x8x8xf32>
    %9 = vector.shape_cast %8 : vector<1x1x8x8xf32> to vector<8x8xf32>
    %c0_8 = arith.constant 0 : index
    %10 = arith.index_cast %c0_i32 : i32 to index
    %c0_9 = arith.constant 0 : index
    %c0_10 = arith.constant 0 : index
    %11 = vector.load %arg6[%c0_8, %10, %c0_9, %c0_10] : memref<1x8x8x8xf32, #tpu.memory_space<vmem>>, vector<1x1x8x8xf32>
    %12 = vector.shape_cast %11 : vector<1x1x8x8xf32> to vector<8x8xf32>
    %13 = vector.shape_cast %9 : vector<8x8xf32> to vector<1x8x8xf32>
    %14 = vector.broadcast %3 : vector<1x1x8xf32> to vector<1x8x8xf32>
    %15 = arith.mulf %14, %13 : vector<1x8x8xf32>
    %16 = arith.addf %0, %15 : vector<1x8x8xf32>
    %17 = vector.shape_cast %12 : vector<8x8xf32> to vector<1x8x8xf32>
    %18 = vector.broadcast %6 : vector<1x1x8xf32> to vector<1x8x8xf32>
    %19 = arith.mulf %18, %17 : vector<1x8x8xf32>
    %20 = arith.subf %16, %19 : vector<1x8x8xf32>
    %21 = vector.shape_cast %12 : vector<8x8xf32> to vector<1x8x8xf32>
    %22 = vector.broadcast %3 : vector<1x1x8xf32> to vector<1x8x8xf32>
    %23 = arith.mulf %22, %21 : vector<1x8x8xf32>
    %24 = arith.addf %0, %23 : vector<1x8x8xf32>
    %25 = vector.shape_cast %9 : vector<8x8xf32> to vector<1x8x8xf32>
    %26 = vector.broadcast %6 : vector<1x1x8xf32> to vector<1x8x8xf32>
    %27 = arith.mulf %26, %25 : vector<1x8x8xf32>
    %28 = arith.addf %24, %27 : vector<1x8x8xf32>
    %c1_i32 = arith.constant 1 : i32
    %c0_11 = arith.constant 0 : index
    %29 = arith.index_cast %c1_i32 : i32 to index
    %c0_12 = arith.constant 0 : index
    %c0_13 = arith.constant 0 : index
    %30 = vector.load %arg3[%c0_11, %29, %c0_12, %c0_13] : memref<1x8x2x8xf32, #tpu.memory_space<vmem>>, vector<1x1x1x8xf32>
    %31 = vector.shape_cast %30 : vector<1x1x1x8xf32> to vector<1x1x8xf32>
    %c0_14 = arith.constant 0 : index
    %32 = arith.index_cast %c1_i32 : i32 to index
    %c0_15 = arith.constant 0 : index
    %c0_16 = arith.constant 0 : index
    %33 = vector.load %arg4[%c0_14, %32, %c0_15, %c0_16] : memref<1x8x2x8xf32, #tpu.memory_space<vmem>>, vector<1x1x1x8xf32>
    %34 = vector.shape_cast %33 : vector<1x1x1x8xf32> to vector<1x1x8xf32>
    %c0_17 = arith.constant 0 : index
    %35 = arith.index_cast %c1_i32 : i32 to index
    %c0_18 = arith.constant 0 : index
    %c0_19 = arith.constant 0 : index
    %36 = vector.load %arg5[%c0_17, %35, %c0_18, %c0_19] : memref<1x8x8x8xf32, #tpu.memory_space<vmem>>, vector<1x1x8x8xf32>
    %37 = vector.shape_cast %36 : vector<1x1x8x8xf32> to vector<8x8xf32>
    %c0_20 = arith.constant 0 : index
    %38 = arith.index_cast %c1_i32 : i32 to index
    %c0_21 = arith.constant 0 : index
    %c0_22 = arith.constant 0 : index
    %39 = vector.load %arg6[%c0_20, %38, %c0_21, %c0_22] : memref<1x8x8x8xf32, #tpu.memory_space<vmem>>, vector<1x1x8x8xf32>
    %40 = vector.shape_cast %39 : vector<1x1x8x8xf32> to vector<8x8xf32>
    %41 = vector.shape_cast %37 : vector<8x8xf32> to vector<1x8x8xf32>
    %42 = vector.broadcast %31 : vector<1x1x8xf32> to vector<1x8x8xf32>
    %43 = arith.mulf %42, %41 : vector<1x8x8xf32>
    %44 = arith.addf %20, %43 : vector<1x8x8xf32>
    %45 = vector.shape_cast %40 : vector<8x8xf32> to vector<1x8x8xf32>
    %46 = vector.broadcast %34 : vector<1x1x8xf32> to vector<1x8x8xf32>
    %47 = arith.mulf %46, %45 : vector<1x8x8xf32>
    %48 = arith.subf %44, %47 : vector<1x8x8xf32>
    %49 = vector.shape_cast %40 : vector<8x8xf32> to vector<1x8x8xf32>
    %50 = vector.broadcast %31 : vector<1x1x8xf32> to vector<1x8x8xf32>
    %51 = arith.mulf %50, %49 : vector<1x8x8xf32>
    %52 = arith.addf %28, %51 : vector<1x8x8xf32>
    %53 = vector.shape_cast %37 : vector<8x8xf32> to vector<1x8x8xf32>
    %54 = vector.broadcast %34 : vector<1x1x8xf32> to vector<1x8x8xf32>
    %55 = arith.mulf %54, %53 : vector<1x8x8xf32>
    %56 = arith.addf %52, %55 : vector<1x8x8xf32>
    %c2_i32 = arith.constant 2 : i32
    %c0_23 = arith.constant 0 : index
    %57 = arith.index_cast %c2_i32 : i32 to index
    %c0_24 = arith.constant 0 : index
    %c0_25 = arith.constant 0 : index
    %58 = vector.load %arg3[%c0_23, %57, %c0_24, %c0_25] : memref<1x8x2x8xf32, #tpu.memory_space<vmem>>, vector<1x1x1x8xf32>
    %59 = vector.shape_cast %58 : vector<1x1x1x8xf32> to vector<1x1x8xf32>
    %c0_26 = arith.constant 0 : index
    %60 = arith.index_cast %c2_i32 : i32 to index
    %c0_27 = arith.constant 0 : index
    %c0_28 = arith.constant 0 : index
    %61 = vector.load %arg4[%c0_26, %60, %c0_27, %c0_28] : memref<1x8x2x8xf32, #tpu.memory_space<vmem>>, vector<1x1x1x8xf32>
    %62 = vector.shape_cast %61 : vector<1x1x1x8xf32> to vector<1x1x8xf32>
    %c0_29 = arith.constant 0 : index
    %63 = arith.index_cast %c2_i32 : i32 to index
    %c0_30 = arith.constant 0 : index
    %c0_31 = arith.constant 0 : index
    %64 = vector.load %arg5[%c0_29, %63, %c0_30, %c0_31] : memref<1x8x8x8xf32, #tpu.memory_space<vmem>>, vector<1x1x8x8xf32>
    %65 = vector.shape_cast %64 : vector<1x1x8x8xf32> to vector<8x8xf32>
    %c0_32 = arith.constant 0 : index
    %66 = arith.index_cast %c2_i32 : i32 to index
    %c0_33 = arith.constant 0 : index
    %c0_34 = arith.constant 0 : index
    %67 = vector.load %arg6[%c0_32, %66, %c0_33, %c0_34] : memref<1x8x8x8xf32, #tpu.memory_space<vmem>>, vector<1x1x8x8xf32>
    %68 = vector.shape_cast %67 : vector<1x1x8x8xf32> to vector<8x8xf32>
    %69 = vector.shape_cast %65 : vector<8x8xf32> to vector<1x8x8xf32>
    %70 = vector.broadcast %59 : vector<1x1x8xf32> to vector<1x8x8xf32>
    %71 = arith.mulf %70, %69 : vector<1x8x8xf32>
    %72 = arith.addf %48, %71 : vector<1x8x8xf32>
    %73 = vector.shape_cast %68 : vector<8x8xf32> to vector<1x8x8xf32>
    %74 = vector.broadcast %62 : vector<1x1x8xf32> to vector<1x8x8xf32>
    %75 = arith.mulf %74, %73 : vector<1x8x8xf32>
    %76 = arith.subf %72, %75 : vector<1x8x8xf32>
    %77 = vector.shape_cast %68 : vector<8x8xf32> to vector<1x8x8xf32>
    %78 = vector.broadcast %59 : vector<1x1x8xf32> to vector<1x8x8xf32>
    %79 = arith.mulf %78, %77 : vector<1x8x8xf32>
    %80 = arith.addf %56, %79 : vector<1x8x8xf32>
    %81 = vector.shape_cast %65 : vector<8x8xf32> to vector<1x8x8xf32>
    %82 = vector.broadcast %62 : vector<1x1x8xf32> to vector<1x8x8xf32>
    %83 = arith.mulf %82, %81 : vector<1x8x8xf32>
    %84 = arith.addf %80, %83 : vector<1x8x8xf32>
    %c3_i32 = arith.constant 3 : i32
    %c0_35 = arith.constant 0 : index
    %85 = arith.index_cast %c3_i32 : i32 to index
    %c0_36 = arith.constant 0 : index
    %c0_37 = arith.constant 0 : index
    %86 = vector.load %arg3[%c0_35, %85, %c0_36, %c0_37] : memref<1x8x2x8xf32, #tpu.memory_space<vmem>>, vector<1x1x1x8xf32>
    %87 = vector.shape_cast %86 : vector<1x1x1x8xf32> to vector<1x1x8xf32>
    %c0_38 = arith.constant 0 : index
    %88 = arith.index_cast %c3_i32 : i32 to index
    %c0_39 = arith.constant 0 : index
    %c0_40 = arith.constant 0 : index
    %89 = vector.load %arg4[%c0_38, %88, %c0_39, %c0_40] : memref<1x8x2x8xf32, #tpu.memory_space<vmem>>, vector<1x1x1x8xf32>
    %90 = vector.shape_cast %89 : vector<1x1x1x8xf32> to vector<1x1x8xf32>
    %c0_41 = arith.constant 0 : index
    %91 = arith.index_cast %c3_i32 : i32 to index
    %c0_42 = arith.constant 0 : index
    %c0_43 = arith.constant 0 : index
    %92 = vector.load %arg5[%c0_41, %91, %c0_42, %c0_43] : memref<1x8x8x8xf32, #tpu.memory_space<vmem>>, vector<1x1x8x8xf32>
    %93 = vector.shape_cast %92 : vector<1x1x8x8xf32> to vector<8x8xf32>
    %c0_44 = arith.constant 0 : index
    %94 = arith.index_cast %c3_i32 : i32 to index
    %c0_45 = arith.constant 0 : index
    %c0_46 = arith.constant 0 : index
    %95 = vector.load %arg6[%c0_44, %94, %c0_45, %c0_46] : memref<1x8x8x8xf32, #tpu.memory_space<vmem>>, vector<1x1x8x8xf32>
    %96 = vector.shape_cast %95 : vector<1x1x8x8xf32> to vector<8x8xf32>
    %97 = vector.shape_cast %93 : vector<8x8xf32> to vector<1x8x8xf32>
    %98 = vector.broadcast %87 : vector<1x1x8xf32> to vector<1x8x8xf32>
    %99 = arith.mulf %98, %97 : vector<1x8x8xf32>
    %100 = arith.addf %76, %99 : vector<1x8x8xf32>
    %101 = vector.shape_cast %96 : vector<8x8xf32> to vector<1x8x8xf32>
    %102 = vector.broadcast %90 : vector<1x1x8xf32> to vector<1x8x8xf32>
    %103 = arith.mulf %102, %101 : vector<1x8x8xf32>
    %104 = arith.subf %100, %103 : vector<1x8x8xf32>
    %105 = vector.shape_cast %96 : vector<8x8xf32> to vector<1x8x8xf32>
    %106 = vector.broadcast %87 : vector<1x1x8xf32> to vector<1x8x8xf32>
    %107 = arith.mulf %106, %105 : vector<1x8x8xf32>
    %108 = arith.addf %84, %107 : vector<1x8x8xf32>
    %109 = vector.shape_cast %93 : vector<8x8xf32> to vector<1x8x8xf32>
    %110 = vector.broadcast %90 : vector<1x1x8xf32> to vector<1x8x8xf32>
    %111 = arith.mulf %110, %109 : vector<1x8x8xf32>
    %112 = arith.addf %108, %111 : vector<1x8x8xf32>
    %c4_i32 = arith.constant 4 : i32
    %c0_47 = arith.constant 0 : index
    %113 = arith.index_cast %c4_i32 : i32 to index
    %c0_48 = arith.constant 0 : index
    %c0_49 = arith.constant 0 : index
    %114 = vector.load %arg3[%c0_47, %113, %c0_48, %c0_49] : memref<1x8x2x8xf32, #tpu.memory_space<vmem>>, vector<1x1x1x8xf32>
    %115 = vector.shape_cast %114 : vector<1x1x1x8xf32> to vector<1x1x8xf32>
    %c0_50 = arith.constant 0 : index
    %116 = arith.index_cast %c4_i32 : i32 to index
    %c0_51 = arith.constant 0 : index
    %c0_52 = arith.constant 0 : index
    %117 = vector.load %arg4[%c0_50, %116, %c0_51, %c0_52] : memref<1x8x2x8xf32, #tpu.memory_space<vmem>>, vector<1x1x1x8xf32>
    %118 = vector.shape_cast %117 : vector<1x1x1x8xf32> to vector<1x1x8xf32>
    %c0_53 = arith.constant 0 : index
    %119 = arith.index_cast %c4_i32 : i32 to index
    %c0_54 = arith.constant 0 : index
    %c0_55 = arith.constant 0 : index
    %120 = vector.load %arg5[%c0_53, %119, %c0_54, %c0_55] : memref<1x8x8x8xf32, #tpu.memory_space<vmem>>, vector<1x1x8x8xf32>
    %121 = vector.shape_cast %120 : vector<1x1x8x8xf32> to vector<8x8xf32>
    %c0_56 = arith.constant 0 : index
    %122 = arith.index_cast %c4_i32 : i32 to index
    %c0_57 = arith.constant 0 : index
    %c0_58 = arith.constant 0 : index
    %123 = vector.load %arg6[%c0_56, %122, %c0_57, %c0_58] : memref<1x8x8x8xf32, #tpu.memory_space<vmem>>, vector<1x1x8x8xf32>
    %124 = vector.shape_cast %123 : vector<1x1x8x8xf32> to vector<8x8xf32>
    %125 = vector.shape_cast %121 : vector<8x8xf32> to vector<1x8x8xf32>
    %126 = vector.broadcast %115 : vector<1x1x8xf32> to vector<1x8x8xf32>
    %127 = arith.mulf %126, %125 : vector<1x8x8xf32>
    %128 = arith.addf %104, %127 : vector<1x8x8xf32>
    %129 = vector.shape_cast %124 : vector<8x8xf32> to vector<1x8x8xf32>
    %130 = vector.broadcast %118 : vector<1x1x8xf32> to vector<1x8x8xf32>
    %131 = arith.mulf %130, %129 : vector<1x8x8xf32>
    %132 = arith.subf %128, %131 : vector<1x8x8xf32>
    %133 = vector.shape_cast %124 : vector<8x8xf32> to vector<1x8x8xf32>
    %134 = vector.broadcast %115 : vector<1x1x8xf32> to vector<1x8x8xf32>
    %135 = arith.mulf %134, %133 : vector<1x8x8xf32>
    %136 = arith.addf %112, %135 : vector<1x8x8xf32>
    %137 = vector.shape_cast %121 : vector<8x8xf32> to vector<1x8x8xf32>
    %138 = vector.broadcast %118 : vector<1x1x8xf32> to vector<1x8x8xf32>
    %139 = arith.mulf %138, %137 : vector<1x8x8xf32>
    %140 = arith.addf %136, %139 : vector<1x8x8xf32>
    %c5_i32 = arith.constant 5 : i32
    %c0_59 = arith.constant 0 : index
    %141 = arith.index_cast %c5_i32 : i32 to index
    %c0_60 = arith.constant 0 : index
    %c0_61 = arith.constant 0 : index
    %142 = vector.load %arg3[%c0_59, %141, %c0_60, %c0_61] : memref<1x8x2x8xf32, #tpu.memory_space<vmem>>, vector<1x1x1x8xf32>
    %143 = vector.shape_cast %142 : vector<1x1x1x8xf32> to vector<1x1x8xf32>
    %c0_62 = arith.constant 0 : index
    %144 = arith.index_cast %c5_i32 : i32 to index
    %c0_63 = arith.constant 0 : index
    %c0_64 = arith.constant 0 : index
    %145 = vector.load %arg4[%c0_62, %144, %c0_63, %c0_64] : memref<1x8x2x8xf32, #tpu.memory_space<vmem>>, vector<1x1x1x8xf32>
    %146 = vector.shape_cast %145 : vector<1x1x1x8xf32> to vector<1x1x8xf32>
    %c0_65 = arith.constant 0 : index
    %147 = arith.index_cast %c5_i32 : i32 to index
    %c0_66 = arith.constant 0 : index
    %c0_67 = arith.constant 0 : index
    %148 = vector.load %arg5[%c0_65, %147, %c0_66, %c0_67] : memref<1x8x8x8xf32, #tpu.memory_space<vmem>>, vector<1x1x8x8xf32>
    %149 = vector.shape_cast %148 : vector<1x1x8x8xf32> to vector<8x8xf32>
    %c0_68 = arith.constant 0 : index
    %150 = arith.index_cast %c5_i32 : i32 to index
    %c0_69 = arith.constant 0 : index
    %c0_70 = arith.constant 0 : index
    %151 = vector.load %arg6[%c0_68, %150, %c0_69, %c0_70] : memref<1x8x8x8xf32, #tpu.memory_space<vmem>>, vector<1x1x8x8xf32>
    %152 = vector.shape_cast %151 : vector<1x1x8x8xf32> to vector<8x8xf32>
    %153 = vector.shape_cast %149 : vector<8x8xf32> to vector<1x8x8xf32>
    %154 = vector.broadcast %143 : vector<1x1x8xf32> to vector<1x8x8xf32>
    %155 = arith.mulf %154, %153 : vector<1x8x8xf32>
    %156 = arith.addf %132, %155 : vector<1x8x8xf32>
    %157 = vector.shape_cast %152 : vector<8x8xf32> to vector<1x8x8xf32>
    %158 = vector.broadcast %146 : vector<1x1x8xf32> to vector<1x8x8xf32>
    %159 = arith.mulf %158, %157 : vector<1x8x8xf32>
    %160 = arith.subf %156, %159 : vector<1x8x8xf32>
    %161 = vector.shape_cast %152 : vector<8x8xf32> to vector<1x8x8xf32>
    %162 = vector.broadcast %143 : vector<1x1x8xf32> to vector<1x8x8xf32>
    %163 = arith.mulf %162, %161 : vector<1x8x8xf32>
    %164 = arith.addf %140, %163 : vector<1x8x8xf32>
    %165 = vector.shape_cast %149 : vector<8x8xf32> to vector<1x8x8xf32>
    %166 = vector.broadcast %146 : vector<1x1x8xf32> to vector<1x8x8xf32>
    %167 = arith.mulf %166, %165 : vector<1x8x8xf32>
    %168 = arith.addf %164, %167 : vector<1x8x8xf32>
    %c6_i32 = arith.constant 6 : i32
    %c0_71 = arith.constant 0 : index
    %169 = arith.index_cast %c6_i32 : i32 to index
    %c0_72 = arith.constant 0 : index
    %c0_73 = arith.constant 0 : index
    %170 = vector.load %arg3[%c0_71, %169, %c0_72, %c0_73] : memref<1x8x2x8xf32, #tpu.memory_space<vmem>>, vector<1x1x1x8xf32>
    %171 = vector.shape_cast %170 : vector<1x1x1x8xf32> to vector<1x1x8xf32>
    %c0_74 = arith.constant 0 : index
    %172 = arith.index_cast %c6_i32 : i32 to index
    %c0_75 = arith.constant 0 : index
    %c0_76 = arith.constant 0 : index
    %173 = vector.load %arg4[%c0_74, %172, %c0_75, %c0_76] : memref<1x8x2x8xf32, #tpu.memory_space<vmem>>, vector<1x1x1x8xf32>
    %174 = vector.shape_cast %173 : vector<1x1x1x8xf32> to vector<1x1x8xf32>
    %c0_77 = arith.constant 0 : index
    %175 = arith.index_cast %c6_i32 : i32 to index
    %c0_78 = arith.constant 0 : index
    %c0_79 = arith.constant 0 : index
    %176 = vector.load %arg5[%c0_77, %175, %c0_78, %c0_79] : memref<1x8x8x8xf32, #tpu.memory_space<vmem>>, vector<1x1x8x8xf32>
    %177 = vector.shape_cast %176 : vector<1x1x8x8xf32> to vector<8x8xf32>
    %c0_80 = arith.constant 0 : index
    %178 = arith.index_cast %c6_i32 : i32 to index
    %c0_81 = arith.constant 0 : index
    %c0_82 = arith.constant 0 : index
    %179 = vector.load %arg6[%c0_80, %178, %c0_81, %c0_82] : memref<1x8x8x8xf32, #tpu.memory_space<vmem>>, vector<1x1x8x8xf32>
    %180 = vector.shape_cast %179 : vector<1x1x8x8xf32> to vector<8x8xf32>
    %181 = vector.shape_cast %177 : vector<8x8xf32> to vector<1x8x8xf32>
    %182 = vector.broadcast %171 : vector<1x1x8xf32> to vector<1x8x8xf32>
    %183 = arith.mulf %182, %181 : vector<1x8x8xf32>
    %184 = arith.addf %160, %183 : vector<1x8x8xf32>
    %185 = vector.shape_cast %180 : vector<8x8xf32> to vector<1x8x8xf32>
    %186 = vector.broadcast %174 : vector<1x1x8xf32> to vector<1x8x8xf32>
    %187 = arith.mulf %186, %185 : vector<1x8x8xf32>
    %188 = arith.subf %184, %187 : vector<1x8x8xf32>
    %189 = vector.shape_cast %180 : vector<8x8xf32> to vector<1x8x8xf32>
    %190 = vector.broadcast %171 : vector<1x1x8xf32> to vector<1x8x8xf32>
    %191 = arith.mulf %190, %189 : vector<1x8x8xf32>
    %192 = arith.addf %168, %191 : vector<1x8x8xf32>
    %193 = vector.shape_cast %177 : vector<8x8xf32> to vector<1x8x8xf32>
    %194 = vector.broadcast %174 : vector<1x1x8xf32> to vector<1x8x8xf32>
    %195 = arith.mulf %194, %193 : vector<1x8x8xf32>
    %196 = arith.addf %192, %195 : vector<1x8x8xf32>
    %c7_i32 = arith.constant 7 : i32
    %c0_83 = arith.constant 0 : index
    %197 = arith.index_cast %c7_i32 : i32 to index
    %c0_84 = arith.constant 0 : index
    %c0_85 = arith.constant 0 : index
    %198 = vector.load %arg3[%c0_83, %197, %c0_84, %c0_85] : memref<1x8x2x8xf32, #tpu.memory_space<vmem>>, vector<1x1x1x8xf32>
    %199 = vector.shape_cast %198 : vector<1x1x1x8xf32> to vector<1x1x8xf32>
    %c0_86 = arith.constant 0 : index
    %200 = arith.index_cast %c7_i32 : i32 to index
    %c0_87 = arith.constant 0 : index
    %c0_88 = arith.constant 0 : index
    %201 = vector.load %arg4[%c0_86, %200, %c0_87, %c0_88] : memref<1x8x2x8xf32, #tpu.memory_space<vmem>>, vector<1x1x1x8xf32>
    %202 = vector.shape_cast %201 : vector<1x1x1x8xf32> to vector<1x1x8xf32>
    %c0_89 = arith.constant 0 : index
    %203 = arith.index_cast %c7_i32 : i32 to index
    %c0_90 = arith.constant 0 : index
    %c0_91 = arith.constant 0 : index
    %204 = vector.load %arg5[%c0_89, %203, %c0_90, %c0_91] : memref<1x8x8x8xf32, #tpu.memory_space<vmem>>, vector<1x1x8x8xf32>
    %205 = vector.shape_cast %204 : vector<1x1x8x8xf32> to vector<8x8xf32>
    %c0_92 = arith.constant 0 : index
    %206 = arith.index_cast %c7_i32 : i32 to index
    %c0_93 = arith.constant 0 : index
    %c0_94 = arith.constant 0 : index
    %207 = vector.load %arg6[%c0_92, %206, %c0_93, %c0_94] : memref<1x8x8x8xf32, #tpu.memory_space<vmem>>, vector<1x1x8x8xf32>
    %208 = vector.shape_cast %207 : vector<1x1x8x8xf32> to vector<8x8xf32>
    %209 = vector.shape_cast %205 : vector<8x8xf32> to vector<1x8x8xf32>
    %210 = vector.broadcast %199 : vector<1x1x8xf32> to vector<1x8x8xf32>
    %211 = arith.mulf %210, %209 : vector<1x8x8xf32>
    %212 = arith.addf %188, %211 : vector<1x8x8xf32>
    %213 = vector.shape_cast %208 : vector<8x8xf32> to vector<1x8x8xf32>
    %214 = vector.broadcast %202 : vector<1x1x8xf32> to vector<1x8x8xf32>
    %215 = arith.mulf %214, %213 : vector<1x8x8xf32>
    %216 = arith.subf %212, %215 : vector<1x8x8xf32>
    %217 = vector.shape_cast %208 : vector<8x8xf32> to vector<1x8x8xf32>
    %218 = vector.broadcast %199 : vector<1x1x8xf32> to vector<1x8x8xf32>
    %219 = arith.mulf %218, %217 : vector<1x8x8xf32>
    %220 = arith.addf %196, %219 : vector<1x8x8xf32>
    %221 = vector.shape_cast %205 : vector<8x8xf32> to vector<1x8x8xf32>
    %222 = vector.broadcast %202 : vector<1x1x8xf32> to vector<1x8x8xf32>
    %223 = arith.mulf %222, %221 : vector<1x8x8xf32>
    %224 = arith.addf %220, %223 : vector<1x8x8xf32>
    %c8_i32 = arith.constant 8 : i32
    %c0_95 = arith.constant 0 : index
    %c0_96 = arith.constant 0 : index
    %c0_97 = arith.constant 0 : index
    %c0_98 = arith.constant 0 : index
    %225 = vector.load %arg7[%c0_95, %c0_96, %c0_97, %c0_98] : memref<1x2x8x8xf32, #tpu.memory_space<vmem>>, vector<1x1x8x8xf32>
    %226 = vector.shape_cast %225 : vector<1x1x8x8xf32> to vector<1x8x8xf32>
    %227 = vector.shape_cast %216 : vector<1x8x8xf32> to vector<1x1x8x8xf32>
    tpu.vector_store %arg7[%c0_95, %c0_96, %c0_97, %c0_98], %227 {strides = array<i32>} : memref<1x2x8x8xf32, #tpu.memory_space<vmem>>, vector<1x1x8x8xf32>,
    %c0_99 = arith.constant 0 : index
    %c0_100 = arith.constant 0 : index
    %c0_101 = arith.constant 0 : index
    %c0_102 = arith.constant 0 : index
    %228 = vector.load %arg8[%c0_99, %c0_100, %c0_101, %c0_102] : memref<1x2x8x8xf32, #tpu.memory_space<vmem>>, vector<1x1x8x8xf32>
    %229 = vector.shape_cast %228 : vector<1x1x8x8xf32> to vector<1x8x8xf32>
    %230 = vector.shape_cast %224 : vector<1x8x8xf32> to vector<1x1x8x8xf32>
    tpu.vector_store %arg8[%c0_99, %c0_100, %c0_101, %c0_102], %230 {strides = array<i32>} : memref<1x2x8x8xf32, #tpu.memory_space<vmem>>, vector<1x1x8x8xf32>,
    %cst_103 = arith.constant 0.000000e+00 : f32
    %231 = vector.broadcast %cst_103 : f32 to vector<1x8x8xf32>
    %c0_i32_104 = arith.constant 0 : i32
    %c0_105 = arith.constant 0 : index
    %232 = arith.index_cast %c0_i32_104 : i32 to index
    %c1 = arith.constant 1 : index
    %c0_106 = arith.constant 0 : index
    %233 = vector.load %arg3[%c0_105, %232, %c1, %c0_106] : memref<1x8x2x8xf32, #tpu.memory_space<vmem>>, vector<1x1x1x8xf32>
    %234 = vector.shape_cast %233 : vector<1x1x1x8xf32> to vector<1x1x8xf32>
    %c0_107 = arith.constant 0 : index
    %235 = arith.index_cast %c0_i32_104 : i32 to index
    %c1_108 = arith.constant 1 : index
    %c0_109 = arith.constant 0 : index
    %236 = vector.load %arg4[%c0_107, %235, %c1_108, %c0_109] : memref<1x8x2x8xf32, #tpu.memory_space<vmem>>, vector<1x1x1x8xf32>
    %237 = vector.shape_cast %236 : vector<1x1x1x8xf32> to vector<1x1x8xf32>
    %c0_110 = arith.constant 0 : index
    %238 = arith.index_cast %c0_i32_104 : i32 to index
    %c0_111 = arith.constant 0 : index
    %c0_112 = arith.constant 0 : index
    %239 = vector.load %arg5[%c0_110, %238, %c0_111, %c0_112] : memref<1x8x8x8xf32, #tpu.memory_space<vmem>>, vector<1x1x8x8xf32>
    %240 = vector.shape_cast %239 : vector<1x1x8x8xf32> to vector<8x8xf32>
    %c0_113 = arith.constant 0 : index
    %241 = arith.index_cast %c0_i32_104 : i32 to index
    %c0_114 = arith.constant 0 : index
    %c0_115 = arith.constant 0 : index
    %242 = vector.load %arg6[%c0_113, %241, %c0_114, %c0_115] : memref<1x8x8x8xf32, #tpu.memory_space<vmem>>, vector<1x1x8x8xf32>
    %243 = vector.shape_cast %242 : vector<1x1x8x8xf32> to vector<8x8xf32>
    %244 = vector.shape_cast %240 : vector<8x8xf32> to vector<1x8x8xf32>
    %245 = vector.broadcast %234 : vector<1x1x8xf32> to vector<1x8x8xf32>
    %246 = arith.mulf %245, %244 : vector<1x8x8xf32>
    %247 = arith.addf %231, %246 : vector<1x8x8xf32>
    %248 = vector.shape_cast %243 : vector<8x8xf32> to vector<1x8x8xf32>
    %249 = vector.broadcast %237 : vector<1x1x8xf32> to vector<1x8x8xf32>
    %250 = arith.mulf %249, %248 : vector<1x8x8xf32>
    %251 = arith.subf %247, %250 : vector<1x8x8xf32>
    %252 = vector.shape_cast %243 : vector<8x8xf32> to vector<1x8x8xf32>
    %253 = vector.broadcast %234 : vector<1x1x8xf32> to vector<1x8x8xf32>
    %254 = arith.mulf %253, %252 : vector<1x8x8xf32>
    %255 = arith.addf %231, %254 : vector<1x8x8xf32>
    %256 = vector.shape_cast %240 : vector<8x8xf32> to vector<1x8x8xf32>
    %257 = vector.broadcast %237 : vector<1x1x8xf32> to vector<1x8x8xf32>
    %258 = arith.mulf %257, %256 : vector<1x8x8xf32>
    %259 = arith.addf %255, %258 : vector<1x8x8xf32>
    %c1_i32_116 = arith.constant 1 : i32
    %c0_117 = arith.constant 0 : index
    %260 = arith.index_cast %c1_i32_116 : i32 to index
    %c1_118 = arith.constant 1 : index
    %c0_119 = arith.constant 0 : index
    %261 = vector.load %arg3[%c0_117, %260, %c1_118, %c0_119] : memref<1x8x2x8xf32, #tpu.memory_space<vmem>>, vector<1x1x1x8xf32>
    %262 = vector.shape_cast %261 : vector<1x1x1x8xf32> to vector<1x1x8xf32>
    %c0_120 = arith.constant 0 : index
    %263 = arith.index_cast %c1_i32_116 : i32 to index
    %c1_121 = arith.constant 1 : index
    %c0_122 = arith.constant 0 : index
    %264 = vector.load %arg4[%c0_120, %263, %c1_121, %c0_122] : memref<1x8x2x8xf32, #tpu.memory_space<vmem>>, vector<1x1x1x8xf32>
    %265 = vector.shape_cast %264 : vector<1x1x1x8xf32> to vector<1x1x8xf32>
    %c0_123 = arith.constant 0 : index
    %266 = arith.index_cast %c1_i32_116 : i32 to index
    %c0_124 = arith.constant 0 : index
    %c0_125 = arith.constant 0 : index
    %267 = vector.load %arg5[%c0_123, %266, %c0_124, %c0_125] : memref<1x8x8x8xf32, #tpu.memory_space<vmem>>, vector<1x1x8x8xf32>
    %268 = vector.shape_cast %267 : vector<1x1x8x8xf32> to vector<8x8xf32>
    %c0_126 = arith.constant 0 : index
    %269 = arith.index_cast %c1_i32_116 : i32 to index
    %c0_127 = arith.constant 0 : index
    %c0_128 = arith.constant 0 : index
    %270 = vector.load %arg6[%c0_126, %269, %c0_127, %c0_128] : memref<1x8x8x8xf32, #tpu.memory_space<vmem>>, vector<1x1x8x8xf32>
    %271 = vector.shape_cast %270 : vector<1x1x8x8xf32> to vector<8x8xf32>
    %272 = vector.shape_cast %268 : vector<8x8xf32> to vector<1x8x8xf32>
    %273 = vector.broadcast %262 : vector<1x1x8xf32> to vector<1x8x8xf32>
    %274 = arith.mulf %273, %272 : vector<1x8x8xf32>
    %275 = arith.addf %251, %274 : vector<1x8x8xf32>
    %276 = vector.shape_cast %271 : vector<8x8xf32> to vector<1x8x8xf32>
    %277 = vector.broadcast %265 : vector<1x1x8xf32> to vector<1x8x8xf32>
    %278 = arith.mulf %277, %276 : vector<1x8x8xf32>
    %279 = arith.subf %275, %278 : vector<1x8x8xf32>
    %280 = vector.shape_cast %271 : vector<8x8xf32> to vector<1x8x8xf32>
    %281 = vector.broadcast %262 : vector<1x1x8xf32> to vector<1x8x8xf32>
    %282 = arith.mulf %281, %280 : vector<1x8x8xf32>
    %283 = arith.addf %259, %282 : vector<1x8x8xf32>
    %284 = vector.shape_cast %268 : vector<8x8xf32> to vector<1x8x8xf32>
    %285 = vector.broadcast %265 : vector<1x1x8xf32> to vector<1x8x8xf32>
    %286 = arith.mulf %285, %284 : vector<1x8x8xf32>
    %287 = arith.addf %283, %286 : vector<1x8x8xf32>
    %c2_i32_129 = arith.constant 2 : i32
    %c0_130 = arith.constant 0 : index
    %288 = arith.index_cast %c2_i32_129 : i32 to index
    %c1_131 = arith.constant 1 : index
    %c0_132 = arith.constant 0 : index
    %289 = vector.load %arg3[%c0_130, %288, %c1_131, %c0_132] : memref<1x8x2x8xf32, #tpu.memory_space<vmem>>, vector<1x1x1x8xf32>
    %290 = vector.shape_cast %289 : vector<1x1x1x8xf32> to vector<1x1x8xf32>
    %c0_133 = arith.constant 0 : index
    %291 = arith.index_cast %c2_i32_129 : i32 to index
    %c1_134 = arith.constant 1 : index
    %c0_135 = arith.constant 0 : index
    %292 = vector.load %arg4[%c0_133, %291, %c1_134, %c0_135] : memref<1x8x2x8xf32, #tpu.memory_space<vmem>>, vector<1x1x1x8xf32>
    %293 = vector.shape_cast %292 : vector<1x1x1x8xf32> to vector<1x1x8xf32>
    %c0_136 = arith.constant 0 : index
    %294 = arith.index_cast %c2_i32_129 : i32 to index
    %c0_137 = arith.constant 0 : index
    %c0_138 = arith.constant 0 : index
    %295 = vector.load %arg5[%c0_136, %294, %c0_137, %c0_138] : memref<1x8x8x8xf32, #tpu.memory_space<vmem>>, vector<1x1x8x8xf32>
    %296 = vector.shape_cast %295 : vector<1x1x8x8xf32> to vector<8x8xf32>
    %c0_139 = arith.constant 0 : index
    %297 = arith.index_cast %c2_i32_129 : i32 to index
    %c0_140 = arith.constant 0 : index
    %c0_141 = arith.constant 0 : index
    %298 = vector.load %arg6[%c0_139, %297, %c0_140, %c0_141] : memref<1x8x8x8xf32, #tpu.memory_space<vmem>>, vector<1x1x8x8xf32>
    %299 = vector.shape_cast %298 : vector<1x1x8x8xf32> to vector<8x8xf32>
    %300 = vector.shape_cast %296 : vector<8x8xf32> to vector<1x8x8xf32>
    %301 = vector.broadcast %290 : vector<1x1x8xf32> to vector<1x8x8xf32>
    %302 = arith.mulf %301, %300 : vector<1x8x8xf32>
    %303 = arith.addf %279, %302 : vector<1x8x8xf32>
    %304 = vector.shape_cast %299 : vector<8x8xf32> to vector<1x8x8xf32>
    %305 = vector.broadcast %293 : vector<1x1x8xf32> to vector<1x8x8xf32>
    %306 = arith.mulf %305, %304 : vector<1x8x8xf32>
    %307 = arith.subf %303, %306 : vector<1x8x8xf32>
    %308 = vector.shape_cast %299 : vector<8x8xf32> to vector<1x8x8xf32>
    %309 = vector.broadcast %290 : vector<1x1x8xf32> to vector<1x8x8xf32>
    %310 = arith.mulf %309, %308 : vector<1x8x8xf32>
    %311 = arith.addf %287, %310 : vector<1x8x8xf32>
    %312 = vector.shape_cast %296 : vector<8x8xf32> to vector<1x8x8xf32>
    %313 = vector.broadcast %293 : vector<1x1x8xf32> to vector<1x8x8xf32>
    %314 = arith.mulf %313, %312 : vector<1x8x8xf32>
    %315 = arith.addf %311, %314 : vector<1x8x8xf32>
    %c3_i32_142 = arith.constant 3 : i32
    %c0_143 = arith.constant 0 : index
    %316 = arith.index_cast %c3_i32_142 : i32 to index
    %c1_144 = arith.constant 1 : index
    %c0_145 = arith.constant 0 : index
    %317 = vector.load %arg3[%c0_143, %316, %c1_144, %c0_145] : memref<1x8x2x8xf32, #tpu.memory_space<vmem>>, vector<1x1x1x8xf32>
    %318 = vector.shape_cast %317 : vector<1x1x1x8xf32> to vector<1x1x8xf32>
    %c0_146 = arith.constant 0 : index
    %319 = arith.index_cast %c3_i32_142 : i32 to index
    %c1_147 = arith.constant 1 : index
    %c0_148 = arith.constant 0 : index
    %320 = vector.load %arg4[%c0_146, %319, %c1_147, %c0_148] : memref<1x8x2x8xf32, #tpu.memory_space<vmem>>, vector<1x1x1x8xf32>
    %321 = vector.shape_cast %320 : vector<1x1x1x8xf32> to vector<1x1x8xf32>
    %c0_149 = arith.constant 0 : index
    %322 = arith.index_cast %c3_i32_142 : i32 to index
    %c0_150 = arith.constant 0 : index
    %c0_151 = arith.constant 0 : index
    %323 = vector.load %arg5[%c0_149, %322, %c0_150, %c0_151] : memref<1x8x8x8xf32, #tpu.memory_space<vmem>>, vector<1x1x8x8xf32>
    %324 = vector.shape_cast %323 : vector<1x1x8x8xf32> to vector<8x8xf32>
    %c0_152 = arith.constant 0 : index
    %325 = arith.index_cast %c3_i32_142 : i32 to index
    %c0_153 = arith.constant 0 : index
    %c0_154 = arith.constant 0 : index
    %326 = vector.load %arg6[%c0_152, %325, %c0_153, %c0_154] : memref<1x8x8x8xf32, #tpu.memory_space<vmem>>, vector<1x1x8x8xf32>
    %327 = vector.shape_cast %326 : vector<1x1x8x8xf32> to vector<8x8xf32>
    %328 = vector.shape_cast %324 : vector<8x8xf32> to vector<1x8x8xf32>
    %329 = vector.broadcast %318 : vector<1x1x8xf32> to vector<1x8x8xf32>
    %330 = arith.mulf %329, %328 : vector<1x8x8xf32>
    %331 = arith.addf %307, %330 : vector<1x8x8xf32>
    %332 = vector.shape_cast %327 : vector<8x8xf32> to vector<1x8x8xf32>
    %333 = vector.broadcast %321 : vector<1x1x8xf32> to vector<1x8x8xf32>
    %334 = arith.mulf %333, %332 : vector<1x8x8xf32>
    %335 = arith.subf %331, %334 : vector<1x8x8xf32>
    %336 = vector.shape_cast %327 : vector<8x8xf32> to vector<1x8x8xf32>
    %337 = vector.broadcast %318 : vector<1x1x8xf32> to vector<1x8x8xf32>
    %338 = arith.mulf %337, %336 : vector<1x8x8xf32>
    %339 = arith.addf %315, %338 : vector<1x8x8xf32>
    %340 = vector.shape_cast %324 : vector<8x8xf32> to vector<1x8x8xf32>
    %341 = vector.broadcast %321 : vector<1x1x8xf32> to vector<1x8x8xf32>
    %342 = arith.mulf %341, %340 : vector<1x8x8xf32>
    %343 = arith.addf %339, %342 : vector<1x8x8xf32>
    %c4_i32_155 = arith.constant 4 : i32
    %c0_156 = arith.constant 0 : index
    %344 = arith.index_cast %c4_i32_155 : i32 to index
    %c1_157 = arith.constant 1 : index
    %c0_158 = arith.constant 0 : index
    %345 = vector.load %arg3[%c0_156, %344, %c1_157, %c0_158] : memref<1x8x2x8xf32, #tpu.memory_space<vmem>>, vector<1x1x1x8xf32>
    %346 = vector.shape_cast %345 : vector<1x1x1x8xf32> to vector<1x1x8xf32>
    %c0_159 = arith.constant 0 : index
    %347 = arith.index_cast %c4_i32_155 : i32 to index
    %c1_160 = arith.constant 1 : index
    %c0_161 = arith.constant 0 : index
    %348 = vector.load %arg4[%c0_159, %347, %c1_160, %c0_161] : memref<1x8x2x8xf32, #tpu.memory_space<vmem>>, vector<1x1x1x8xf32>
    %349 = vector.shape_cast %348 : vector<1x1x1x8xf32> to vector<1x1x8xf32>
    %c0_162 = arith.constant 0 : index
    %350 = arith.index_cast %c4_i32_155 : i32 to index
    %c0_163 = arith.constant 0 : index
    %c0_164 = arith.constant 0 : index
    %351 = vector.load %arg5[%c0_162, %350, %c0_163, %c0_164] : memref<1x8x8x8xf32, #tpu.memory_space<vmem>>, vector<1x1x8x8xf32>
    %352 = vector.shape_cast %351 : vector<1x1x8x8xf32> to vector<8x8xf32>
    %c0_165 = arith.constant 0 : index
    %353 = arith.index_cast %c4_i32_155 : i32 to index
    %c0_166 = arith.constant 0 : index
    %c0_167 = arith.constant 0 : index
    %354 = vector.load %arg6[%c0_165, %353, %c0_166, %c0_167] : memref<1x8x8x8xf32, #tpu.memory_space<vmem>>, vector<1x1x8x8xf32>
    %355 = vector.shape_cast %354 : vector<1x1x8x8xf32> to vector<8x8xf32>
    %356 = vector.shape_cast %352 : vector<8x8xf32> to vector<1x8x8xf32>
    %357 = vector.broadcast %346 : vector<1x1x8xf32> to vector<1x8x8xf32>
    %358 = arith.mulf %357, %356 : vector<1x8x8xf32>
    %359 = arith.addf %335, %358 : vector<1x8x8xf32>
    %360 = vector.shape_cast %355 : vector<8x8xf32> to vector<1x8x8xf32>
    %361 = vector.broadcast %349 : vector<1x1x8xf32> to vector<1x8x8xf32>
    %362 = arith.mulf %361, %360 : vector<1x8x8xf32>
    %363 = arith.subf %359, %362 : vector<1x8x8xf32>
    %364 = vector.shape_cast %355 : vector<8x8xf32> to vector<1x8x8xf32>
    %365 = vector.broadcast %346 : vector<1x1x8xf32> to vector<1x8x8xf32>
    %366 = arith.mulf %365, %364 : vector<1x8x8xf32>
    %367 = arith.addf %343, %366 : vector<1x8x8xf32>
    %368 = vector.shape_cast %352 : vector<8x8xf32> to vector<1x8x8xf32>
    %369 = vector.broadcast %349 : vector<1x1x8xf32> to vector<1x8x8xf32>
    %370 = arith.mulf %369, %368 : vector<1x8x8xf32>
    %371 = arith.addf %367, %370 : vector<1x8x8xf32>
    %c5_i32_168 = arith.constant 5 : i32
    %c0_169 = arith.constant 0 : index
    %372 = arith.index_cast %c5_i32_168 : i32 to index
    %c1_170 = arith.constant 1 : index
    %c0_171 = arith.constant 0 : index
    %373 = vector.load %arg3[%c0_169, %372, %c1_170, %c0_171] : memref<1x8x2x8xf32, #tpu.memory_space<vmem>>, vector<1x1x1x8xf32>
    %374 = vector.shape_cast %373 : vector<1x1x1x8xf32> to vector<1x1x8xf32>
    %c0_172 = arith.constant 0 : index
    %375 = arith.index_cast %c5_i32_168 : i32 to index
    %c1_173 = arith.constant 1 : index
    %c0_174 = arith.constant 0 : index
    %376 = vector.load %arg4[%c0_172, %375, %c1_173, %c0_174] : memref<1x8x2x8xf32, #tpu.memory_space<vmem>>, vector<1x1x1x8xf32>
    %377 = vector.shape_cast %376 : vector<1x1x1x8xf32> to vector<1x1x8xf32>
    %c0_175 = arith.constant 0 : index
    %378 = arith.index_cast %c5_i32_168 : i32 to index
    %c0_176 = arith.constant 0 : index
    %c0_177 = arith.constant 0 : index
    %379 = vector.load %arg5[%c0_175, %378, %c0_176, %c0_177] : memref<1x8x8x8xf32, #tpu.memory_space<vmem>>, vector<1x1x8x8xf32>
    %380 = vector.shape_cast %379 : vector<1x1x8x8xf32> to vector<8x8xf32>
    %c0_178 = arith.constant 0 : index
    %381 = arith.index_cast %c5_i32_168 : i32 to index
    %c0_179 = arith.constant 0 : index
    %c0_180 = arith.constant 0 : index
    %382 = vector.load %arg6[%c0_178, %381, %c0_179, %c0_180] : memref<1x8x8x8xf32, #tpu.memory_space<vmem>>, vector<1x1x8x8xf32>
    %383 = vector.shape_cast %382 : vector<1x1x8x8xf32> to vector<8x8xf32>
    %384 = vector.shape_cast %380 : vector<8x8xf32> to vector<1x8x8xf32>
    %385 = vector.broadcast %374 : vector<1x1x8xf32> to vector<1x8x8xf32>
    %386 = arith.mulf %385, %384 : vector<1x8x8xf32>
    %387 = arith.addf %363, %386 : vector<1x8x8xf32>
    %388 = vector.shape_cast %383 : vector<8x8xf32> to vector<1x8x8xf32>
    %389 = vector.broadcast %377 : vector<1x1x8xf32> to vector<1x8x8xf32>
    %390 = arith.mulf %389, %388 : vector<1x8x8xf32>
    %391 = arith.subf %387, %390 : vector<1x8x8xf32>
    %392 = vector.shape_cast %383 : vector<8x8xf32> to vector<1x8x8xf32>
    %393 = vector.broadcast %374 : vector<1x1x8xf32> to vector<1x8x8xf32>
    %394 = arith.mulf %393, %392 : vector<1x8x8xf32>
    %395 = arith.addf %371, %394 : vector<1x8x8xf32>
    %396 = vector.shape_cast %380 : vector<8x8xf32> to vector<1x8x8xf32>
    %397 = vector.broadcast %377 : vector<1x1x8xf32> to vector<1x8x8xf32>
    %398 = arith.mulf %397, %396 : vector<1x8x8xf32>
    %399 = arith.addf %395, %398 : vector<1x8x8xf32>
    %c6_i32_181 = arith.constant 6 : i32
    %c0_182 = arith.constant 0 : index
    %400 = arith.index_cast %c6_i32_181 : i32 to index
    %c1_183 = arith.constant 1 : index
    %c0_184 = arith.constant 0 : index
    %401 = vector.load %arg3[%c0_182, %400, %c1_183, %c0_184] : memref<1x8x2x8xf32, #tpu.memory_space<vmem>>, vector<1x1x1x8xf32>
    %402 = vector.shape_cast %401 : vector<1x1x1x8xf32> to vector<1x1x8xf32>
    %c0_185 = arith.constant 0 : index
    %403 = arith.index_cast %c6_i32_181 : i32 to index
    %c1_186 = arith.constant 1 : index
    %c0_187 = arith.constant 0 : index
    %404 = vector.load %arg4[%c0_185, %403, %c1_186, %c0_187] : memref<1x8x2x8xf32, #tpu.memory_space<vmem>>, vector<1x1x1x8xf32>
    %405 = vector.shape_cast %404 : vector<1x1x1x8xf32> to vector<1x1x8xf32>
    %c0_188 = arith.constant 0 : index
    %406 = arith.index_cast %c6_i32_181 : i32 to index
    %c0_189 = arith.constant 0 : index
    %c0_190 = arith.constant 0 : index
    %407 = vector.load %arg5[%c0_188, %406, %c0_189, %c0_190] : memref<1x8x8x8xf32, #tpu.memory_space<vmem>>, vector<1x1x8x8xf32>
    %408 = vector.shape_cast %407 : vector<1x1x8x8xf32> to vector<8x8xf32>
    %c0_191 = arith.constant 0 : index
    %409 = arith.index_cast %c6_i32_181 : i32 to index
    %c0_192 = arith.constant 0 : index
    %c0_193 = arith.constant 0 : index
    %410 = vector.load %arg6[%c0_191, %409, %c0_192, %c0_193] : memref<1x8x8x8xf32, #tpu.memory_space<vmem>>, vector<1x1x8x8xf32>
    %411 = vector.shape_cast %410 : vector<1x1x8x8xf32> to vector<8x8xf32>
    %412 = vector.shape_cast %408 : vector<8x8xf32> to vector<1x8x8xf32>
    %413 = vector.broadcast %402 : vector<1x1x8xf32> to vector<1x8x8xf32>
    %414 = arith.mulf %413, %412 : vector<1x8x8xf32>
    %415 = arith.addf %391, %414 : vector<1x8x8xf32>
    %416 = vector.shape_cast %411 : vector<8x8xf32> to vector<1x8x8xf32>
    %417 = vector.broadcast %405 : vector<1x1x8xf32> to vector<1x8x8xf32>
    %418 = arith.mulf %417, %416 : vector<1x8x8xf32>
    %419 = arith.subf %415, %418 : vector<1x8x8xf32>
    %420 = vector.shape_cast %411 : vector<8x8xf32> to vector<1x8x8xf32>
    %421 = vector.broadcast %402 : vector<1x1x8xf32> to vector<1x8x8xf32>
    %422 = arith.mulf %421, %420 : vector<1x8x8xf32>
    %423 = arith.addf %399, %422 : vector<1x8x8xf32>
    %424 = vector.shape_cast %408 : vector<8x8xf32> to vector<1x8x8xf32>
    %425 = vector.broadcast %405 : vector<1x1x8xf32> to vector<1x8x8xf32>
    %426 = arith.mulf %425, %424 : vector<1x8x8xf32>
    %427 = arith.addf %423, %426 : vector<1x8x8xf32>
    %c7_i32_194 = arith.constant 7 : i32
    %c0_195 = arith.constant 0 : index
    %428 = arith.index_cast %c7_i32_194 : i32 to index
    %c1_196 = arith.constant 1 : index
    %c0_197 = arith.constant 0 : index
    %429 = vector.load %arg3[%c0_195, %428, %c1_196, %c0_197] : memref<1x8x2x8xf32, #tpu.memory_space<vmem>>, vector<1x1x1x8xf32>
    %430 = vector.shape_cast %429 : vector<1x1x1x8xf32> to vector<1x1x8xf32>
    %c0_198 = arith.constant 0 : index
    %431 = arith.index_cast %c7_i32_194 : i32 to index
    %c1_199 = arith.constant 1 : index
    %c0_200 = arith.constant 0 : index
    %432 = vector.load %arg4[%c0_198, %431, %c1_199, %c0_200] : memref<1x8x2x8xf32, #tpu.memory_space<vmem>>, vector<1x1x1x8xf32>
    %433 = vector.shape_cast %432 : vector<1x1x1x8xf32> to vector<1x1x8xf32>
    %c0_201 = arith.constant 0 : index
    %434 = arith.index_cast %c7_i32_194 : i32 to index
    %c0_202 = arith.constant 0 : index
    %c0_203 = arith.constant 0 : index
    %435 = vector.load %arg5[%c0_201, %434, %c0_202, %c0_203] : memref<1x8x8x8xf32, #tpu.memory_space<vmem>>, vector<1x1x8x8xf32>
    %436 = vector.shape_cast %435 : vector<1x1x8x8xf32> to vector<8x8xf32>
    %c0_204 = arith.constant 0 : index
    %437 = arith.index_cast %c7_i32_194 : i32 to index
    %c0_205 = arith.constant 0 : index
    %c0_206 = arith.constant 0 : index
    %438 = vector.load %arg6[%c0_204, %437, %c0_205, %c0_206] : memref<1x8x8x8xf32, #tpu.memory_space<vmem>>, vector<1x1x8x8xf32>
    %439 = vector.shape_cast %438 : vector<1x1x8x8xf32> to vector<8x8xf32>
    %440 = vector.shape_cast %436 : vector<8x8xf32> to vector<1x8x8xf32>
    %441 = vector.broadcast %430 : vector<1x1x8xf32> to vector<1x8x8xf32>
    %442 = arith.mulf %441, %440 : vector<1x8x8xf32>
    %443 = arith.addf %419, %442 : vector<1x8x8xf32>
    %444 = vector.shape_cast %439 : vector<8x8xf32> to vector<1x8x8xf32>
    %445 = vector.broadcast %433 : vector<1x1x8xf32> to vector<1x8x8xf32>
    %446 = arith.mulf %445, %444 : vector<1x8x8xf32>
    %447 = arith.subf %443, %446 : vector<1x8x8xf32>
    %448 = vector.shape_cast %439 : vector<8x8xf32> to vector<1x8x8xf32>
    %449 = vector.broadcast %430 : vector<1x1x8xf32> to vector<1x8x8xf32>
    %450 = arith.mulf %449, %448 : vector<1x8x8xf32>
    %451 = arith.addf %427, %450 : vector<1x8x8xf32>
    %452 = vector.shape_cast %436 : vector<8x8xf32> to vector<1x8x8xf32>
    %453 = vector.broadcast %433 : vector<1x1x8xf32> to vector<1x8x8xf32>
    %454 = arith.mulf %453, %452 : vector<1x8x8xf32>
    %455 = arith.addf %451, %454 : vector<1x8x8xf32>
    %c8_i32_207 = arith.constant 8 : i32
    %c0_208 = arith.constant 0 : index
    %c1_209 = arith.constant 1 : index
    %c0_210 = arith.constant 0 : index
    %c0_211 = arith.constant 0 : index
    %456 = vector.load %arg7[%c0_208, %c1_209, %c0_210, %c0_211] : memref<1x2x8x8xf32, #tpu.memory_space<vmem>>, vector<1x1x8x8xf32>
    %457 = vector.shape_cast %456 : vector<1x1x8x8xf32> to vector<1x8x8xf32>
    %458 = vector.shape_cast %447 : vector<1x8x8xf32> to vector<1x1x8x8xf32>
    tpu.vector_store %arg7[%c0_208, %c1_209, %c0_210, %c0_211], %458 {strides = array<i32>} : memref<1x2x8x8xf32, #tpu.memory_space<vmem>>, vector<1x1x8x8xf32>,
    %c0_212 = arith.constant 0 : index
    %c1_213 = arith.constant 1 : index
    %c0_214 = arith.constant 0 : index
    %c0_215 = arith.constant 0 : index
    %459 = vector.load %arg8[%c0_212, %c1_213, %c0_214, %c0_215] : memref<1x2x8x8xf32, #tpu.memory_space<vmem>>, vector<1x1x8x8xf32>
    %460 = vector.shape_cast %459 : vector<1x1x8x8xf32> to vector<1x8x8xf32>
    %461 = vector.shape_cast %455 : vector<1x8x8xf32> to vector<1x1x8x8xf32>
    tpu.vector_store %arg8[%c0_212, %c1_213, %c0_214, %c0_215], %461 {strides = array<i32>} : memref<1x2x8x8xf32, #tpu.memory_space<vmem>>, vector<1x1x8x8xf32>,
    return
  }
  func.func @transform_0(%arg0: i32, %arg1: i32, %arg2: i32) -> (i32, i32, i32, i32) {
    %c0_i32 = arith.constant 0 : i32
    %c0_i32_0 = arith.constant 0 : i32
    %c0_i32_1 = arith.constant 0 : i32
    return %arg0, %c0_i32, %c0_i32_0, %arg2 : i32, i32, i32, i32
  }
  func.func @transform_1(%arg0: i32, %arg1: i32, %arg2: i32) -> (i32, i32, i32, i32) {
    %c0_i32 = arith.constant 0 : i32
    %c0_i32_0 = arith.constant 0 : i32
    %c0_i32_1 = arith.constant 0 : i32
    return %arg0, %c0_i32, %c0_i32_0, %arg2 : i32, i32, i32, i32
  }
  func.func @transform_2(%arg0: i32, %arg1: i32, %arg2: i32) -> (i32, i32, i32, i32) {
    %c0_i32 = arith.constant 0 : i32
    %c0_i32_0 = arith.constant 0 : i32
    return %arg0, %c0_i32, %arg1, %arg2 : i32, i32, i32, i32
  }
  func.func @transform_3(%arg0: i32, %arg1: i32, %arg2: i32) -> (i32, i32, i32, i32) {
    %c0_i32 = arith.constant 0 : i32
    %c0_i32_0 = arith.constant 0 : i32
    return %arg0, %c0_i32, %arg1, %arg2 : i32, i32, i32, i32
  }
  func.func @transform_4(%arg0: i32, %arg1: i32, %arg2: i32) -> (i32, i32, i32, i32) {
    %c0_i32 = arith.constant 0 : i32
    %c0_i32_0 = arith.constant 0 : i32
    return %arg0, %c0_i32, %arg1, %arg2 : i32, i32, i32, i32
  }
  func.func @transform_5(%arg0: i32, %arg1: i32, %arg2: i32) -> (i32, i32, i32, i32) {
    %c0_i32 = arith.constant 0 : i32
    %c0_i32_0 = arith.constant 0 : i32
    return %arg0, %c0_i32, %arg1, %arg2 : i32, i32, i32, i32
  }
}

module attributes {stable_mosaic.version = 11 : i64} {
  func.func @kernel(%arg0: i32, %arg1: i32, %arg2: memref<1x8x512xf32, #tpu.memory_space<vmem>>, %arg3: memref<8x8xf32, #tpu.memory_space<vmem>>, %arg4: memref<8x1xf32, #tpu.memory_space<vmem>>, %arg5: memref<1x8x512xf32, #tpu.memory_space<vmem>>, %arg6: memref<1x8x512xf32, #tpu.memory_space<vmem>>, %arg7: memref<1x8x512xf32, #tpu.memory_space<vmem>>, %arg8: memref<1x1x128xf32, #tpu.memory_space<vmem>>, %arg9: memref<1x1x128xf32, #tpu.memory_space<vmem>>, %arg10: memref<1x1xf32, #tpu.memory_space<vmem>>, %arg11: memref<1x1xf32, #tpu.memory_space<vmem>>) attributes {dimension_semantics = [#tpu.dimension_semantics<parallel>, #tpu.dimension_semantics<arbitrary>], iteration_bounds = array<i64: 2, 1>, scalar_prefetch = 0 : i64, scratch_operands = 2 : i64, tpu.core_type = #tpu.core_type<tc>, window_params = [{transform_indices = @transform_0, window_bounds = array<i64: 1, 8, 512>}, {pipeline_mode = #tpu.pipeline_mode<synchronous>, transform_indices = @transform_1, window_bounds = array<i64: 8, 8>}, {pipeline_mode = #tpu.pipeline_mode<synchronous>, transform_indices = @transform_2, window_bounds = array<i64: 8, 1>}, {transform_indices = @transform_3, window_bounds = array<i64: 1, 8, 512>}, {transform_indices = @transform_4, window_bounds = array<i64: 1, 8, 512>}, {transform_indices = @transform_5, window_bounds = array<i64: 1, 8, 512>}, {transform_indices = @transform_6, window_bounds = array<i64: 1, 1, 128>}, {transform_indices = @transform_7, window_bounds = array<i64: 1, 1, 128>}]} {
    %c0_i32 = arith.constant 0 : i32
    %0 = arith.cmpi eq, %arg1, %c0_i32 : i32
    %1 = arith.extui %0 : i1 to i32
    %c0_i32_0 = arith.constant 0 : i32
    %2 = arith.cmpi ne, %1, %c0_i32_0 : i32
    scf.if %2 {
      %cst_32 = arith.constant 0.000000e+00 : f32
      %52 = vector.broadcast %cst_32 : f32 to vector<1x1xf32>
      %c0_33 = arith.constant 0 : index
      %c0_34 = arith.constant 0 : index
      %53 = vector.load %arg10[%c0_33, %c0_34] : memref<1x1xf32, #tpu.memory_space<vmem>>, vector<1x1xf32>
      tpu.vector_store %arg10[%c0_33, %c0_34], %52 {strides = array<i32>} : memref<1x1xf32, #tpu.memory_space<vmem>>, vector<1x1xf32>,
      %cst_35 = arith.constant 0.000000e+00 : f32
      %54 = vector.broadcast %cst_35 : f32 to vector<1x1xf32>
      %c0_36 = arith.constant 0 : index
      %c0_37 = arith.constant 0 : index
      %55 = vector.load %arg11[%c0_36, %c0_37] : memref<1x1xf32, #tpu.memory_space<vmem>>, vector<1x1xf32>
      tpu.vector_store %arg11[%c0_36, %c0_37], %54 {strides = array<i32>} : memref<1x1xf32, #tpu.memory_space<vmem>>, vector<1x1xf32>,
    } else {
    }
    %c0 = arith.constant 0 : index
    %c0_1 = arith.constant 0 : index
    %3 = vector.load %arg3[%c0, %c0_1] : memref<8x8xf32, #tpu.memory_space<vmem>>, vector<8x8xf32>
    %c0_2 = arith.constant 0 : index
    %c0_3 = arith.constant 0 : index
    %c0_4 = arith.constant 0 : index
    %4 = vector.load %arg2[%c0_2, %c0_3, %c0_4] : memref<1x8x512xf32, #tpu.memory_space<vmem>>, vector<1x8x512xf32>
    %5 = vector.shape_cast %4 : vector<1x8x512xf32> to vector<8x512xf32>
    %cst = arith.constant dense<0.000000e+00> : vector<8x512xf32>
    %6 = tpu.matmul %3, %5, %cst {dimension_numbers = #tpu.dot_dimension_numbers<[1], [0], [0], [1], [0, 0, 1, 1], [], []>} : vector<8x8xf32>, vector<8x512xf32>, vector<8x512xf32> -> vector<8x512xf32>
    %c0_5 = arith.constant 0 : index
    %c0_6 = arith.constant 0 : index
    %7 = vector.load %arg4[%c0_5, %c0_6] : memref<8x1xf32, #tpu.memory_space<vmem>>, vector<8x1xf32>
    %8 = vector.broadcast %7 : vector<8x1xf32> to vector<8x512xf32>
    %9 = arith.addf %6, %8 : vector<8x512xf32>
    %c0_7 = arith.constant 0 : index
    %c0_8 = arith.constant 0 : index
    %c0_9 = arith.constant 0 : index
    %10 = vector.load %arg5[%c0_7, %c0_8, %c0_9] : memref<1x8x512xf32, #tpu.memory_space<vmem>>, vector<1x8x512xf32>
    %11 = vector.shape_cast %10 : vector<1x8x512xf32> to vector<8x512xf32>
    %12 = arith.addf %9, %11 : vector<8x512xf32>
    %c0_10 = arith.constant 0 : index
    %c0_11 = arith.constant 0 : index
    %c0_12 = arith.constant 0 : index
    %13 = vector.load %arg6[%c0_10, %c0_11, %c0_12] : memref<1x8x512xf32, #tpu.memory_space<vmem>>, vector<1x8x512xf32>
    %14 = vector.shape_cast %13 : vector<1x8x512xf32> to vector<8x512xf32>
    %15 = arith.addf %12, %14 : vector<8x512xf32>
    %cst_13 = arith.constant 5.000000e-01 : f32
    %16 = vector.broadcast %cst_13 : f32 to vector<8x512xf32>
    %17 = arith.mulf %16, %15 : vector<8x512xf32>
    %cst_14 = arith.constant 4.471500e-02 : f32
    %18 = vector.broadcast %cst_14 : f32 to vector<8x512xf32>
    %19 = arith.mulf %18, %15 : vector<8x512xf32>
    %20 = arith.mulf %19, %15 : vector<8x512xf32>
    %21 = arith.mulf %20, %15 : vector<8x512xf32>
    %22 = arith.addf %15, %21 : vector<8x512xf32>
    %cst_15 = arith.constant 0.797884583 : f32
    %23 = vector.broadcast %cst_15 : f32 to vector<8x512xf32>
    %24 = arith.mulf %23, %22 : vector<8x512xf32>
    %25 = math.tanh %24 : vector<8x512xf32>
    %cst_16 = arith.constant 1.000000e+00 : f32
    %26 = vector.broadcast %cst_16 : f32 to vector<8x512xf32>
    %27 = arith.addf %26, %25 : vector<8x512xf32>
    %28 = arith.mulf %17, %27 : vector<8x512xf32>
    %c0_17 = arith.constant 0 : index
    %c0_18 = arith.constant 0 : index
    %c0_19 = arith.constant 0 : index
    %29 = vector.load %arg7[%c0_17, %c0_18, %c0_19] : memref<1x8x512xf32, #tpu.memory_space<vmem>>, vector<1x8x512xf32>
    %30 = vector.shape_cast %29 : vector<1x8x512xf32> to vector<8x512xf32>
    %31 = vector.shape_cast %28 : vector<8x512xf32> to vector<1x8x512xf32>
    tpu.vector_store %arg7[%c0_17, %c0_18, %c0_19], %31 {strides = array<i32>} : memref<1x8x512xf32, #tpu.memory_space<vmem>>, vector<1x8x512xf32>,
    %c0_20 = arith.constant 0 : index
    %c0_21 = arith.constant 0 : index
    %32 = vector.load %arg10[%c0_20, %c0_21] : memref<1x1xf32, #tpu.memory_space<vmem>>, vector<1x1xf32>
    %33 = vector.shape_cast %28 : vector<8x512xf32> to vector<1x8x512xf32>
    %cst_22 = arith.constant dense<0.000000e+00> : vector<1xf32>
    %34 = vector.multi_reduction <add>, %33, %cst_22 [1, 2] : vector<1x8x512xf32> to vector<1xf32>
    %35 = vector.shape_cast %34 : vector<1xf32> to vector<1x1x1xf32>
    %36 = vector.extract %35[0, 0, 0] : f32 from vector<1x1x1xf32>
    %37 = vector.broadcast %36 : f32 to vector<1x1xf32>
    %38 = arith.addf %32, %37 : vector<1x1xf32>
    %c0_23 = arith.constant 0 : index
    %c0_24 = arith.constant 0 : index
    %39 = vector.load %arg10[%c0_23, %c0_24] : memref<1x1xf32, #tpu.memory_space<vmem>>, vector<1x1xf32>
    tpu.vector_store %arg10[%c0_23, %c0_24], %38 {strides = array<i32>} : memref<1x1xf32, #tpu.memory_space<vmem>>, vector<1x1xf32>,
    %c0_25 = arith.constant 0 : index
    %c0_26 = arith.constant 0 : index
    %40 = vector.load %arg11[%c0_25, %c0_26] : memref<1x1xf32, #tpu.memory_space<vmem>>, vector<1x1xf32>
    %41 = arith.mulf %28, %28 : vector<8x512xf32>
    %42 = vector.shape_cast %41 : vector<8x512xf32> to vector<1x8x512xf32>
    %cst_27 = arith.constant dense<0.000000e+00> : vector<1xf32>
    %43 = vector.multi_reduction <add>, %42, %cst_27 [1, 2] : vector<1x8x512xf32> to vector<1xf32>
    %44 = vector.shape_cast %43 : vector<1xf32> to vector<1x1x1xf32>
    %45 = vector.extract %44[0, 0, 0] : f32 from vector<1x1x1xf32>
    %46 = vector.broadcast %45 : f32 to vector<1x1xf32>
    %47 = arith.addf %40, %46 : vector<1x1xf32>
    %c0_28 = arith.constant 0 : index
    %c0_29 = arith.constant 0 : index
    %48 = vector.load %arg11[%c0_28, %c0_29] : memref<1x1xf32, #tpu.memory_space<vmem>>, vector<1x1xf32>
    tpu.vector_store %arg11[%c0_28, %c0_29], %47 {strides = array<i32>} : memref<1x1xf32, #tpu.memory_space<vmem>>, vector<1x1xf32>,
    %c0_i32_30 = arith.constant 0 : i32
    %49 = arith.cmpi eq, %arg1, %c0_i32_30 : i32
    %50 = arith.extui %49 : i1 to i32
    %c0_i32_31 = arith.constant 0 : i32
    %51 = arith.cmpi ne, %50, %c0_i32_31 : i32
    scf.if %51 {
      %c0_32 = arith.constant 0 : index
      %c0_33 = arith.constant 0 : index
      %52 = vector.load %arg10[%c0_32, %c0_33] : memref<1x1xf32, #tpu.memory_space<vmem>>, vector<1x1xf32>
      %53 = vector.extract %52[0, 0] : f32 from vector<1x1xf32>
      %cst_34 = arith.constant 2.44140625E-4 : f32
      %54 = arith.mulf %53, %cst_34 : f32
      %c0_35 = arith.constant 0 : index
      %c0_36 = arith.constant 0 : index
      %55 = vector.load %arg11[%c0_35, %c0_36] : memref<1x1xf32, #tpu.memory_space<vmem>>, vector<1x1xf32>
      %56 = vector.extract %55[0, 0] : f32 from vector<1x1xf32>
      %cst_37 = arith.constant 2.44140625E-4 : f32
      %57 = arith.mulf %56, %cst_37 : f32
      %58 = arith.mulf %54, %54 : f32
      %59 = arith.subf %57, %58 : f32
      %cst_38 = arith.constant 0.000000e+00 : f32
      %60 = arith.maximumf %59, %cst_38 : f32
      %cst_39 = arith.constant 9.99999974E-6 : f32
      %61 = arith.addf %60, %cst_39 : f32
      %62 = math.rsqrt %61 : f32
      %63 = vector.broadcast %54 : f32 to vector<1x1x128xf32>
      %c0_40 = arith.constant 0 : index
      %c0_41 = arith.constant 0 : index
      %c0_42 = arith.constant 0 : index
      %64 = vector.load %arg8[%c0_40, %c0_41, %c0_42] : memref<1x1x128xf32, #tpu.memory_space<vmem>>, vector<1x1x128xf32>
      tpu.vector_store %arg8[%c0_40, %c0_41, %c0_42], %63 {strides = array<i32>} : memref<1x1x128xf32, #tpu.memory_space<vmem>>, vector<1x1x128xf32>,
      %65 = vector.broadcast %62 : f32 to vector<1x1x128xf32>
      %c0_43 = arith.constant 0 : index
      %c0_44 = arith.constant 0 : index
      %c0_45 = arith.constant 0 : index
      %66 = vector.load %arg9[%c0_43, %c0_44, %c0_45] : memref<1x1x128xf32, #tpu.memory_space<vmem>>, vector<1x1x128xf32>
      tpu.vector_store %arg9[%c0_43, %c0_44, %c0_45], %65 {strides = array<i32>} : memref<1x1x128xf32, #tpu.memory_space<vmem>>, vector<1x1x128xf32>,
    } else {
    }
    return
  }
  func.func @transform_0(%arg0: i32, %arg1: i32) -> (i32, i32, i32) {
    %c0_i32 = arith.constant 0 : i32
    %c0_i32_0 = arith.constant 0 : i32
    return %arg0, %c0_i32, %arg1 : i32, i32, i32
  }
  func.func @transform_1(%arg0: i32, %arg1: i32) -> (i32, i32) {
    %c0_i32 = arith.constant 0 : i32
    %c0_i32_0 = arith.constant 0 : i32
    %c0_i32_1 = arith.constant 0 : i32
    return %c0_i32, %c0_i32_0 : i32, i32
  }
  func.func @transform_2(%arg0: i32, %arg1: i32) -> (i32, i32) {
    %c0_i32 = arith.constant 0 : i32
    %c0_i32_0 = arith.constant 0 : i32
    %c0_i32_1 = arith.constant 0 : i32
    return %c0_i32, %c0_i32_0 : i32, i32
  }
  func.func @transform_3(%arg0: i32, %arg1: i32) -> (i32, i32, i32) {
    %c0_i32 = arith.constant 0 : i32
    %c0_i32_0 = arith.constant 0 : i32
    return %arg0, %c0_i32, %arg1 : i32, i32, i32
  }
  func.func @transform_4(%arg0: i32, %arg1: i32) -> (i32, i32, i32) {
    %c0_i32 = arith.constant 0 : i32
    %c0_i32_0 = arith.constant 0 : i32
    return %arg0, %c0_i32, %arg1 : i32, i32, i32
  }
  func.func @transform_5(%arg0: i32, %arg1: i32) -> (i32, i32, i32) {
    %c0_i32 = arith.constant 0 : i32
    %c0_i32_0 = arith.constant 0 : i32
    return %arg0, %c0_i32, %arg1 : i32, i32, i32
  }
  func.func @transform_6(%arg0: i32, %arg1: i32) -> (i32, i32, i32) {
    %c0_i32 = arith.constant 0 : i32
    %c0_i32_0 = arith.constant 0 : i32
    %c0_i32_1 = arith.constant 0 : i32
    return %arg0, %c0_i32, %c0_i32_0 : i32, i32, i32
  }
  func.func @transform_7(%arg0: i32, %arg1: i32) -> (i32, i32, i32) {
    %c0_i32 = arith.constant 0 : i32
    %c0_i32_0 = arith.constant 0 : i32
    %c0_i32_1 = arith.constant 0 : i32
    return %arg0, %c0_i32, %c0_i32_0 : i32, i32, i32
  }
}

module attributes {stable_mosaic.version = 11 : i64} {
  func.func @_spectral_mul_kernel(%arg0: i32, %arg1: i32, %arg2: i32, %arg3: memref<1x8x2x27xf32, #tpu.memory_space<vmem>>, %arg4: memref<1x8x2x27xf32, #tpu.memory_space<vmem>>, %arg5: memref<1x8x8x27xf32, #tpu.memory_space<vmem>>, %arg6: memref<1x8x8x27xf32, #tpu.memory_space<vmem>>, %arg7: memref<1x2x8x27xf32, #tpu.memory_space<vmem>>, %arg8: memref<1x2x8x27xf32, #tpu.memory_space<vmem>>) attributes {dimension_semantics = [#tpu.dimension_semantics<parallel>, #tpu.dimension_semantics<parallel>, #tpu.dimension_semantics<parallel>], iteration_bounds = array<i64: 4, 1, 1>, scalar_prefetch = 0 : i64, scratch_operands = 0 : i64, tpu.core_type = #tpu.core_type<tc>, window_params = [{transform_indices = @transform_0, window_bounds = array<i64: 1, 8, 2, 27>}, {transform_indices = @transform_1, window_bounds = array<i64: 1, 8, 2, 27>}, {transform_indices = @transform_2, window_bounds = array<i64: 1, 8, 8, 27>}, {transform_indices = @transform_3, window_bounds = array<i64: 1, 8, 8, 27>}, {transform_indices = @transform_4, window_bounds = array<i64: 1, 2, 8, 27>}, {transform_indices = @transform_5, window_bounds = array<i64: 1, 2, 8, 27>}]} {
    %cst = arith.constant 0.000000e+00 : f32
    %0 = vector.broadcast %cst : f32 to vector<1x8x27xf32>
    %c0_i32 = arith.constant 0 : i32
    %c0 = arith.constant 0 : index
    %1 = arith.index_cast %c0_i32 : i32 to index
    %c0_0 = arith.constant 0 : index
    %c0_1 = arith.constant 0 : index
    %2 = vector.load %arg3[%c0, %1, %c0_0, %c0_1] : memref<1x8x2x27xf32, #tpu.memory_space<vmem>>, vector<1x1x1x27xf32>
    %3 = vector.shape_cast %2 : vector<1x1x1x27xf32> to vector<1x1x27xf32>
    %c0_2 = arith.constant 0 : index
    %4 = arith.index_cast %c0_i32 : i32 to index
    %c0_3 = arith.constant 0 : index
    %c0_4 = arith.constant 0 : index
    %5 = vector.load %arg4[%c0_2, %4, %c0_3, %c0_4] : memref<1x8x2x27xf32, #tpu.memory_space<vmem>>, vector<1x1x1x27xf32>
    %6 = vector.shape_cast %5 : vector<1x1x1x27xf32> to vector<1x1x27xf32>
    %c0_5 = arith.constant 0 : index
    %7 = arith.index_cast %c0_i32 : i32 to index
    %c0_6 = arith.constant 0 : index
    %c0_7 = arith.constant 0 : index
    %8 = vector.load %arg5[%c0_5, %7, %c0_6, %c0_7] : memref<1x8x8x27xf32, #tpu.memory_space<vmem>>, vector<1x1x8x27xf32>
    %9 = vector.shape_cast %8 : vector<1x1x8x27xf32> to vector<8x27xf32>
    %c0_8 = arith.constant 0 : index
    %10 = arith.index_cast %c0_i32 : i32 to index
    %c0_9 = arith.constant 0 : index
    %c0_10 = arith.constant 0 : index
    %11 = vector.load %arg6[%c0_8, %10, %c0_9, %c0_10] : memref<1x8x8x27xf32, #tpu.memory_space<vmem>>, vector<1x1x8x27xf32>
    %12 = vector.shape_cast %11 : vector<1x1x8x27xf32> to vector<8x27xf32>
    %13 = vector.shape_cast %9 : vector<8x27xf32> to vector<1x8x27xf32>
    %14 = vector.broadcast %3 : vector<1x1x27xf32> to vector<1x8x27xf32>
    %15 = arith.mulf %14, %13 : vector<1x8x27xf32>
    %16 = arith.addf %0, %15 : vector<1x8x27xf32>
    %17 = vector.shape_cast %12 : vector<8x27xf32> to vector<1x8x27xf32>
    %18 = vector.broadcast %6 : vector<1x1x27xf32> to vector<1x8x27xf32>
    %19 = arith.mulf %18, %17 : vector<1x8x27xf32>
    %20 = arith.subf %16, %19 : vector<1x8x27xf32>
    %21 = vector.shape_cast %12 : vector<8x27xf32> to vector<1x8x27xf32>
    %22 = vector.broadcast %3 : vector<1x1x27xf32> to vector<1x8x27xf32>
    %23 = arith.mulf %22, %21 : vector<1x8x27xf32>
    %24 = arith.addf %0, %23 : vector<1x8x27xf32>
    %25 = vector.shape_cast %9 : vector<8x27xf32> to vector<1x8x27xf32>
    %26 = vector.broadcast %6 : vector<1x1x27xf32> to vector<1x8x27xf32>
    %27 = arith.mulf %26, %25 : vector<1x8x27xf32>
    %28 = arith.addf %24, %27 : vector<1x8x27xf32>
    %c1_i32 = arith.constant 1 : i32
    %c0_11 = arith.constant 0 : index
    %29 = arith.index_cast %c1_i32 : i32 to index
    %c0_12 = arith.constant 0 : index
    %c0_13 = arith.constant 0 : index
    %30 = vector.load %arg3[%c0_11, %29, %c0_12, %c0_13] : memref<1x8x2x27xf32, #tpu.memory_space<vmem>>, vector<1x1x1x27xf32>
    %31 = vector.shape_cast %30 : vector<1x1x1x27xf32> to vector<1x1x27xf32>
    %c0_14 = arith.constant 0 : index
    %32 = arith.index_cast %c1_i32 : i32 to index
    %c0_15 = arith.constant 0 : index
    %c0_16 = arith.constant 0 : index
    %33 = vector.load %arg4[%c0_14, %32, %c0_15, %c0_16] : memref<1x8x2x27xf32, #tpu.memory_space<vmem>>, vector<1x1x1x27xf32>
    %34 = vector.shape_cast %33 : vector<1x1x1x27xf32> to vector<1x1x27xf32>
    %c0_17 = arith.constant 0 : index
    %35 = arith.index_cast %c1_i32 : i32 to index
    %c0_18 = arith.constant 0 : index
    %c0_19 = arith.constant 0 : index
    %36 = vector.load %arg5[%c0_17, %35, %c0_18, %c0_19] : memref<1x8x8x27xf32, #tpu.memory_space<vmem>>, vector<1x1x8x27xf32>
    %37 = vector.shape_cast %36 : vector<1x1x8x27xf32> to vector<8x27xf32>
    %c0_20 = arith.constant 0 : index
    %38 = arith.index_cast %c1_i32 : i32 to index
    %c0_21 = arith.constant 0 : index
    %c0_22 = arith.constant 0 : index
    %39 = vector.load %arg6[%c0_20, %38, %c0_21, %c0_22] : memref<1x8x8x27xf32, #tpu.memory_space<vmem>>, vector<1x1x8x27xf32>
    %40 = vector.shape_cast %39 : vector<1x1x8x27xf32> to vector<8x27xf32>
    %41 = vector.shape_cast %37 : vector<8x27xf32> to vector<1x8x27xf32>
    %42 = vector.broadcast %31 : vector<1x1x27xf32> to vector<1x8x27xf32>
    %43 = arith.mulf %42, %41 : vector<1x8x27xf32>
    %44 = arith.addf %20, %43 : vector<1x8x27xf32>
    %45 = vector.shape_cast %40 : vector<8x27xf32> to vector<1x8x27xf32>
    %46 = vector.broadcast %34 : vector<1x1x27xf32> to vector<1x8x27xf32>
    %47 = arith.mulf %46, %45 : vector<1x8x27xf32>
    %48 = arith.subf %44, %47 : vector<1x8x27xf32>
    %49 = vector.shape_cast %40 : vector<8x27xf32> to vector<1x8x27xf32>
    %50 = vector.broadcast %31 : vector<1x1x27xf32> to vector<1x8x27xf32>
    %51 = arith.mulf %50, %49 : vector<1x8x27xf32>
    %52 = arith.addf %28, %51 : vector<1x8x27xf32>
    %53 = vector.shape_cast %37 : vector<8x27xf32> to vector<1x8x27xf32>
    %54 = vector.broadcast %34 : vector<1x1x27xf32> to vector<1x8x27xf32>
    %55 = arith.mulf %54, %53 : vector<1x8x27xf32>
    %56 = arith.addf %52, %55 : vector<1x8x27xf32>
    %c2_i32 = arith.constant 2 : i32
    %c0_23 = arith.constant 0 : index
    %57 = arith.index_cast %c2_i32 : i32 to index
    %c0_24 = arith.constant 0 : index
    %c0_25 = arith.constant 0 : index
    %58 = vector.load %arg3[%c0_23, %57, %c0_24, %c0_25] : memref<1x8x2x27xf32, #tpu.memory_space<vmem>>, vector<1x1x1x27xf32>
    %59 = vector.shape_cast %58 : vector<1x1x1x27xf32> to vector<1x1x27xf32>
    %c0_26 = arith.constant 0 : index
    %60 = arith.index_cast %c2_i32 : i32 to index
    %c0_27 = arith.constant 0 : index
    %c0_28 = arith.constant 0 : index
    %61 = vector.load %arg4[%c0_26, %60, %c0_27, %c0_28] : memref<1x8x2x27xf32, #tpu.memory_space<vmem>>, vector<1x1x1x27xf32>
    %62 = vector.shape_cast %61 : vector<1x1x1x27xf32> to vector<1x1x27xf32>
    %c0_29 = arith.constant 0 : index
    %63 = arith.index_cast %c2_i32 : i32 to index
    %c0_30 = arith.constant 0 : index
    %c0_31 = arith.constant 0 : index
    %64 = vector.load %arg5[%c0_29, %63, %c0_30, %c0_31] : memref<1x8x8x27xf32, #tpu.memory_space<vmem>>, vector<1x1x8x27xf32>
    %65 = vector.shape_cast %64 : vector<1x1x8x27xf32> to vector<8x27xf32>
    %c0_32 = arith.constant 0 : index
    %66 = arith.index_cast %c2_i32 : i32 to index
    %c0_33 = arith.constant 0 : index
    %c0_34 = arith.constant 0 : index
    %67 = vector.load %arg6[%c0_32, %66, %c0_33, %c0_34] : memref<1x8x8x27xf32, #tpu.memory_space<vmem>>, vector<1x1x8x27xf32>
    %68 = vector.shape_cast %67 : vector<1x1x8x27xf32> to vector<8x27xf32>
    %69 = vector.shape_cast %65 : vector<8x27xf32> to vector<1x8x27xf32>
    %70 = vector.broadcast %59 : vector<1x1x27xf32> to vector<1x8x27xf32>
    %71 = arith.mulf %70, %69 : vector<1x8x27xf32>
    %72 = arith.addf %48, %71 : vector<1x8x27xf32>
    %73 = vector.shape_cast %68 : vector<8x27xf32> to vector<1x8x27xf32>
    %74 = vector.broadcast %62 : vector<1x1x27xf32> to vector<1x8x27xf32>
    %75 = arith.mulf %74, %73 : vector<1x8x27xf32>
    %76 = arith.subf %72, %75 : vector<1x8x27xf32>
    %77 = vector.shape_cast %68 : vector<8x27xf32> to vector<1x8x27xf32>
    %78 = vector.broadcast %59 : vector<1x1x27xf32> to vector<1x8x27xf32>
    %79 = arith.mulf %78, %77 : vector<1x8x27xf32>
    %80 = arith.addf %56, %79 : vector<1x8x27xf32>
    %81 = vector.shape_cast %65 : vector<8x27xf32> to vector<1x8x27xf32>
    %82 = vector.broadcast %62 : vector<1x1x27xf32> to vector<1x8x27xf32>
    %83 = arith.mulf %82, %81 : vector<1x8x27xf32>
    %84 = arith.addf %80, %83 : vector<1x8x27xf32>
    %c3_i32 = arith.constant 3 : i32
    %c0_35 = arith.constant 0 : index
    %85 = arith.index_cast %c3_i32 : i32 to index
    %c0_36 = arith.constant 0 : index
    %c0_37 = arith.constant 0 : index
    %86 = vector.load %arg3[%c0_35, %85, %c0_36, %c0_37] : memref<1x8x2x27xf32, #tpu.memory_space<vmem>>, vector<1x1x1x27xf32>
    %87 = vector.shape_cast %86 : vector<1x1x1x27xf32> to vector<1x1x27xf32>
    %c0_38 = arith.constant 0 : index
    %88 = arith.index_cast %c3_i32 : i32 to index
    %c0_39 = arith.constant 0 : index
    %c0_40 = arith.constant 0 : index
    %89 = vector.load %arg4[%c0_38, %88, %c0_39, %c0_40] : memref<1x8x2x27xf32, #tpu.memory_space<vmem>>, vector<1x1x1x27xf32>
    %90 = vector.shape_cast %89 : vector<1x1x1x27xf32> to vector<1x1x27xf32>
    %c0_41 = arith.constant 0 : index
    %91 = arith.index_cast %c3_i32 : i32 to index
    %c0_42 = arith.constant 0 : index
    %c0_43 = arith.constant 0 : index
    %92 = vector.load %arg5[%c0_41, %91, %c0_42, %c0_43] : memref<1x8x8x27xf32, #tpu.memory_space<vmem>>, vector<1x1x8x27xf32>
    %93 = vector.shape_cast %92 : vector<1x1x8x27xf32> to vector<8x27xf32>
    %c0_44 = arith.constant 0 : index
    %94 = arith.index_cast %c3_i32 : i32 to index
    %c0_45 = arith.constant 0 : index
    %c0_46 = arith.constant 0 : index
    %95 = vector.load %arg6[%c0_44, %94, %c0_45, %c0_46] : memref<1x8x8x27xf32, #tpu.memory_space<vmem>>, vector<1x1x8x27xf32>
    %96 = vector.shape_cast %95 : vector<1x1x8x27xf32> to vector<8x27xf32>
    %97 = vector.shape_cast %93 : vector<8x27xf32> to vector<1x8x27xf32>
    %98 = vector.broadcast %87 : vector<1x1x27xf32> to vector<1x8x27xf32>
    %99 = arith.mulf %98, %97 : vector<1x8x27xf32>
    %100 = arith.addf %76, %99 : vector<1x8x27xf32>
    %101 = vector.shape_cast %96 : vector<8x27xf32> to vector<1x8x27xf32>
    %102 = vector.broadcast %90 : vector<1x1x27xf32> to vector<1x8x27xf32>
    %103 = arith.mulf %102, %101 : vector<1x8x27xf32>
    %104 = arith.subf %100, %103 : vector<1x8x27xf32>
    %105 = vector.shape_cast %96 : vector<8x27xf32> to vector<1x8x27xf32>
    %106 = vector.broadcast %87 : vector<1x1x27xf32> to vector<1x8x27xf32>
    %107 = arith.mulf %106, %105 : vector<1x8x27xf32>
    %108 = arith.addf %84, %107 : vector<1x8x27xf32>
    %109 = vector.shape_cast %93 : vector<8x27xf32> to vector<1x8x27xf32>
    %110 = vector.broadcast %90 : vector<1x1x27xf32> to vector<1x8x27xf32>
    %111 = arith.mulf %110, %109 : vector<1x8x27xf32>
    %112 = arith.addf %108, %111 : vector<1x8x27xf32>
    %c4_i32 = arith.constant 4 : i32
    %c0_47 = arith.constant 0 : index
    %113 = arith.index_cast %c4_i32 : i32 to index
    %c0_48 = arith.constant 0 : index
    %c0_49 = arith.constant 0 : index
    %114 = vector.load %arg3[%c0_47, %113, %c0_48, %c0_49] : memref<1x8x2x27xf32, #tpu.memory_space<vmem>>, vector<1x1x1x27xf32>
    %115 = vector.shape_cast %114 : vector<1x1x1x27xf32> to vector<1x1x27xf32>
    %c0_50 = arith.constant 0 : index
    %116 = arith.index_cast %c4_i32 : i32 to index
    %c0_51 = arith.constant 0 : index
    %c0_52 = arith.constant 0 : index
    %117 = vector.load %arg4[%c0_50, %116, %c0_51, %c0_52] : memref<1x8x2x27xf32, #tpu.memory_space<vmem>>, vector<1x1x1x27xf32>
    %118 = vector.shape_cast %117 : vector<1x1x1x27xf32> to vector<1x1x27xf32>
    %c0_53 = arith.constant 0 : index
    %119 = arith.index_cast %c4_i32 : i32 to index
    %c0_54 = arith.constant 0 : index
    %c0_55 = arith.constant 0 : index
    %120 = vector.load %arg5[%c0_53, %119, %c0_54, %c0_55] : memref<1x8x8x27xf32, #tpu.memory_space<vmem>>, vector<1x1x8x27xf32>
    %121 = vector.shape_cast %120 : vector<1x1x8x27xf32> to vector<8x27xf32>
    %c0_56 = arith.constant 0 : index
    %122 = arith.index_cast %c4_i32 : i32 to index
    %c0_57 = arith.constant 0 : index
    %c0_58 = arith.constant 0 : index
    %123 = vector.load %arg6[%c0_56, %122, %c0_57, %c0_58] : memref<1x8x8x27xf32, #tpu.memory_space<vmem>>, vector<1x1x8x27xf32>
    %124 = vector.shape_cast %123 : vector<1x1x8x27xf32> to vector<8x27xf32>
    %125 = vector.shape_cast %121 : vector<8x27xf32> to vector<1x8x27xf32>
    %126 = vector.broadcast %115 : vector<1x1x27xf32> to vector<1x8x27xf32>
    %127 = arith.mulf %126, %125 : vector<1x8x27xf32>
    %128 = arith.addf %104, %127 : vector<1x8x27xf32>
    %129 = vector.shape_cast %124 : vector<8x27xf32> to vector<1x8x27xf32>
    %130 = vector.broadcast %118 : vector<1x1x27xf32> to vector<1x8x27xf32>
    %131 = arith.mulf %130, %129 : vector<1x8x27xf32>
    %132 = arith.subf %128, %131 : vector<1x8x27xf32>
    %133 = vector.shape_cast %124 : vector<8x27xf32> to vector<1x8x27xf32>
    %134 = vector.broadcast %115 : vector<1x1x27xf32> to vector<1x8x27xf32>
    %135 = arith.mulf %134, %133 : vector<1x8x27xf32>
    %136 = arith.addf %112, %135 : vector<1x8x27xf32>
    %137 = vector.shape_cast %121 : vector<8x27xf32> to vector<1x8x27xf32>
    %138 = vector.broadcast %118 : vector<1x1x27xf32> to vector<1x8x27xf32>
    %139 = arith.mulf %138, %137 : vector<1x8x27xf32>
    %140 = arith.addf %136, %139 : vector<1x8x27xf32>
    %c5_i32 = arith.constant 5 : i32
    %c0_59 = arith.constant 0 : index
    %141 = arith.index_cast %c5_i32 : i32 to index
    %c0_60 = arith.constant 0 : index
    %c0_61 = arith.constant 0 : index
    %142 = vector.load %arg3[%c0_59, %141, %c0_60, %c0_61] : memref<1x8x2x27xf32, #tpu.memory_space<vmem>>, vector<1x1x1x27xf32>
    %143 = vector.shape_cast %142 : vector<1x1x1x27xf32> to vector<1x1x27xf32>
    %c0_62 = arith.constant 0 : index
    %144 = arith.index_cast %c5_i32 : i32 to index
    %c0_63 = arith.constant 0 : index
    %c0_64 = arith.constant 0 : index
    %145 = vector.load %arg4[%c0_62, %144, %c0_63, %c0_64] : memref<1x8x2x27xf32, #tpu.memory_space<vmem>>, vector<1x1x1x27xf32>
    %146 = vector.shape_cast %145 : vector<1x1x1x27xf32> to vector<1x1x27xf32>
    %c0_65 = arith.constant 0 : index
    %147 = arith.index_cast %c5_i32 : i32 to index
    %c0_66 = arith.constant 0 : index
    %c0_67 = arith.constant 0 : index
    %148 = vector.load %arg5[%c0_65, %147, %c0_66, %c0_67] : memref<1x8x8x27xf32, #tpu.memory_space<vmem>>, vector<1x1x8x27xf32>
    %149 = vector.shape_cast %148 : vector<1x1x8x27xf32> to vector<8x27xf32>
    %c0_68 = arith.constant 0 : index
    %150 = arith.index_cast %c5_i32 : i32 to index
    %c0_69 = arith.constant 0 : index
    %c0_70 = arith.constant 0 : index
    %151 = vector.load %arg6[%c0_68, %150, %c0_69, %c0_70] : memref<1x8x8x27xf32, #tpu.memory_space<vmem>>, vector<1x1x8x27xf32>
    %152 = vector.shape_cast %151 : vector<1x1x8x27xf32> to vector<8x27xf32>
    %153 = vector.shape_cast %149 : vector<8x27xf32> to vector<1x8x27xf32>
    %154 = vector.broadcast %143 : vector<1x1x27xf32> to vector<1x8x27xf32>
    %155 = arith.mulf %154, %153 : vector<1x8x27xf32>
    %156 = arith.addf %132, %155 : vector<1x8x27xf32>
    %157 = vector.shape_cast %152 : vector<8x27xf32> to vector<1x8x27xf32>
    %158 = vector.broadcast %146 : vector<1x1x27xf32> to vector<1x8x27xf32>
    %159 = arith.mulf %158, %157 : vector<1x8x27xf32>
    %160 = arith.subf %156, %159 : vector<1x8x27xf32>
    %161 = vector.shape_cast %152 : vector<8x27xf32> to vector<1x8x27xf32>
    %162 = vector.broadcast %143 : vector<1x1x27xf32> to vector<1x8x27xf32>
    %163 = arith.mulf %162, %161 : vector<1x8x27xf32>
    %164 = arith.addf %140, %163 : vector<1x8x27xf32>
    %165 = vector.shape_cast %149 : vector<8x27xf32> to vector<1x8x27xf32>
    %166 = vector.broadcast %146 : vector<1x1x27xf32> to vector<1x8x27xf32>
    %167 = arith.mulf %166, %165 : vector<1x8x27xf32>
    %168 = arith.addf %164, %167 : vector<1x8x27xf32>
    %c6_i32 = arith.constant 6 : i32
    %c0_71 = arith.constant 0 : index
    %169 = arith.index_cast %c6_i32 : i32 to index
    %c0_72 = arith.constant 0 : index
    %c0_73 = arith.constant 0 : index
    %170 = vector.load %arg3[%c0_71, %169, %c0_72, %c0_73] : memref<1x8x2x27xf32, #tpu.memory_space<vmem>>, vector<1x1x1x27xf32>
    %171 = vector.shape_cast %170 : vector<1x1x1x27xf32> to vector<1x1x27xf32>
    %c0_74 = arith.constant 0 : index
    %172 = arith.index_cast %c6_i32 : i32 to index
    %c0_75 = arith.constant 0 : index
    %c0_76 = arith.constant 0 : index
    %173 = vector.load %arg4[%c0_74, %172, %c0_75, %c0_76] : memref<1x8x2x27xf32, #tpu.memory_space<vmem>>, vector<1x1x1x27xf32>
    %174 = vector.shape_cast %173 : vector<1x1x1x27xf32> to vector<1x1x27xf32>
    %c0_77 = arith.constant 0 : index
    %175 = arith.index_cast %c6_i32 : i32 to index
    %c0_78 = arith.constant 0 : index
    %c0_79 = arith.constant 0 : index
    %176 = vector.load %arg5[%c0_77, %175, %c0_78, %c0_79] : memref<1x8x8x27xf32, #tpu.memory_space<vmem>>, vector<1x1x8x27xf32>
    %177 = vector.shape_cast %176 : vector<1x1x8x27xf32> to vector<8x27xf32>
    %c0_80 = arith.constant 0 : index
    %178 = arith.index_cast %c6_i32 : i32 to index
    %c0_81 = arith.constant 0 : index
    %c0_82 = arith.constant 0 : index
    %179 = vector.load %arg6[%c0_80, %178, %c0_81, %c0_82] : memref<1x8x8x27xf32, #tpu.memory_space<vmem>>, vector<1x1x8x27xf32>
    %180 = vector.shape_cast %179 : vector<1x1x8x27xf32> to vector<8x27xf32>
    %181 = vector.shape_cast %177 : vector<8x27xf32> to vector<1x8x27xf32>
    %182 = vector.broadcast %171 : vector<1x1x27xf32> to vector<1x8x27xf32>
    %183 = arith.mulf %182, %181 : vector<1x8x27xf32>
    %184 = arith.addf %160, %183 : vector<1x8x27xf32>
    %185 = vector.shape_cast %180 : vector<8x27xf32> to vector<1x8x27xf32>
    %186 = vector.broadcast %174 : vector<1x1x27xf32> to vector<1x8x27xf32>
    %187 = arith.mulf %186, %185 : vector<1x8x27xf32>
    %188 = arith.subf %184, %187 : vector<1x8x27xf32>
    %189 = vector.shape_cast %180 : vector<8x27xf32> to vector<1x8x27xf32>
    %190 = vector.broadcast %171 : vector<1x1x27xf32> to vector<1x8x27xf32>
    %191 = arith.mulf %190, %189 : vector<1x8x27xf32>
    %192 = arith.addf %168, %191 : vector<1x8x27xf32>
    %193 = vector.shape_cast %177 : vector<8x27xf32> to vector<1x8x27xf32>
    %194 = vector.broadcast %174 : vector<1x1x27xf32> to vector<1x8x27xf32>
    %195 = arith.mulf %194, %193 : vector<1x8x27xf32>
    %196 = arith.addf %192, %195 : vector<1x8x27xf32>
    %c7_i32 = arith.constant 7 : i32
    %c0_83 = arith.constant 0 : index
    %197 = arith.index_cast %c7_i32 : i32 to index
    %c0_84 = arith.constant 0 : index
    %c0_85 = arith.constant 0 : index
    %198 = vector.load %arg3[%c0_83, %197, %c0_84, %c0_85] : memref<1x8x2x27xf32, #tpu.memory_space<vmem>>, vector<1x1x1x27xf32>
    %199 = vector.shape_cast %198 : vector<1x1x1x27xf32> to vector<1x1x27xf32>
    %c0_86 = arith.constant 0 : index
    %200 = arith.index_cast %c7_i32 : i32 to index
    %c0_87 = arith.constant 0 : index
    %c0_88 = arith.constant 0 : index
    %201 = vector.load %arg4[%c0_86, %200, %c0_87, %c0_88] : memref<1x8x2x27xf32, #tpu.memory_space<vmem>>, vector<1x1x1x27xf32>
    %202 = vector.shape_cast %201 : vector<1x1x1x27xf32> to vector<1x1x27xf32>
    %c0_89 = arith.constant 0 : index
    %203 = arith.index_cast %c7_i32 : i32 to index
    %c0_90 = arith.constant 0 : index
    %c0_91 = arith.constant 0 : index
    %204 = vector.load %arg5[%c0_89, %203, %c0_90, %c0_91] : memref<1x8x8x27xf32, #tpu.memory_space<vmem>>, vector<1x1x8x27xf32>
    %205 = vector.shape_cast %204 : vector<1x1x8x27xf32> to vector<8x27xf32>
    %c0_92 = arith.constant 0 : index
    %206 = arith.index_cast %c7_i32 : i32 to index
    %c0_93 = arith.constant 0 : index
    %c0_94 = arith.constant 0 : index
    %207 = vector.load %arg6[%c0_92, %206, %c0_93, %c0_94] : memref<1x8x8x27xf32, #tpu.memory_space<vmem>>, vector<1x1x8x27xf32>
    %208 = vector.shape_cast %207 : vector<1x1x8x27xf32> to vector<8x27xf32>
    %209 = vector.shape_cast %205 : vector<8x27xf32> to vector<1x8x27xf32>
    %210 = vector.broadcast %199 : vector<1x1x27xf32> to vector<1x8x27xf32>
    %211 = arith.mulf %210, %209 : vector<1x8x27xf32>
    %212 = arith.addf %188, %211 : vector<1x8x27xf32>
    %213 = vector.shape_cast %208 : vector<8x27xf32> to vector<1x8x27xf32>
    %214 = vector.broadcast %202 : vector<1x1x27xf32> to vector<1x8x27xf32>
    %215 = arith.mulf %214, %213 : vector<1x8x27xf32>
    %216 = arith.subf %212, %215 : vector<1x8x27xf32>
    %217 = vector.shape_cast %208 : vector<8x27xf32> to vector<1x8x27xf32>
    %218 = vector.broadcast %199 : vector<1x1x27xf32> to vector<1x8x27xf32>
    %219 = arith.mulf %218, %217 : vector<1x8x27xf32>
    %220 = arith.addf %196, %219 : vector<1x8x27xf32>
    %221 = vector.shape_cast %205 : vector<8x27xf32> to vector<1x8x27xf32>
    %222 = vector.broadcast %202 : vector<1x1x27xf32> to vector<1x8x27xf32>
    %223 = arith.mulf %222, %221 : vector<1x8x27xf32>
    %224 = arith.addf %220, %223 : vector<1x8x27xf32>
    %c8_i32 = arith.constant 8 : i32
    %c0_95 = arith.constant 0 : index
    %c0_96 = arith.constant 0 : index
    %c0_97 = arith.constant 0 : index
    %c0_98 = arith.constant 0 : index
    %225 = vector.load %arg7[%c0_95, %c0_96, %c0_97, %c0_98] : memref<1x2x8x27xf32, #tpu.memory_space<vmem>>, vector<1x1x8x27xf32>
    %226 = vector.shape_cast %225 : vector<1x1x8x27xf32> to vector<1x8x27xf32>
    %227 = vector.shape_cast %216 : vector<1x8x27xf32> to vector<1x1x8x27xf32>
    tpu.vector_store %arg7[%c0_95, %c0_96, %c0_97, %c0_98], %227 {strides = array<i32>} : memref<1x2x8x27xf32, #tpu.memory_space<vmem>>, vector<1x1x8x27xf32>,
    %c0_99 = arith.constant 0 : index
    %c0_100 = arith.constant 0 : index
    %c0_101 = arith.constant 0 : index
    %c0_102 = arith.constant 0 : index
    %228 = vector.load %arg8[%c0_99, %c0_100, %c0_101, %c0_102] : memref<1x2x8x27xf32, #tpu.memory_space<vmem>>, vector<1x1x8x27xf32>
    %229 = vector.shape_cast %228 : vector<1x1x8x27xf32> to vector<1x8x27xf32>
    %230 = vector.shape_cast %224 : vector<1x8x27xf32> to vector<1x1x8x27xf32>
    tpu.vector_store %arg8[%c0_99, %c0_100, %c0_101, %c0_102], %230 {strides = array<i32>} : memref<1x2x8x27xf32, #tpu.memory_space<vmem>>, vector<1x1x8x27xf32>,
    %cst_103 = arith.constant 0.000000e+00 : f32
    %231 = vector.broadcast %cst_103 : f32 to vector<1x8x27xf32>
    %c0_i32_104 = arith.constant 0 : i32
    %c0_105 = arith.constant 0 : index
    %232 = arith.index_cast %c0_i32_104 : i32 to index
    %c1 = arith.constant 1 : index
    %c0_106 = arith.constant 0 : index
    %233 = vector.load %arg3[%c0_105, %232, %c1, %c0_106] : memref<1x8x2x27xf32, #tpu.memory_space<vmem>>, vector<1x1x1x27xf32>
    %234 = vector.shape_cast %233 : vector<1x1x1x27xf32> to vector<1x1x27xf32>
    %c0_107 = arith.constant 0 : index
    %235 = arith.index_cast %c0_i32_104 : i32 to index
    %c1_108 = arith.constant 1 : index
    %c0_109 = arith.constant 0 : index
    %236 = vector.load %arg4[%c0_107, %235, %c1_108, %c0_109] : memref<1x8x2x27xf32, #tpu.memory_space<vmem>>, vector<1x1x1x27xf32>
    %237 = vector.shape_cast %236 : vector<1x1x1x27xf32> to vector<1x1x27xf32>
    %c0_110 = arith.constant 0 : index
    %238 = arith.index_cast %c0_i32_104 : i32 to index
    %c0_111 = arith.constant 0 : index
    %c0_112 = arith.constant 0 : index
    %239 = vector.load %arg5[%c0_110, %238, %c0_111, %c0_112] : memref<1x8x8x27xf32, #tpu.memory_space<vmem>>, vector<1x1x8x27xf32>
    %240 = vector.shape_cast %239 : vector<1x1x8x27xf32> to vector<8x27xf32>
    %c0_113 = arith.constant 0 : index
    %241 = arith.index_cast %c0_i32_104 : i32 to index
    %c0_114 = arith.constant 0 : index
    %c0_115 = arith.constant 0 : index
    %242 = vector.load %arg6[%c0_113, %241, %c0_114, %c0_115] : memref<1x8x8x27xf32, #tpu.memory_space<vmem>>, vector<1x1x8x27xf32>
    %243 = vector.shape_cast %242 : vector<1x1x8x27xf32> to vector<8x27xf32>
    %244 = vector.shape_cast %240 : vector<8x27xf32> to vector<1x8x27xf32>
    %245 = vector.broadcast %234 : vector<1x1x27xf32> to vector<1x8x27xf32>
    %246 = arith.mulf %245, %244 : vector<1x8x27xf32>
    %247 = arith.addf %231, %246 : vector<1x8x27xf32>
    %248 = vector.shape_cast %243 : vector<8x27xf32> to vector<1x8x27xf32>
    %249 = vector.broadcast %237 : vector<1x1x27xf32> to vector<1x8x27xf32>
    %250 = arith.mulf %249, %248 : vector<1x8x27xf32>
    %251 = arith.subf %247, %250 : vector<1x8x27xf32>
    %252 = vector.shape_cast %243 : vector<8x27xf32> to vector<1x8x27xf32>
    %253 = vector.broadcast %234 : vector<1x1x27xf32> to vector<1x8x27xf32>
    %254 = arith.mulf %253, %252 : vector<1x8x27xf32>
    %255 = arith.addf %231, %254 : vector<1x8x27xf32>
    %256 = vector.shape_cast %240 : vector<8x27xf32> to vector<1x8x27xf32>
    %257 = vector.broadcast %237 : vector<1x1x27xf32> to vector<1x8x27xf32>
    %258 = arith.mulf %257, %256 : vector<1x8x27xf32>
    %259 = arith.addf %255, %258 : vector<1x8x27xf32>
    %c1_i32_116 = arith.constant 1 : i32
    %c0_117 = arith.constant 0 : index
    %260 = arith.index_cast %c1_i32_116 : i32 to index
    %c1_118 = arith.constant 1 : index
    %c0_119 = arith.constant 0 : index
    %261 = vector.load %arg3[%c0_117, %260, %c1_118, %c0_119] : memref<1x8x2x27xf32, #tpu.memory_space<vmem>>, vector<1x1x1x27xf32>
    %262 = vector.shape_cast %261 : vector<1x1x1x27xf32> to vector<1x1x27xf32>
    %c0_120 = arith.constant 0 : index
    %263 = arith.index_cast %c1_i32_116 : i32 to index
    %c1_121 = arith.constant 1 : index
    %c0_122 = arith.constant 0 : index
    %264 = vector.load %arg4[%c0_120, %263, %c1_121, %c0_122] : memref<1x8x2x27xf32, #tpu.memory_space<vmem>>, vector<1x1x1x27xf32>
    %265 = vector.shape_cast %264 : vector<1x1x1x27xf32> to vector<1x1x27xf32>
    %c0_123 = arith.constant 0 : index
    %266 = arith.index_cast %c1_i32_116 : i32 to index
    %c0_124 = arith.constant 0 : index
    %c0_125 = arith.constant 0 : index
    %267 = vector.load %arg5[%c0_123, %266, %c0_124, %c0_125] : memref<1x8x8x27xf32, #tpu.memory_space<vmem>>, vector<1x1x8x27xf32>
    %268 = vector.shape_cast %267 : vector<1x1x8x27xf32> to vector<8x27xf32>
    %c0_126 = arith.constant 0 : index
    %269 = arith.index_cast %c1_i32_116 : i32 to index
    %c0_127 = arith.constant 0 : index
    %c0_128 = arith.constant 0 : index
    %270 = vector.load %arg6[%c0_126, %269, %c0_127, %c0_128] : memref<1x8x8x27xf32, #tpu.memory_space<vmem>>, vector<1x1x8x27xf32>
    %271 = vector.shape_cast %270 : vector<1x1x8x27xf32> to vector<8x27xf32>
    %272 = vector.shape_cast %268 : vector<8x27xf32> to vector<1x8x27xf32>
    %273 = vector.broadcast %262 : vector<1x1x27xf32> to vector<1x8x27xf32>
    %274 = arith.mulf %273, %272 : vector<1x8x27xf32>
    %275 = arith.addf %251, %274 : vector<1x8x27xf32>
    %276 = vector.shape_cast %271 : vector<8x27xf32> to vector<1x8x27xf32>
    %277 = vector.broadcast %265 : vector<1x1x27xf32> to vector<1x8x27xf32>
    %278 = arith.mulf %277, %276 : vector<1x8x27xf32>
    %279 = arith.subf %275, %278 : vector<1x8x27xf32>
    %280 = vector.shape_cast %271 : vector<8x27xf32> to vector<1x8x27xf32>
    %281 = vector.broadcast %262 : vector<1x1x27xf32> to vector<1x8x27xf32>
    %282 = arith.mulf %281, %280 : vector<1x8x27xf32>
    %283 = arith.addf %259, %282 : vector<1x8x27xf32>
    %284 = vector.shape_cast %268 : vector<8x27xf32> to vector<1x8x27xf32>
    %285 = vector.broadcast %265 : vector<1x1x27xf32> to vector<1x8x27xf32>
    %286 = arith.mulf %285, %284 : vector<1x8x27xf32>
    %287 = arith.addf %283, %286 : vector<1x8x27xf32>
    %c2_i32_129 = arith.constant 2 : i32
    %c0_130 = arith.constant 0 : index
    %288 = arith.index_cast %c2_i32_129 : i32 to index
    %c1_131 = arith.constant 1 : index
    %c0_132 = arith.constant 0 : index
    %289 = vector.load %arg3[%c0_130, %288, %c1_131, %c0_132] : memref<1x8x2x27xf32, #tpu.memory_space<vmem>>, vector<1x1x1x27xf32>
    %290 = vector.shape_cast %289 : vector<1x1x1x27xf32> to vector<1x1x27xf32>
    %c0_133 = arith.constant 0 : index
    %291 = arith.index_cast %c2_i32_129 : i32 to index
    %c1_134 = arith.constant 1 : index
    %c0_135 = arith.constant 0 : index
    %292 = vector.load %arg4[%c0_133, %291, %c1_134, %c0_135] : memref<1x8x2x27xf32, #tpu.memory_space<vmem>>, vector<1x1x1x27xf32>
    %293 = vector.shape_cast %292 : vector<1x1x1x27xf32> to vector<1x1x27xf32>
    %c0_136 = arith.constant 0 : index
    %294 = arith.index_cast %c2_i32_129 : i32 to index
    %c0_137 = arith.constant 0 : index
    %c0_138 = arith.constant 0 : index
    %295 = vector.load %arg5[%c0_136, %294, %c0_137, %c0_138] : memref<1x8x8x27xf32, #tpu.memory_space<vmem>>, vector<1x1x8x27xf32>
    %296 = vector.shape_cast %295 : vector<1x1x8x27xf32> to vector<8x27xf32>
    %c0_139 = arith.constant 0 : index
    %297 = arith.index_cast %c2_i32_129 : i32 to index
    %c0_140 = arith.constant 0 : index
    %c0_141 = arith.constant 0 : index
    %298 = vector.load %arg6[%c0_139, %297, %c0_140, %c0_141] : memref<1x8x8x27xf32, #tpu.memory_space<vmem>>, vector<1x1x8x27xf32>
    %299 = vector.shape_cast %298 : vector<1x1x8x27xf32> to vector<8x27xf32>
    %300 = vector.shape_cast %296 : vector<8x27xf32> to vector<1x8x27xf32>
    %301 = vector.broadcast %290 : vector<1x1x27xf32> to vector<1x8x27xf32>
    %302 = arith.mulf %301, %300 : vector<1x8x27xf32>
    %303 = arith.addf %279, %302 : vector<1x8x27xf32>
    %304 = vector.shape_cast %299 : vector<8x27xf32> to vector<1x8x27xf32>
    %305 = vector.broadcast %293 : vector<1x1x27xf32> to vector<1x8x27xf32>
    %306 = arith.mulf %305, %304 : vector<1x8x27xf32>
    %307 = arith.subf %303, %306 : vector<1x8x27xf32>
    %308 = vector.shape_cast %299 : vector<8x27xf32> to vector<1x8x27xf32>
    %309 = vector.broadcast %290 : vector<1x1x27xf32> to vector<1x8x27xf32>
    %310 = arith.mulf %309, %308 : vector<1x8x27xf32>
    %311 = arith.addf %287, %310 : vector<1x8x27xf32>
    %312 = vector.shape_cast %296 : vector<8x27xf32> to vector<1x8x27xf32>
    %313 = vector.broadcast %293 : vector<1x1x27xf32> to vector<1x8x27xf32>
    %314 = arith.mulf %313, %312 : vector<1x8x27xf32>
    %315 = arith.addf %311, %314 : vector<1x8x27xf32>
    %c3_i32_142 = arith.constant 3 : i32
    %c0_143 = arith.constant 0 : index
    %316 = arith.index_cast %c3_i32_142 : i32 to index
    %c1_144 = arith.constant 1 : index
    %c0_145 = arith.constant 0 : index
    %317 = vector.load %arg3[%c0_143, %316, %c1_144, %c0_145] : memref<1x8x2x27xf32, #tpu.memory_space<vmem>>, vector<1x1x1x27xf32>
    %318 = vector.shape_cast %317 : vector<1x1x1x27xf32> to vector<1x1x27xf32>
    %c0_146 = arith.constant 0 : index
    %319 = arith.index_cast %c3_i32_142 : i32 to index
    %c1_147 = arith.constant 1 : index
    %c0_148 = arith.constant 0 : index
    %320 = vector.load %arg4[%c0_146, %319, %c1_147, %c0_148] : memref<1x8x2x27xf32, #tpu.memory_space<vmem>>, vector<1x1x1x27xf32>
    %321 = vector.shape_cast %320 : vector<1x1x1x27xf32> to vector<1x1x27xf32>
    %c0_149 = arith.constant 0 : index
    %322 = arith.index_cast %c3_i32_142 : i32 to index
    %c0_150 = arith.constant 0 : index
    %c0_151 = arith.constant 0 : index
    %323 = vector.load %arg5[%c0_149, %322, %c0_150, %c0_151] : memref<1x8x8x27xf32, #tpu.memory_space<vmem>>, vector<1x1x8x27xf32>
    %324 = vector.shape_cast %323 : vector<1x1x8x27xf32> to vector<8x27xf32>
    %c0_152 = arith.constant 0 : index
    %325 = arith.index_cast %c3_i32_142 : i32 to index
    %c0_153 = arith.constant 0 : index
    %c0_154 = arith.constant 0 : index
    %326 = vector.load %arg6[%c0_152, %325, %c0_153, %c0_154] : memref<1x8x8x27xf32, #tpu.memory_space<vmem>>, vector<1x1x8x27xf32>
    %327 = vector.shape_cast %326 : vector<1x1x8x27xf32> to vector<8x27xf32>
    %328 = vector.shape_cast %324 : vector<8x27xf32> to vector<1x8x27xf32>
    %329 = vector.broadcast %318 : vector<1x1x27xf32> to vector<1x8x27xf32>
    %330 = arith.mulf %329, %328 : vector<1x8x27xf32>
    %331 = arith.addf %307, %330 : vector<1x8x27xf32>
    %332 = vector.shape_cast %327 : vector<8x27xf32> to vector<1x8x27xf32>
    %333 = vector.broadcast %321 : vector<1x1x27xf32> to vector<1x8x27xf32>
    %334 = arith.mulf %333, %332 : vector<1x8x27xf32>
    %335 = arith.subf %331, %334 : vector<1x8x27xf32>
    %336 = vector.shape_cast %327 : vector<8x27xf32> to vector<1x8x27xf32>
    %337 = vector.broadcast %318 : vector<1x1x27xf32> to vector<1x8x27xf32>
    %338 = arith.mulf %337, %336 : vector<1x8x27xf32>
    %339 = arith.addf %315, %338 : vector<1x8x27xf32>
    %340 = vector.shape_cast %324 : vector<8x27xf32> to vector<1x8x27xf32>
    %341 = vector.broadcast %321 : vector<1x1x27xf32> to vector<1x8x27xf32>
    %342 = arith.mulf %341, %340 : vector<1x8x27xf32>
    %343 = arith.addf %339, %342 : vector<1x8x27xf32>
    %c4_i32_155 = arith.constant 4 : i32
    %c0_156 = arith.constant 0 : index
    %344 = arith.index_cast %c4_i32_155 : i32 to index
    %c1_157 = arith.constant 1 : index
    %c0_158 = arith.constant 0 : index
    %345 = vector.load %arg3[%c0_156, %344, %c1_157, %c0_158] : memref<1x8x2x27xf32, #tpu.memory_space<vmem>>, vector<1x1x1x27xf32>
    %346 = vector.shape_cast %345 : vector<1x1x1x27xf32> to vector<1x1x27xf32>
    %c0_159 = arith.constant 0 : index
    %347 = arith.index_cast %c4_i32_155 : i32 to index
    %c1_160 = arith.constant 1 : index
    %c0_161 = arith.constant 0 : index
    %348 = vector.load %arg4[%c0_159, %347, %c1_160, %c0_161] : memref<1x8x2x27xf32, #tpu.memory_space<vmem>>, vector<1x1x1x27xf32>
    %349 = vector.shape_cast %348 : vector<1x1x1x27xf32> to vector<1x1x27xf32>
    %c0_162 = arith.constant 0 : index
    %350 = arith.index_cast %c4_i32_155 : i32 to index
    %c0_163 = arith.constant 0 : index
    %c0_164 = arith.constant 0 : index
    %351 = vector.load %arg5[%c0_162, %350, %c0_163, %c0_164] : memref<1x8x8x27xf32, #tpu.memory_space<vmem>>, vector<1x1x8x27xf32>
    %352 = vector.shape_cast %351 : vector<1x1x8x27xf32> to vector<8x27xf32>
    %c0_165 = arith.constant 0 : index
    %353 = arith.index_cast %c4_i32_155 : i32 to index
    %c0_166 = arith.constant 0 : index
    %c0_167 = arith.constant 0 : index
    %354 = vector.load %arg6[%c0_165, %353, %c0_166, %c0_167] : memref<1x8x8x27xf32, #tpu.memory_space<vmem>>, vector<1x1x8x27xf32>
    %355 = vector.shape_cast %354 : vector<1x1x8x27xf32> to vector<8x27xf32>
    %356 = vector.shape_cast %352 : vector<8x27xf32> to vector<1x8x27xf32>
    %357 = vector.broadcast %346 : vector<1x1x27xf32> to vector<1x8x27xf32>
    %358 = arith.mulf %357, %356 : vector<1x8x27xf32>
    %359 = arith.addf %335, %358 : vector<1x8x27xf32>
    %360 = vector.shape_cast %355 : vector<8x27xf32> to vector<1x8x27xf32>
    %361 = vector.broadcast %349 : vector<1x1x27xf32> to vector<1x8x27xf32>
    %362 = arith.mulf %361, %360 : vector<1x8x27xf32>
    %363 = arith.subf %359, %362 : vector<1x8x27xf32>
    %364 = vector.shape_cast %355 : vector<8x27xf32> to vector<1x8x27xf32>
    %365 = vector.broadcast %346 : vector<1x1x27xf32> to vector<1x8x27xf32>
    %366 = arith.mulf %365, %364 : vector<1x8x27xf32>
    %367 = arith.addf %343, %366 : vector<1x8x27xf32>
    %368 = vector.shape_cast %352 : vector<8x27xf32> to vector<1x8x27xf32>
    %369 = vector.broadcast %349 : vector<1x1x27xf32> to vector<1x8x27xf32>
    %370 = arith.mulf %369, %368 : vector<1x8x27xf32>
    %371 = arith.addf %367, %370 : vector<1x8x27xf32>
    %c5_i32_168 = arith.constant 5 : i32
    %c0_169 = arith.constant 0 : index
    %372 = arith.index_cast %c5_i32_168 : i32 to index
    %c1_170 = arith.constant 1 : index
    %c0_171 = arith.constant 0 : index
    %373 = vector.load %arg3[%c0_169, %372, %c1_170, %c0_171] : memref<1x8x2x27xf32, #tpu.memory_space<vmem>>, vector<1x1x1x27xf32>
    %374 = vector.shape_cast %373 : vector<1x1x1x27xf32> to vector<1x1x27xf32>
    %c0_172 = arith.constant 0 : index
    %375 = arith.index_cast %c5_i32_168 : i32 to index
    %c1_173 = arith.constant 1 : index
    %c0_174 = arith.constant 0 : index
    %376 = vector.load %arg4[%c0_172, %375, %c1_173, %c0_174] : memref<1x8x2x27xf32, #tpu.memory_space<vmem>>, vector<1x1x1x27xf32>
    %377 = vector.shape_cast %376 : vector<1x1x1x27xf32> to vector<1x1x27xf32>
    %c0_175 = arith.constant 0 : index
    %378 = arith.index_cast %c5_i32_168 : i32 to index
    %c0_176 = arith.constant 0 : index
    %c0_177 = arith.constant 0 : index
    %379 = vector.load %arg5[%c0_175, %378, %c0_176, %c0_177] : memref<1x8x8x27xf32, #tpu.memory_space<vmem>>, vector<1x1x8x27xf32>
    %380 = vector.shape_cast %379 : vector<1x1x8x27xf32> to vector<8x27xf32>
    %c0_178 = arith.constant 0 : index
    %381 = arith.index_cast %c5_i32_168 : i32 to index
    %c0_179 = arith.constant 0 : index
    %c0_180 = arith.constant 0 : index
    %382 = vector.load %arg6[%c0_178, %381, %c0_179, %c0_180] : memref<1x8x8x27xf32, #tpu.memory_space<vmem>>, vector<1x1x8x27xf32>
    %383 = vector.shape_cast %382 : vector<1x1x8x27xf32> to vector<8x27xf32>
    %384 = vector.shape_cast %380 : vector<8x27xf32> to vector<1x8x27xf32>
    %385 = vector.broadcast %374 : vector<1x1x27xf32> to vector<1x8x27xf32>
    %386 = arith.mulf %385, %384 : vector<1x8x27xf32>
    %387 = arith.addf %363, %386 : vector<1x8x27xf32>
    %388 = vector.shape_cast %383 : vector<8x27xf32> to vector<1x8x27xf32>
    %389 = vector.broadcast %377 : vector<1x1x27xf32> to vector<1x8x27xf32>
    %390 = arith.mulf %389, %388 : vector<1x8x27xf32>
    %391 = arith.subf %387, %390 : vector<1x8x27xf32>
    %392 = vector.shape_cast %383 : vector<8x27xf32> to vector<1x8x27xf32>
    %393 = vector.broadcast %374 : vector<1x1x27xf32> to vector<1x8x27xf32>
    %394 = arith.mulf %393, %392 : vector<1x8x27xf32>
    %395 = arith.addf %371, %394 : vector<1x8x27xf32>
    %396 = vector.shape_cast %380 : vector<8x27xf32> to vector<1x8x27xf32>
    %397 = vector.broadcast %377 : vector<1x1x27xf32> to vector<1x8x27xf32>
    %398 = arith.mulf %397, %396 : vector<1x8x27xf32>
    %399 = arith.addf %395, %398 : vector<1x8x27xf32>
    %c6_i32_181 = arith.constant 6 : i32
    %c0_182 = arith.constant 0 : index
    %400 = arith.index_cast %c6_i32_181 : i32 to index
    %c1_183 = arith.constant 1 : index
    %c0_184 = arith.constant 0 : index
    %401 = vector.load %arg3[%c0_182, %400, %c1_183, %c0_184] : memref<1x8x2x27xf32, #tpu.memory_space<vmem>>, vector<1x1x1x27xf32>
    %402 = vector.shape_cast %401 : vector<1x1x1x27xf32> to vector<1x1x27xf32>
    %c0_185 = arith.constant 0 : index
    %403 = arith.index_cast %c6_i32_181 : i32 to index
    %c1_186 = arith.constant 1 : index
    %c0_187 = arith.constant 0 : index
    %404 = vector.load %arg4[%c0_185, %403, %c1_186, %c0_187] : memref<1x8x2x27xf32, #tpu.memory_space<vmem>>, vector<1x1x1x27xf32>
    %405 = vector.shape_cast %404 : vector<1x1x1x27xf32> to vector<1x1x27xf32>
    %c0_188 = arith.constant 0 : index
    %406 = arith.index_cast %c6_i32_181 : i32 to index
    %c0_189 = arith.constant 0 : index
    %c0_190 = arith.constant 0 : index
    %407 = vector.load %arg5[%c0_188, %406, %c0_189, %c0_190] : memref<1x8x8x27xf32, #tpu.memory_space<vmem>>, vector<1x1x8x27xf32>
    %408 = vector.shape_cast %407 : vector<1x1x8x27xf32> to vector<8x27xf32>
    %c0_191 = arith.constant 0 : index
    %409 = arith.index_cast %c6_i32_181 : i32 to index
    %c0_192 = arith.constant 0 : index
    %c0_193 = arith.constant 0 : index
    %410 = vector.load %arg6[%c0_191, %409, %c0_192, %c0_193] : memref<1x8x8x27xf32, #tpu.memory_space<vmem>>, vector<1x1x8x27xf32>
    %411 = vector.shape_cast %410 : vector<1x1x8x27xf32> to vector<8x27xf32>
    %412 = vector.shape_cast %408 : vector<8x27xf32> to vector<1x8x27xf32>
    %413 = vector.broadcast %402 : vector<1x1x27xf32> to vector<1x8x27xf32>
    %414 = arith.mulf %413, %412 : vector<1x8x27xf32>
    %415 = arith.addf %391, %414 : vector<1x8x27xf32>
    %416 = vector.shape_cast %411 : vector<8x27xf32> to vector<1x8x27xf32>
    %417 = vector.broadcast %405 : vector<1x1x27xf32> to vector<1x8x27xf32>
    %418 = arith.mulf %417, %416 : vector<1x8x27xf32>
    %419 = arith.subf %415, %418 : vector<1x8x27xf32>
    %420 = vector.shape_cast %411 : vector<8x27xf32> to vector<1x8x27xf32>
    %421 = vector.broadcast %402 : vector<1x1x27xf32> to vector<1x8x27xf32>
    %422 = arith.mulf %421, %420 : vector<1x8x27xf32>
    %423 = arith.addf %399, %422 : vector<1x8x27xf32>
    %424 = vector.shape_cast %408 : vector<8x27xf32> to vector<1x8x27xf32>
    %425 = vector.broadcast %405 : vector<1x1x27xf32> to vector<1x8x27xf32>
    %426 = arith.mulf %425, %424 : vector<1x8x27xf32>
    %427 = arith.addf %423, %426 : vector<1x8x27xf32>
    %c7_i32_194 = arith.constant 7 : i32
    %c0_195 = arith.constant 0 : index
    %428 = arith.index_cast %c7_i32_194 : i32 to index
    %c1_196 = arith.constant 1 : index
    %c0_197 = arith.constant 0 : index
    %429 = vector.load %arg3[%c0_195, %428, %c1_196, %c0_197] : memref<1x8x2x27xf32, #tpu.memory_space<vmem>>, vector<1x1x1x27xf32>
    %430 = vector.shape_cast %429 : vector<1x1x1x27xf32> to vector<1x1x27xf32>
    %c0_198 = arith.constant 0 : index
    %431 = arith.index_cast %c7_i32_194 : i32 to index
    %c1_199 = arith.constant 1 : index
    %c0_200 = arith.constant 0 : index
    %432 = vector.load %arg4[%c0_198, %431, %c1_199, %c0_200] : memref<1x8x2x27xf32, #tpu.memory_space<vmem>>, vector<1x1x1x27xf32>
    %433 = vector.shape_cast %432 : vector<1x1x1x27xf32> to vector<1x1x27xf32>
    %c0_201 = arith.constant 0 : index
    %434 = arith.index_cast %c7_i32_194 : i32 to index
    %c0_202 = arith.constant 0 : index
    %c0_203 = arith.constant 0 : index
    %435 = vector.load %arg5[%c0_201, %434, %c0_202, %c0_203] : memref<1x8x8x27xf32, #tpu.memory_space<vmem>>, vector<1x1x8x27xf32>
    %436 = vector.shape_cast %435 : vector<1x1x8x27xf32> to vector<8x27xf32>
    %c0_204 = arith.constant 0 : index
    %437 = arith.index_cast %c7_i32_194 : i32 to index
    %c0_205 = arith.constant 0 : index
    %c0_206 = arith.constant 0 : index
    %438 = vector.load %arg6[%c0_204, %437, %c0_205, %c0_206] : memref<1x8x8x27xf32, #tpu.memory_space<vmem>>, vector<1x1x8x27xf32>
    %439 = vector.shape_cast %438 : vector<1x1x8x27xf32> to vector<8x27xf32>
    %440 = vector.shape_cast %436 : vector<8x27xf32> to vector<1x8x27xf32>
    %441 = vector.broadcast %430 : vector<1x1x27xf32> to vector<1x8x27xf32>
    %442 = arith.mulf %441, %440 : vector<1x8x27xf32>
    %443 = arith.addf %419, %442 : vector<1x8x27xf32>
    %444 = vector.shape_cast %439 : vector<8x27xf32> to vector<1x8x27xf32>
    %445 = vector.broadcast %433 : vector<1x1x27xf32> to vector<1x8x27xf32>
    %446 = arith.mulf %445, %444 : vector<1x8x27xf32>
    %447 = arith.subf %443, %446 : vector<1x8x27xf32>
    %448 = vector.shape_cast %439 : vector<8x27xf32> to vector<1x8x27xf32>
    %449 = vector.broadcast %430 : vector<1x1x27xf32> to vector<1x8x27xf32>
    %450 = arith.mulf %449, %448 : vector<1x8x27xf32>
    %451 = arith.addf %427, %450 : vector<1x8x27xf32>
    %452 = vector.shape_cast %436 : vector<8x27xf32> to vector<1x8x27xf32>
    %453 = vector.broadcast %433 : vector<1x1x27xf32> to vector<1x8x27xf32>
    %454 = arith.mulf %453, %452 : vector<1x8x27xf32>
    %455 = arith.addf %451, %454 : vector<1x8x27xf32>
    %c8_i32_207 = arith.constant 8 : i32
    %c0_208 = arith.constant 0 : index
    %c1_209 = arith.constant 1 : index
    %c0_210 = arith.constant 0 : index
    %c0_211 = arith.constant 0 : index
    %456 = vector.load %arg7[%c0_208, %c1_209, %c0_210, %c0_211] : memref<1x2x8x27xf32, #tpu.memory_space<vmem>>, vector<1x1x8x27xf32>
    %457 = vector.shape_cast %456 : vector<1x1x8x27xf32> to vector<1x8x27xf32>
    %458 = vector.shape_cast %447 : vector<1x8x27xf32> to vector<1x1x8x27xf32>
    tpu.vector_store %arg7[%c0_208, %c1_209, %c0_210, %c0_211], %458 {strides = array<i32>} : memref<1x2x8x27xf32, #tpu.memory_space<vmem>>, vector<1x1x8x27xf32>,
    %c0_212 = arith.constant 0 : index
    %c1_213 = arith.constant 1 : index
    %c0_214 = arith.constant 0 : index
    %c0_215 = arith.constant 0 : index
    %459 = vector.load %arg8[%c0_212, %c1_213, %c0_214, %c0_215] : memref<1x2x8x27xf32, #tpu.memory_space<vmem>>, vector<1x1x8x27xf32>
    %460 = vector.shape_cast %459 : vector<1x1x8x27xf32> to vector<1x8x27xf32>
    %461 = vector.shape_cast %455 : vector<1x8x27xf32> to vector<1x1x8x27xf32>
    tpu.vector_store %arg8[%c0_212, %c1_213, %c0_214, %c0_215], %461 {strides = array<i32>} : memref<1x2x8x27xf32, #tpu.memory_space<vmem>>, vector<1x1x8x27xf32>,
    return
  }
  func.func @transform_0(%arg0: i32, %arg1: i32, %arg2: i32) -> (i32, i32, i32, i32) {
    %c0_i32 = arith.constant 0 : i32
    %c0_i32_0 = arith.constant 0 : i32
    %c0_i32_1 = arith.constant 0 : i32
    return %arg0, %c0_i32, %c0_i32_0, %arg2 : i32, i32, i32, i32
  }
  func.func @transform_1(%arg0: i32, %arg1: i32, %arg2: i32) -> (i32, i32, i32, i32) {
    %c0_i32 = arith.constant 0 : i32
    %c0_i32_0 = arith.constant 0 : i32
    %c0_i32_1 = arith.constant 0 : i32
    return %arg0, %c0_i32, %c0_i32_0, %arg2 : i32, i32, i32, i32
  }
  func.func @transform_2(%arg0: i32, %arg1: i32, %arg2: i32) -> (i32, i32, i32, i32) {
    %c0_i32 = arith.constant 0 : i32
    %c0_i32_0 = arith.constant 0 : i32
    return %arg0, %c0_i32, %arg1, %arg2 : i32, i32, i32, i32
  }
  func.func @transform_3(%arg0: i32, %arg1: i32, %arg2: i32) -> (i32, i32, i32, i32) {
    %c0_i32 = arith.constant 0 : i32
    %c0_i32_0 = arith.constant 0 : i32
    return %arg0, %c0_i32, %arg1, %arg2 : i32, i32, i32, i32
  }
  func.func @transform_4(%arg0: i32, %arg1: i32, %arg2: i32) -> (i32, i32, i32, i32) {
    %c0_i32 = arith.constant 0 : i32
    %c0_i32_0 = arith.constant 0 : i32
    return %arg0, %c0_i32, %arg1, %arg2 : i32, i32, i32, i32
  }
  func.func @transform_5(%arg0: i32, %arg1: i32, %arg2: i32) -> (i32, i32, i32, i32) {
    %c0_i32 = arith.constant 0 : i32
    %c0_i32_0 = arith.constant 0 : i32
    return %arg0, %c0_i32, %arg1, %arg2 : i32, i32, i32, i32
  }
}

module attributes {stable_mosaic.version = 11 : i64} {
  func.func @kernel(%arg0: i32, %arg1: i32, %arg2: memref<1x8x512xf32, #tpu.memory_space<vmem>>, %arg3: memref<8x8xf32, #tpu.memory_space<vmem>>, %arg4: memref<8x1xf32, #tpu.memory_space<vmem>>, %arg5: memref<1x8x512xf32, #tpu.memory_space<vmem>>, %arg6: memref<1x8x512xf32, #tpu.memory_space<vmem>>, %arg7: memref<1x8x512xf32, #tpu.memory_space<vmem>>) attributes {dimension_semantics = [#tpu.dimension_semantics<parallel>, #tpu.dimension_semantics<parallel>], iteration_bounds = array<i64: 2, 1>, scalar_prefetch = 0 : i64, scratch_operands = 0 : i64, tpu.core_type = #tpu.core_type<tc>, window_params = [{transform_indices = @transform_0, window_bounds = array<i64: 1, 8, 512>}, {pipeline_mode = #tpu.pipeline_mode<synchronous>, transform_indices = @transform_1, window_bounds = array<i64: 8, 8>}, {pipeline_mode = #tpu.pipeline_mode<synchronous>, transform_indices = @transform_2, window_bounds = array<i64: 8, 1>}, {transform_indices = @transform_3, window_bounds = array<i64: 1, 8, 512>}, {transform_indices = @transform_4, window_bounds = array<i64: 1, 8, 512>}, {transform_indices = @transform_5, window_bounds = array<i64: 1, 8, 512>}]} {
    %c0 = arith.constant 0 : index
    %c0_0 = arith.constant 0 : index
    %0 = vector.load %arg3[%c0, %c0_0] : memref<8x8xf32, #tpu.memory_space<vmem>>, vector<8x8xf32>
    %c0_1 = arith.constant 0 : index
    %c0_2 = arith.constant 0 : index
    %c0_3 = arith.constant 0 : index
    %1 = vector.load %arg2[%c0_1, %c0_2, %c0_3] : memref<1x8x512xf32, #tpu.memory_space<vmem>>, vector<1x8x512xf32>
    %2 = vector.shape_cast %1 : vector<1x8x512xf32> to vector<8x512xf32>
    %cst = arith.constant dense<0.000000e+00> : vector<8x512xf32>
    %3 = tpu.matmul %0, %2, %cst {dimension_numbers = #tpu.dot_dimension_numbers<[1], [0], [0], [1], [0, 0, 1, 1], [], []>} : vector<8x8xf32>, vector<8x512xf32>, vector<8x512xf32> -> vector<8x512xf32>
    %c0_4 = arith.constant 0 : index
    %c0_5 = arith.constant 0 : index
    %4 = vector.load %arg4[%c0_4, %c0_5] : memref<8x1xf32, #tpu.memory_space<vmem>>, vector<8x1xf32>
    %5 = vector.broadcast %4 : vector<8x1xf32> to vector<8x512xf32>
    %6 = arith.addf %3, %5 : vector<8x512xf32>
    %c0_6 = arith.constant 0 : index
    %c0_7 = arith.constant 0 : index
    %c0_8 = arith.constant 0 : index
    %7 = vector.load %arg5[%c0_6, %c0_7, %c0_8] : memref<1x8x512xf32, #tpu.memory_space<vmem>>, vector<1x8x512xf32>
    %8 = vector.shape_cast %7 : vector<1x8x512xf32> to vector<8x512xf32>
    %9 = arith.addf %6, %8 : vector<8x512xf32>
    %c0_9 = arith.constant 0 : index
    %c0_10 = arith.constant 0 : index
    %c0_11 = arith.constant 0 : index
    %10 = vector.load %arg6[%c0_9, %c0_10, %c0_11] : memref<1x8x512xf32, #tpu.memory_space<vmem>>, vector<1x8x512xf32>
    %11 = vector.shape_cast %10 : vector<1x8x512xf32> to vector<8x512xf32>
    %12 = arith.addf %9, %11 : vector<8x512xf32>
    %cst_12 = arith.constant 5.000000e-01 : f32
    %13 = vector.broadcast %cst_12 : f32 to vector<8x512xf32>
    %14 = arith.mulf %13, %12 : vector<8x512xf32>
    %cst_13 = arith.constant 4.471500e-02 : f32
    %15 = vector.broadcast %cst_13 : f32 to vector<8x512xf32>
    %16 = arith.mulf %15, %12 : vector<8x512xf32>
    %17 = arith.mulf %16, %12 : vector<8x512xf32>
    %18 = arith.mulf %17, %12 : vector<8x512xf32>
    %19 = arith.addf %12, %18 : vector<8x512xf32>
    %cst_14 = arith.constant 0.797884583 : f32
    %20 = vector.broadcast %cst_14 : f32 to vector<8x512xf32>
    %21 = arith.mulf %20, %19 : vector<8x512xf32>
    %22 = math.tanh %21 : vector<8x512xf32>
    %cst_15 = arith.constant 1.000000e+00 : f32
    %23 = vector.broadcast %cst_15 : f32 to vector<8x512xf32>
    %24 = arith.addf %23, %22 : vector<8x512xf32>
    %25 = arith.mulf %14, %24 : vector<8x512xf32>
    %c0_16 = arith.constant 0 : index
    %c0_17 = arith.constant 0 : index
    %c0_18 = arith.constant 0 : index
    %26 = vector.load %arg7[%c0_16, %c0_17, %c0_18] : memref<1x8x512xf32, #tpu.memory_space<vmem>>, vector<1x8x512xf32>
    %27 = vector.shape_cast %26 : vector<1x8x512xf32> to vector<8x512xf32>
    %28 = vector.shape_cast %25 : vector<8x512xf32> to vector<1x8x512xf32>
    tpu.vector_store %arg7[%c0_16, %c0_17, %c0_18], %28 {strides = array<i32>} : memref<1x8x512xf32, #tpu.memory_space<vmem>>, vector<1x8x512xf32>,
    return
  }
  func.func @transform_0(%arg0: i32, %arg1: i32) -> (i32, i32, i32) {
    %c0_i32 = arith.constant 0 : i32
    %c0_i32_0 = arith.constant 0 : i32
    return %arg0, %c0_i32, %arg1 : i32, i32, i32
  }
  func.func @transform_1(%arg0: i32, %arg1: i32) -> (i32, i32) {
    %c0_i32 = arith.constant 0 : i32
    %c0_i32_0 = arith.constant 0 : i32
    %c0_i32_1 = arith.constant 0 : i32
    return %c0_i32, %c0_i32_0 : i32, i32
  }
  func.func @transform_2(%arg0: i32, %arg1: i32) -> (i32, i32) {
    %c0_i32 = arith.constant 0 : i32
    %c0_i32_0 = arith.constant 0 : i32
    %c0_i32_1 = arith.constant 0 : i32
    return %c0_i32, %c0_i32_0 : i32, i32
  }
  func.func @transform_3(%arg0: i32, %arg1: i32) -> (i32, i32, i32) {
    %c0_i32 = arith.constant 0 : i32
    %c0_i32_0 = arith.constant 0 : i32
    return %arg0, %c0_i32, %arg1 : i32, i32, i32
  }
  func.func @transform_4(%arg0: i32, %arg1: i32) -> (i32, i32, i32) {
    %c0_i32 = arith.constant 0 : i32
    %c0_i32_0 = arith.constant 0 : i32
    return %arg0, %c0_i32, %arg1 : i32, i32, i32
  }
  func.func @transform_5(%arg0: i32, %arg1: i32) -> (i32, i32, i32) {
    %c0_i32 = arith.constant 0 : i32
    %c0_i32_0 = arith.constant 0 : i32
    return %arg0, %c0_i32, %arg1 : i32, i32, i32
  }
}

</mosaic_0001>

<bundles_post_ra>
// kernel: _lambda_.7
= control target key start
LH: loop header
LB: loop body
LE: loop exit
PB: predicated region body
PF: predicated region fallthrough
CT: control target
= control target key end

     0   :  { %s408_s9 = smov 0   ;;  %s410_s10 = smov 0   ;;  %s449_s0 = inlined_call_operand.vmem [shape: f32[2,32,128], index: 0, kind: input, shape index: {}]   ;;  %s450_s1 = inlined_call_operand.vmem [shape: f32[2,1,128], index: 1, kind: output, shape index: {0}]   ;;  %s451_s2 = inlined_call_operand.vmem [shape: f32[2,1,128], index: 2, kind: output, shape index: {1}]  }
   0x1   :  { %s412_s11 = smov 0  }
   0x2 LB: > { %s25_s12 = sadd.s32 1, %s386_s10  ;;  %p329_p0 = scmp.ge.s32.totalorder %s390_s11, 1  ;;  %s390_s11 = sphi %s412_s11, %s13_s11   ;;  %s386_s10 = sphi %s410_s10, %s453_s10   ;;  %s382_s9 = sphi %s408_s9, %s452_s9  }
   0x3   : > { %p27_p1 = scmp.ge.s32.totalorder %s25_s12, 2  ;;  %p134_p2 = scmp.lt.s32.totalorder %s390_s11, 3 }
   0x5   : > { %s455_s12 = smov (%p27_p1, %s25_s12), 0  ;;  %p135_p3 = pnand %p329_p0, %p134_p2 }
   0x6   : > { %p162_p4 = scmp.lt.s32.totalorder (!%p135_p3), %s382_s9, 1  ;;  %s392_s26 = smov (!%p135_p3), 0.0  }
   0x7   : > { %138 = sbr.rel (%p135_p3) target bundleno = 303 (0x12f), region = 24 }
   0xe   : > { %s457_s9 = smov (!%p162_p4, %s382_s9), 1 }
   0xf   : > { %s334_s13 = sshll.u32 %s457_s9, 5  ;;  %s173_s20 = scalar_lea.vmem %s450_s1, %s457_s9 }
  0x10   : > { %s169_s16 = scalar_lea.vmem %s449_s0, %s334_s13  ;;  %s176_s3 = scalar_lea.vmem %s451_s2, %s457_s9 }
  0x11   : > { %v183_v0 = vld [vmem:[%s169_s16] sm:$0xff]  ;;  %v184_v1 = vld [vmem:[%s169_s16 + $0x8] sm:$0xff]  ;;  %v185_v2 = vld [vmem:[%s169_s16 + $0x10] sm:$0xff] }
  0x12   : > { %v188_v3 = vadd.f32 %v184_v1, %v183_v0  ;;  %v194_v4 = vmul.f32 %v183_v0, %v183_v0  ;;  %v195_v5 = vmul.f32 %v184_v1, %v184_v1  ;;  %v196_v6 = vmul.f32 %v185_v2, %v185_v2  ;;  %v186_v7 = vld [vmem:[%s169_s16 + $0x18] sm:$0xff] }
  0x13   : > { %v197_v9 = vmul.f32 %v186_v7, %v186_v7 }
  0x14   : > { %v189_v8 = vadd.f32 %v188_v3, %v185_v2  ;;  %v198_v10 = vadd.f32 %v195_v5, %v194_v4 }
  0x16   : > { %v190_v11 = vadd.f32 %v189_v8, %v186_v7  ;;  %v199_v12 = vadd.f32 %v198_v10, %v196_v6 }
  0x18   : > { %207 = vadd.xlane.f32.xlu0 %v190_v11  ;;  %v200_v13 = vadd.f32 %v199_v12, %v197_v9 }
  0x1c   : > { %218 = vadd.xlane.f32.xlu0 %v200_v13 }
  0xa5   : > { %v208_v14 = vpop.xlane.xlu0 %207 }
  0xa6   : > { %v209_v15 = vrot.slane %v208_v14, 4 }
  0xa8   : > { %v210_v16 = vadd.f32 %v209_v15, %v208_v14 }
  0xa9   : > { %v219_v17 = vpop.xlane.xlu0 %218 }
  0xaa   : > { %v211_v18 = vrot.slane %v210_v16, 2  ;;  %v220_v19 = vrot.slane %v219_v17, 4 }
  0xac   : > { %v221_v20 = vadd.f32 %v220_v19, %v219_v17  ;;  %v212_v21 = vadd.f32 %v211_v18, %v210_v16 }
  0xae   : > { %v222_v22 = vrot.slane %v221_v20, 2  ;;  %v213_v23 = vrot.slane %v212_v21, 1 }
  0xb0   : > { %v223_v24 = vadd.f32 %v222_v22, %v221_v20  ;;  %v214_v25 = vadd.f32 %v213_v23, %v212_v21 }
  0xb2   : > { %335 = vpush %v214_v25  ;;  %v224_v26 = vrot.slane %v223_v24, 1 }
  0xb4   : > { %v225_v27 = vadd.f32 %v224_v26, %v223_v24 }
  0xb6   : > { %337 = vpush %v225_v27 }
  0xe3   : > { %s336_s17 = spop %335 }
  0xe4   : > { %s216_s21 = smul.f32 0.00024414063, %s336_s17 }
  0xe6   : > { %v235_v28 = vstv %s216_s21  ;;  %s228_s22 = smul.f32 %s216_s21, %s216_s21 }
  0xe7   : > { %236 = vst [vmem:[%s173_s20] sm:$0x1] %v235_v28  ;;  %s338_s23 = spop %337 }
  0xe8   : > { %s227_s24 = smul.f32 0.00024414063, %s338_s23 }
  0xea   : > { %s229_s25 = ssub.f32 %s227_s24, %s228_s22 }
  0xec   : > { %s230_s27 = smax.f32 %s392_s26, %s229_s25 }
  0xed   : > { %s231_s28 = sadd.f32 1e-05, %s230_s27 }
  0xef   : > { %v232_v29 = vstv %s231_s28 }
  0xf0   : > { %366 = vrsqrt.f32 %v232_v29 }
  0xfa   : > { %v367_v30 = vpop.eup %366 }
  0xfb   : > { %339 = vpush %v367_v30 }
 0x12c   : > { %s340_s4 = spop %339 }
 0x12d   : > { %v237_v31 = vstv %s340_s4 }
 0x12e   : > { %238 = vst [vmem:[%s176_s3] sm:$0x1] %v237_v31 }
 0x12f PF: > { %s13_s11 = sadd.s32 1, %s390_s11   ;;  %s452_s9 = smov %s386_s10 }
 0x130   : > { %p10_p5 = scmp.ge.s32.totalorder %s13_s11, 4   ;;  %s453_s10 = smov %s455_s12 }
 0x132   :  { %12 = sbr.rel (!%p10_p5) target bundleno = 2 (0x2), region = 74 }

// kernel: _lambda_.8
= control target key start
LH: loop header
LB: loop body
LE: loop exit
PB: predicated region body
PF: predicated region fallthrough
CT: control target
= control target key end

     0   :  { %s537_s18 = smov 0   ;;  %s539_s19 = smov 0   ;;  %s587_s0 = inlined_call_operand.vmem [shape: f32[2,8,512], index: 0, kind: input, shape index: {}]   ;;  %s588_s1 = inlined_call_operand.vmem [shape: f32[2,1,128], index: 1, kind: input, shape index: {}]   ;;  %s589_s2 = inlined_call_operand.vmem [shape: f32[2,1,128], index: 2, kind: input, shape index: {}]   ;;  %s590_s3 = inlined_call_operand.vmem [shape: f32[8,1], index: 3, kind: input, shape index: {}]   ;;  %s591_s4 = inlined_call_operand.vmem [shape: f32[8,1], index: 4, kind: input, shape index: {}]   ;;  %s592_s5 = inlined_call_operand.vmem [shape: f32[2,8,512], index: 5, kind: output, shape index: {}]  }
   0x1   :  { %s541_s20 = smov 0  }
   0x2 LB: > { %s27_s21 = sadd.s32 1, %s500_s19  ;;  %p443_p0 = scmp.ge.s32.totalorder %s504_s20, 1  ;;  %s504_s20 = sphi %s541_s20, %s15_s20   ;;  %s500_s19 = sphi %s539_s19, %s594_s19   ;;  %s496_s18 = sphi %s537_s18, %s593_s18  }
   0x3   : > { %p29_p1 = scmp.ge.s32.totalorder %s27_s21, 2  ;;  %p224_p2 = scmp.lt.s32.totalorder %s504_s20, 3 }
   0x5   : > { %s596_s21 = smov (%p29_p1, %s27_s21), 0  ;;  %p225_p3 = pnand %p443_p0, %p224_p2 }
   0x6   : > { %v310_v0 = vld [vmem:[%s590_s3] sm:$0xff] (!%p225_p3)  ;;  %p267_p4 = scmp.lt.s32.totalorder (!%p225_p3), %s496_s18, 1  ;;  %v506_v1 = vmov (!%p225_p3), 0  }
   0x7   : > { %228 = sbr.rel (%p225_p3) target bundleno = 144 (0x90), region = 40  ;;  %481 = vset.pattern.permute.xlu0 (!%p225_p3), %v506_v1  ;;  %v320_v2 = vld [vmem:[%s591_s4] sm:$0xff] (!%p225_p3) }
   0x8   : > { %313 = vperm.xlu0 (!%p225_p3), %481, %v310_v0  }
   0xc   : > { %323 = vperm.xlu0 (!%p225_p3), %481, %v320_v2  }
   0xe   : > { %s598_s18 = smov (!%p267_p4, %s496_s18), 1 }
   0xf   : > { %s278_s28 = scalar_lea.vmem %s588_s1, %s598_s18  ;;  %s281_s6 = scalar_lea.vmem %s589_s2, %s598_s18 }
  0x10   : > { %v292_v3 = vld [vmem:[%s278_s28] sm:$0x1]  ;;  %s450_s7 = sshll.u32 %s598_s18, 5 }
  0x11   : > { %452 = vpush %v292_v3  ;;  %v294_v4 = vld [vmem:[%s281_s6] sm:$0x1]  ;;  %s274_s10 = scalar_lea.vmem %s587_s0, %s450_s7  ;;  %s290_s15 = scalar_lea.vmem %s592_s5, %s450_s7 }
  0x12   : > { %454 = vpush %v294_v4  ;;  %v296_v5 = vld [vmem:[%s274_s10] sm:$0xff]  ;;  %v297_v6 = vld [vmem:[%s274_s10 + $0x8] sm:$0xff]  ;;  %v298_v7 = vld [vmem:[%s274_s10 + $0x10] sm:$0xff] }
  0x13   : > { %v299_v8 = vld [vmem:[%s274_s10 + $0x18] sm:$0xff] }
  0x42   : > { %s453_s11 = spop %452 }
  0x43   : > { %v300_v9 = vstv %s453_s11  ;;  %s455_s12 = spop %454 }
  0x44   : > { %v301_v10 = vsub.f32 %v296_v5, %v300_v9  ;;  %v302_v11 = vsub.f32 %v297_v6, %v300_v9  ;;  %v303_v12 = vsub.f32 %v298_v7, %v300_v9  ;;  %v304_v13 = vsub.f32 %v299_v8, %v300_v9 }
  0x45   : > { %v305_v14 = vstv %s455_s12 }
  0x46   : > { %v306_v15 = vmul.f32 %v305_v14, %v301_v10  ;;  %v307_v16 = vmul.f32 %v305_v14, %v302_v11  ;;  %v308_v17 = vmul.f32 %v305_v14, %v303_v12  ;;  %v309_v18 = vmul.f32 %v305_v14, %v304_v13 }
  0x87   : > { %v314_v19 = vpop.permute.xlu0 %313 }
  0x88   : > { %v316_v20 = vmul.f32 %v314_v19, %v306_v15  ;;  %v317_v21 = vmul.f32 %v314_v19, %v307_v16  ;;  %v318_v22 = vmul.f32 %v314_v19, %v308_v17  ;;  %v319_v23 = vmul.f32 %v314_v19, %v309_v18 }
  0x8b   : > { %v324_v24 = vpop.permute.xlu0 %323 }
  0x8c   : > { %v326_v25 = vadd.f32 %v324_v24, %v316_v20  ;;  %v327_v26 = vadd.f32 %v324_v24, %v317_v21  ;;  %v328_v27 = vadd.f32 %v324_v24, %v318_v22  ;;  %v329_v28 = vadd.f32 %v324_v24, %v319_v23 }
  0x8e   : > { %330 = vst [vmem:[%s290_s15] sm:$0xff] %v326_v25  ;;  %331 = vst [vmem:[%s290_s15 + $0x8] sm:$0xff] %v327_v26 }
  0x8f   : > { %332 = vst [vmem:[%s290_s15 + $0x10] sm:$0xff] %v328_v27  ;;  %333 = vst [vmem:[%s290_s15 + $0x18] sm:$0xff] %v329_v28 }
  0x90 PF: > { %s15_s20 = sadd.s32 1, %s504_s20   ;;  %s593_s18 = smov %s500_s19 }
  0x91   : > { %p12_p5 = scmp.ge.s32.totalorder %s15_s20, 4   ;;  %s594_s19 = smov %s596_s21 }
  0x93   :  { %14 = sbr.rel (!%p12_p5) target bundleno = 2 (0x2), region = 76 }

// kernel: _lambda_.9
= control target key start
LH: loop header
LB: loop body
LE: loop exit
PB: predicated region body
PF: predicated region fallthrough
CT: control target
= control target key end

     0   :  { %s1176_s18 = smov 0   ;;  %s1178_s19 = smov 0   ;;  %s1391_s0 = inlined_call_operand.vmem [shape: f32[4,8,2,8], index: 0, kind: input, shape index: {}]   ;;  %s1392_s1 = inlined_call_operand.vmem [shape: f32[4,8,2,8], index: 1, kind: input, shape index: {}]   ;;  %s1393_s2 = inlined_call_operand.vmem [shape: f32[4,8,8,8], index: 2, kind: input, shape index: {}]   ;;  %s1394_s3 = inlined_call_operand.vmem [shape: f32[4,8,8,8], index: 3, kind: input, shape index: {}]   ;;  %s1395_s4 = inlined_call_operand.vmem [shape: f32[4,2,8,8], index: 4, kind: output, shape index: {0}]   ;;  %s1396_s5 = inlined_call_operand.vmem [shape: f32[4,2,8,8], index: 5, kind: output, shape index: {1}]  }
   0x1   :  { %s1180_s20 = smov 0  }
   0x2 LB: > { %s35_s21 = sadd.s32 1, %s1140_s19  ;;  %p987_p0 = scmp.ge.s32.totalorder %s1144_s20, 1  ;;  %s1144_s20 = sphi %s1180_s20, %s16_s20   ;;  %s1140_s19 = sphi %s1178_s19, %s1398_s19   ;;  %s1136_s18 = sphi %s1176_s18, %s1397_s18  }
   0x3   : > { %p37_p1 = scmp.ge.s32.totalorder %s35_s21, 4  ;;  %p277_p2 = scmp.lt.s32.totalorder %s1144_s20, 5 }
   0x5   : > { %s1400_s21 = smov (%p37_p1, %s35_s21), 0  ;;  %p278_p3 = pnand %p987_p0, %p277_p2 }
   0x6   : > { %p355_p4 = scmp.lt.s32.totalorder (!%p278_p3), %s1136_s18, 3  ;;  %vm603_vm0 = vcmask (!%p278_p3), 64512  }
   0x7   : > { %281 = sbr.rel (%p278_p3) target bundleno = 64 (0x40), region = 36 }
   0xe   : > { %s1402_s18 = smov (!%p355_p4, %s1136_s18), 3 }
   0xf   : > { %s1194_s22 = sshll.u32 %s1402_s18, 4  ;;  %s1094_s23 = sshll.u32 %s1402_s18, 6 }
  0x10   : > { %s1200_s26 = scalar_lea.vmem %s1391_s0, %s1194_s22  ;;  %s1206_s29 = scalar_lea.vmem %s1392_s1, %s1194_s22 }
  0x11   : > { %s1211_s7 = scalar_lea.vmem %s1393_s2, %s1094_s23  ;;  %s1216_s10 = scalar_lea.vmem %s1394_s3, %s1094_s23  ;;  %v1000_v0 = vld [vmem:[%s1200_s26] ss:$0 sm:$0xff]  ;;  %v1006_v2 = vld [vmem:[%s1200_s26 + $0x2] ss:$0 sm:$0xff]  ;;  %v1012_v13 = vld [vmem:[%s1200_s26 + $0x4] ss:$0 sm:$0xff] }
  0x12   : > { %v1001_v1 = vld [vmem:[%s1206_s29] ss:$0 sm:$0xff]  ;;  %v1007_v5 = vld [vmem:[%s1206_s29 + $0x2] ss:$0 sm:$0xff]  ;;  %v1231_v8 = vld [vmem:[%s1211_s7 + $0x8] sm:$0xff]  ;;  %s1351_s13 = scalar_lea.vmem %s1395_s4, %s1194_s22  ;;  %s1357_s16 = scalar_lea.vmem %s1396_s5, %s1194_s22 }
  0x13   : > { %v1222_v3 = vld [vmem:[%s1211_s7] sm:$0xff]  ;;  %v1234_v9 = vld [vmem:[%s1216_s10 + $0x8] sm:$0xff]  ;;  %v447_v12 = vmul.f32 %v1006_v2, %v1231_v8  ;;  %v1241_v14 = vld [vmem:[%s1211_s7 + $0x10] sm:$0xff]  ;;  %v457_v20 = vmul.f32 %v1007_v5, %v1231_v8 }
  0x14   : > { %v1225_v4 = vld [vmem:[%s1216_s10] sm:$0xff]  ;;  %v423_v6 = vmul.f32 %v1000_v0, %v1222_v3  ;;  %v433_v11 = vmul.f32 %v1001_v1, %v1222_v3  ;;  %v1244_v15 = vld [vmem:[%s1216_s10 + $0x10] sm:$0xff]  ;;  %v455_v16 = vmul.f32 %v1006_v2, %v1234_v9  ;;  %v453_v18 = vmul.f32 %v1007_v5, %v1234_v9  ;;  %v1254_v27 = vld [vmem:[%s1211_s7 + $0x18] sm:$0xff] }
  0x15   : > { %v429_v7 = vmul.f32 %v1001_v1, %v1225_v4  ;;  %v431_v10 = vmul.f32 %v1000_v0, %v1225_v4  ;;  %v1013_v21 = vld [vmem:[%s1206_s29 + $0x4] ss:$0 sm:$0xff]  ;;  %v471_v23 = vmul.f32 %v1012_v13, %v1241_v14  ;;  %v479_v25 = vmul.f32 %v1012_v13, %v1244_v15  ;;  %v1018_v26 = vld [vmem:[%s1200_s26 + $0x6] ss:$0 sm:$0xff]  ;;  %v1257_v28 = vld [vmem:[%s1216_s10 + $0x18] sm:$0xff] }
  0x16   : > { %v477_v30 = vmul.f32 %v1013_v21, %v1244_v15  ;;  %v1019_v31 = vld [vmem:[%s1206_s29 + $0x6] ss:$0 sm:$0xff]  ;;  %v481_v33 = vmul.f32 %v1013_v21, %v1241_v14  ;;  %v1024_v34 = vld [vmem:[%s1200_s26 + $0x8] ss:$0 sm:$0xff]  ;;  %v495_v36 = vmul.f32 %v1018_v26, %v1254_v27  ;;  %v503_v40 = vmul.f32 %v1018_v26, %v1257_v28  ;;  %v1044_v41 = vld [vmem:[%s1200_s26 + $0x1] ss:$0 sm:$0xff] }
  0x17   : > { %v430_v17 = vsub.f32 %v423_v6, %v429_v7  ;;  %v434_v19 = vadd.f32 %v433_v11, %v431_v10  ;;  %v1265_v37 = vld [vmem:[%s1211_s7 + $0x20] sm:$0xff]  ;;  %v501_v42 = vmul.f32 %v1019_v31, %v1257_v28  ;;  %v505_v43 = vmul.f32 %v1019_v31, %v1254_v27  ;;  %v1025_v48 = vld [vmem:[%s1206_s29 + $0x8] ss:$0 sm:$0xff]  ;;  %v1030_v53 = vld [vmem:[%s1200_s26 + $0xa] ss:$0 sm:$0xff] }
  0x18   : > { %v1268_v38 = vld [vmem:[%s1216_s10 + $0x20] sm:$0xff]  ;;  %v614_v50 = vmul.f32 %v1044_v41, %v1222_v3  ;;  %v519_v52 = vmul.f32 %v1024_v34, %v1265_v37  ;;  %v1286_v58 = vld [vmem:[%s1211_s7 + $0x28] sm:$0xff]  ;;  %v529_v1 = vmul.f32 %v1025_v48, %v1265_v37 }
  0x19   : > { %v448_v22 = vadd.f32 %v447_v12, %v430_v17  ;;  %v456_v24 = vadd.f32 %v455_v16, %v434_v19  ;;  %v1045_v44 = vld [vmem:[%s1206_s29 + $0x1] ss:$0 sm:$0xff]  ;;  %v1050_v45 = vld [vmem:[%s1200_s26 + $0x3] ss:$0 sm:$0xff]  ;;  %v527_v54 = vmul.f32 %v1024_v34, %v1268_v38  ;;  %v1056_v56 = vld [vmem:[%s1200_s26 + $0x5] ss:$0 sm:$0xff]  ;;  %v525_v0 = vmul.f32 %v1025_v48, %v1268_v38 }
  0x1a   : > { %v1051_v46 = vld [vmem:[%s1206_s29 + $0x3] ss:$0 sm:$0xff]  ;;  %v620_v51 = vmul.f32 %v1045_v44, %v1225_v4  ;;  %v634_v55 = vmul.f32 %v1050_v45, %v1231_v8  ;;  %v1289_v59 = vld [vmem:[%s1216_s10 + $0x28] sm:$0xff]  ;;  %v1057_v63 = vld [vmem:[%s1206_s29 + $0x5] ss:$0 sm:$0xff]  ;;  %v654_v10 = vmul.f32 %v1056_v56, %v1241_v14  ;;  %v543_v11 = vmul.f32 %v1030_v53, %v1286_v58 }
  0x1b   : > { %v454_v29 = vsub.f32 %v448_v22, %v453_v18  ;;  %v458_v32 = vadd.f32 %v457_v20, %v456_v24  ;;  %v640_v62 = vmul.f32 %v1051_v46, %v1234_v9  ;;  %v1031_v5 = vld [vmem:[%s1206_s29 + $0xa] ss:$0 sm:$0xff]  ;;  %v551_v12 = vmul.f32 %v1030_v53, %v1289_v59  ;;  %v1062_v16 = vld [vmem:[%s1200_s26 + $0x7] ss:$0 sm:$0xff]  ;;  %v1036_v18 = vld [vmem:[%s1200_s26 + $0xc] ss:$0 sm:$0xff] }
  0x1c   : > { %v621_v61 = vsub.f32 %v614_v50, %v620_v51  ;;  %v660_v13 = vmul.f32 %v1057_v63, %v1244_v15  ;;  %v1303_v19 = vld [vmem:[%s1211_s7 + $0x30] sm:$0xff]  ;;  %v549_v24 = vmul.f32 %v1031_v5, %v1289_v59  ;;  %v1063_v26 = vld [vmem:[%s1206_s29 + $0x7] ss:$0 sm:$0xff]  ;;  %v1069_v50 = vld [vmem:[%s1206_s29 + $0x9] ss:$0 sm:$0xff] }
  0x1d   : > { %v472_v35 = vadd.f32 %v471_v23, %v454_v29  ;;  %v480_v39 = vadd.f32 %v479_v25, %v458_v32  ;;  %v1306_v20 = vld [vmem:[%s1216_s10 + $0x30] sm:$0xff]  ;;  %v622_v23 = vmul.f32 %v1044_v41, %v1225_v4  ;;  %v553_v25 = vmul.f32 %v1031_v5, %v1286_v58  ;;  %v1037_v32 = vld [vmem:[%s1206_s29 + $0xc] ss:$0 sm:$0xff] }
  0x1e   : > { %v635_v7 = vadd.f32 %v634_v55, %v621_v61  ;;  %v624_v29 = vmul.f32 %v1045_v44, %v1222_v3  ;;  %v567_v4 = vmul.f32 %v1036_v18, %v1303_v19  ;;  %v644_v41 = vmul.f32 %v1051_v46, %v1231_v8  ;;  %v1042_v3 = vld [vmem:[%s1200_s26 + $0xe] ss:$0 sm:$0xff]  ;;  %v1074_v61 = vld [vmem:[%s1200_s26 + $0xb] ss:$0 sm:$0xff] }
  0x1f   : > { %v478_v47 = vsub.f32 %v472_v35, %v477_v30  ;;  %v482_v49 = vadd.f32 %v481_v33, %v480_v39  ;;  %v642_v30 = vmul.f32 %v1050_v45, %v1234_v9  ;;  %v674_v35 = vmul.f32 %v1062_v16, %v1254_v27  ;;  %v1068_v39 = vld [vmem:[%s1200_s26 + $0x9] ss:$0 sm:$0xff]  ;;  %v1325_v9 = vld [vmem:[%s1216_s10 + $0x38] sm:$0xff]  ;;  %v1043_v46 = vld [vmem:[%s1206_s29 + $0xe] ss:$0 sm:$0xff] }
  0x20   : > { %v641_v22 = vsub.f32 %v635_v7, %v640_v62  ;;  %v573_v48 = vmul.f32 %v1037_v32, %v1306_v20  ;;  %v694_v55 = vmul.f32 %v1068_v39, %v1265_v37  ;;  %v1075_v7 = vld [vmem:[%s1206_s29 + $0xb] ss:$0 sm:$0xff] }
  0x21   : > { %v496_v57 = vadd.f32 %v495_v36, %v478_v47  ;;  %v504_v60 = vadd.f32 %v503_v40, %v482_v49  ;;  %v575_v36 = vmul.f32 %v1036_v18, %v1306_v20  ;;  %v625_v40 = vadd.f32 %v624_v29, %v622_v23 }
  0x22   : > { %v655_v34 = vadd.f32 %v654_v10, %v641_v22  ;;  %v680_v47 = vmul.f32 %v1063_v26, %v1257_v28  ;;  %v577_v49 = vmul.f32 %v1037_v32, %v1303_v19  ;;  %v1086_v32 = vld [vmem:[%s1200_s26 + $0xf] ss:$0 sm:$0xff] }
  0x23   : > { %v502_v2 = vsub.f32 %v496_v57, %v501_v42  ;;  %v506_v6 = vadd.f32 %v505_v43, %v504_v60  ;;  %v1322_v43 = vld [vmem:[%s1211_s7 + $0x38] sm:$0xff]  ;;  %v643_v51 = vadd.f32 %v642_v30, %v625_v40  ;;  %v599_v60 = vmul.f32 %v1042_v3, %v1325_v9 }
  0x24   : > { %v661_v45 = vsub.f32 %v655_v34, %v660_v13  ;;  %v591_v57 = vmul.f32 %v1042_v3, %v1322_v43  ;;  %v704_v34 = vmul.f32 %v1069_v50, %v1265_v37  ;;  %v724_v3 = vmul.f32 %v1075_v7, %v1286_v58 }
  0x25   : > { %v520_v17 = vadd.f32 %v519_v52, %v502_v2  ;;  %v528_v21 = vadd.f32 %v527_v54, %v506_v6  ;;  %v662_v52 = vmul.f32 %v1056_v56, %v1244_v15  ;;  %v645_v62 = vadd.f32 %v644_v41, %v643_v51 }
  0x26   : > { %v675_v54 = vadd.f32 %v674_v35, %v661_v45  ;;  %v700_v15 = vmul.f32 %v1069_v50, %v1268_v38  ;;  %v597_v56 = vmul.f32 %v1043_v46, %v1325_v9  ;;  %v601_v6 = vmul.f32 %v1043_v46, %v1322_v43 }
  0x27   : > { %v526_v31 = vsub.f32 %v520_v17, %v525_v0  ;;  %v530_v33 = vadd.f32 %v529_v1, %v528_v21  ;;  %v664_v0 = vmul.f32 %v1057_v63, %v1241_v14  ;;  %v663_v10 = vadd.f32 %v662_v52, %v645_v62  ;;  %v1080_v63 = vld [vmem:[%s1200_s26 + $0xd] ss:$0 sm:$0xff] }
  0x28   : > { %v681_v5 = vsub.f32 %v675_v54, %v680_v47  ;;  %v714_v14 = vmul.f32 %v1074_v61, %v1286_v58  ;;  %v684_v21 = vmul.f32 %v1063_v26, %v1254_v27  ;;  %v1081_v27 = vld [vmem:[%s1206_s29 + $0xd] ss:$0 sm:$0xff]  ;;  %v754_v41 = vmul.f32 %v1086_v32, %v1322_v43 }
  0x29   : > { %v544_v42 = vadd.f32 %v543_v11, %v526_v31  ;;  %v552_v44 = vadd.f32 %v551_v12, %v530_v33  ;;  %v682_v11 = vmul.f32 %v1062_v16, %v1257_v28  ;;  %v665_v18 = vadd.f32 %v664_v0, %v663_v10 }
  0x2a   : > { %v695_v17 = vadd.f32 %v694_v55, %v681_v5  ;;  %v702_v16 = vmul.f32 %v1068_v39, %v1268_v38  ;;  %v734_v31 = vmul.f32 %v1080_v63, %v1303_v19  ;;  %v722_v38 = vmul.f32 %v1074_v61, %v1289_v59 }
  0x2b   : > { %v550_v8 = vsub.f32 %v544_v42, %v549_v24  ;;  %v554_v53 = vadd.f32 %v553_v25, %v552_v44  ;;  %v720_v25 = vmul.f32 %v1075_v7, %v1289_v59  ;;  %v683_v28 = vadd.f32 %v682_v11, %v665_v18 }
  0x2c   : > { %v701_v24 = vsub.f32 %v695_v17, %v700_v15  ;;  %v742_v47 = vmul.f32 %v1080_v63, %v1306_v20  ;;  %v744_v50 = vmul.f32 %v1081_v27, %v1303_v19  ;;  %v762_v59 = vmul.f32 %v1086_v32, %v1325_v9 }
  0x2d   : > { %v568_v1 = vadd.f32 %v567_v4, %v550_v8  ;;  %v576_v2 = vadd.f32 %v575_v36, %v554_v53  ;;  %v685_v33 = vadd.f32 %v684_v21, %v683_v28  ;;  %v740_v4 = vmul.f32 %v1081_v27, %v1306_v20  ;;  %v1087_v36 = vld [vmem:[%s1206_s29 + $0xf] ss:$0 sm:$0xff] }
  0x2e   : > { %v715_v30 = vadd.f32 %v714_v14, %v701_v24  ;;  %v760_v44 = vmul.f32 %v1087_v36, %v1325_v9  ;;  %v764_v58 = vmul.f32 %v1087_v36, %v1322_v43 }
  0x2f   : > { %v574_v12 = vsub.f32 %v568_v1, %v573_v48  ;;  %v578_v13 = vadd.f32 %v577_v49, %v576_v2  ;;  %v703_v40 = vadd.f32 %v702_v16, %v685_v33 }
  0x30   : > { %v721_v35 = vsub.f32 %v715_v30, %v720_v25 }
  0x31   : > { %v592_v22 = vadd.f32 %v591_v57, %v574_v12  ;;  %v600_v23 = vadd.f32 %v599_v60, %v578_v13  ;;  %v705_v42 = vadd.f32 %v704_v34, %v703_v40 }
  0x32   : > { %v735_v39 = vadd.f32 %v734_v31, %v721_v35 }
  0x33   : > { %v598_v26 = vsub.f32 %v592_v22, %v597_v56  ;;  %v602_v29 = vadd.f32 %v601_v6, %v600_v23  ;;  %v723_v45 = vadd.f32 %v722_v38, %v705_v42 }
  0x34   : > { %v741_v37 = vsub.f32 %v735_v39, %v740_v4 }
  0x35   : > { %604 = vst.msk [vmem:[%s1351_s13] sm:$0xff] %vm603_vm0, %v598_v26  ;;  %605 = vst.msk [vmem:[%s1357_s16] sm:$0xff] %vm603_vm0, %v602_v29  ;;  %v725_v49 = vadd.f32 %v724_v3, %v723_v45 }
  0x36   : > { %v755_v48 = vadd.f32 %v754_v41, %v741_v37 }
  0x37   : > { %v743_v52 = vadd.f32 %v742_v47, %v725_v49 }
  0x38   : > { %v761_v51 = vsub.f32 %v755_v48, %v760_v44 }
  0x39   : > { %v745_v8 = vadd.f32 %v744_v50, %v743_v52 }
  0x3a   : > { %1088 = vst.msk [vmem:[%s1351_s13 + $0x8] sm:$0xff] %vm603_vm0, %v761_v51 }
  0x3b   : > { %v763_v46 = vadd.f32 %v762_v59, %v745_v8 }
  0x3d   : > { %v765_v53 = vadd.f32 %v764_v58, %v763_v46 }
  0x3f   : > { %1089 = vst.msk [vmem:[%s1357_s16 + $0x8] sm:$0xff] %vm603_vm0, %v765_v53 }
  0x40 PF: > { %s16_s20 = sadd.s32 1, %s1144_s20   ;;  %s1397_s18 = smov %s1140_s19 }
  0x41   : > { %p13_p5 = scmp.ge.s32.totalorder %s16_s20, 6   ;;  %s1398_s19 = smov %s1400_s21 }
  0x43   :  { %15 = sbr.rel (!%p13_p5) target bundleno = 2 (0x2), region = 117 }

// kernel: reverse.4
= control target key start
LH: loop header
LB: loop body
LE: loop exit
PB: predicated region body
PF: predicated region fallthrough
CT: control target
= control target key end

     0   :  { %s584_s0 = inlined_call_operand.vmem [shape: f32[2,8,8,8,3], index: 0, kind: input, shape index: {}]   ;;  %s585_s1 = inlined_call_operand.vmem [shape: f32[2,8,8,8,3], index: 1, kind: output, shape index: {}]  }
   0x1   :  { %v192_v0 = vld [vmem:[%s584_s0 + $0x10] sm:$0xff]  ;;  %v195_v2 = vld [vmem:[%s584_s0 + $0x28] sm:$0xff]  ;;  %v199_v4 = vld [vmem:[%s584_s0 + $0x40] sm:$0xff] }
   0x2   :  { %v193_v1 = vld [vmem:[%s584_s0 + $0xd0] sm:$0xff]  ;;  %4 = vst [vmem:[%s585_s1] sm:$0xff] %v192_v0  ;;  %196 = vst [vmem:[%s585_s1 + $0x18] sm:$0xff] %v195_v2  ;;  %v197_v3 = vld [vmem:[%s584_s0 + $0xe8] sm:$0xff] }
   0x3   :  { %194 = vst [vmem:[%s585_s1 + $0xc0] sm:$0xff] %v193_v1  ;;  %v201_v5 = vld [vmem:[%s584_s0 + $0x100] sm:$0xff]  ;;  %198 = vst [vmem:[%s585_s1 + $0xd8] sm:$0xff] %v197_v3  ;;  %v203_v6 = vld [vmem:[%s584_s0 + $0x58] sm:$0xff] }
   0x4   :  { %200 = vst [vmem:[%s585_s1 + $0x30] sm:$0xff] %v199_v4  ;;  %202 = vst [vmem:[%s585_s1 + $0xf0] sm:$0xff] %v201_v5  ;;  %v205_v7 = vld [vmem:[%s584_s0 + $0x118] sm:$0xff]  ;;  %v207_v8 = vld [vmem:[%s584_s0 + $0x70] sm:$0xff] }
   0x5   :  { %204 = vst [vmem:[%s585_s1 + $0x48] sm:$0xff] %v203_v6  ;;  %206 = vst [vmem:[%s585_s1 + $0x108] sm:$0xff] %v205_v7  ;;  %v209_v9 = vld [vmem:[%s584_s0 + $0x130] sm:$0xff]  ;;  %v211_v10 = vld [vmem:[%s584_s0 + $0x88] sm:$0xff] }
   0x6   :  { %208 = vst [vmem:[%s585_s1 + $0x60] sm:$0xff] %v207_v8  ;;  %v213_v11 = vld [vmem:[%s584_s0 + $0x148] sm:$0xff]  ;;  %210 = vst [vmem:[%s585_s1 + $0x120] sm:$0xff] %v209_v9  ;;  %v215_v12 = vld [vmem:[%s584_s0 + $0xa0] sm:$0xff] }
   0x7   :  { %212 = vst [vmem:[%s585_s1 + $0x78] sm:$0xff] %v211_v10  ;;  %214 = vst [vmem:[%s585_s1 + $0x138] sm:$0xff] %v213_v11  ;;  %v217_v13 = vld [vmem:[%s584_s0 + $0x160] sm:$0xff]  ;;  %v219_v14 = vld [vmem:[%s584_s0 + $0xb8] sm:$0xff] }
   0x8   :  { %216 = vst [vmem:[%s585_s1 + $0x90] sm:$0xff] %v215_v12  ;;  %218 = vst [vmem:[%s585_s1 + $0x150] sm:$0xff] %v217_v13  ;;  %v221_v15 = vld [vmem:[%s584_s0 + $0x178] sm:$0xff]  ;;  %v223_v16 = vld [vmem:[%s584_s0 + $0x8] sm:$0xff] }
   0x9   :  { %220 = vst [vmem:[%s585_s1 + $0xa8] sm:$0xff] %v219_v14  ;;  %v225_v17 = vld [vmem:[%s584_s0 + $0xc8] sm:$0xff]  ;;  %222 = vst [vmem:[%s585_s1 + $0x168] sm:$0xff] %v221_v15  ;;  %v227_v18 = vld [vmem:[%s584_s0 + $0x20] sm:$0xff] }
   0xa   :  { %224 = vst [vmem:[%s585_s1 + $0x8] sm:$0xff] %v223_v16  ;;  %226 = vst [vmem:[%s585_s1 + $0xc8] sm:$0xff] %v225_v17  ;;  %v229_v19 = vld [vmem:[%s584_s0 + $0xe0] sm:$0xff]  ;;  %v231_v20 = vld [vmem:[%s584_s0 + $0x38] sm:$0xff] }
   0xb   :  { %228 = vst [vmem:[%s585_s1 + $0x20] sm:$0xff] %v227_v18  ;;  %230 = vst [vmem:[%s585_s1 + $0xe0] sm:$0xff] %v229_v19  ;;  %v233_v21 = vld [vmem:[%s584_s0 + $0xf8] sm:$0xff]  ;;  %v235_v22 = vld [vmem:[%s584_s0 + $0x50] sm:$0xff] }
   0xc   :  { %232 = vst [vmem:[%s585_s1 + $0x38] sm:$0xff] %v231_v20  ;;  %v237_v23 = vld [vmem:[%s584_s0 + $0x110] sm:$0xff]  ;;  %234 = vst [vmem:[%s585_s1 + $0xf8] sm:$0xff] %v233_v21  ;;  %v239_v24 = vld [vmem:[%s584_s0 + $0x68] sm:$0xff] }
   0xd   :  { %236 = vst [vmem:[%s585_s1 + $0x50] sm:$0xff] %v235_v22  ;;  %238 = vst [vmem:[%s585_s1 + $0x110] sm:$0xff] %v237_v23  ;;  %v241_v25 = vld [vmem:[%s584_s0 + $0x128] sm:$0xff]  ;;  %v243_v26 = vld [vmem:[%s584_s0 + $0x80] sm:$0xff] }
   0xe   :  { %240 = vst [vmem:[%s585_s1 + $0x68] sm:$0xff] %v239_v24  ;;  %242 = vst [vmem:[%s585_s1 + $0x128] sm:$0xff] %v241_v25  ;;  %v245_v27 = vld [vmem:[%s584_s0 + $0x140] sm:$0xff]  ;;  %v247_v28 = vld [vmem:[%s584_s0 + $0x98] sm:$0xff] }
   0xf   :  { %244 = vst [vmem:[%s585_s1 + $0x80] sm:$0xff] %v243_v26  ;;  %v249_v29 = vld [vmem:[%s584_s0 + $0x158] sm:$0xff]  ;;  %246 = vst [vmem:[%s585_s1 + $0x140] sm:$0xff] %v245_v27  ;;  %v251_v30 = vld [vmem:[%s584_s0 + $0xb0] sm:$0xff] }
  0x10   :  { %248 = vst [vmem:[%s585_s1 + $0x98] sm:$0xff] %v247_v28  ;;  %250 = vst [vmem:[%s585_s1 + $0x158] sm:$0xff] %v249_v29  ;;  %v253_v31 = vld [vmem:[%s584_s0 + $0x170] sm:$0xff]  ;;  %v129_v32 = vld [vmem:[%s584_s0] sm:$0xff] }
  0x11   :  { %252 = vst [vmem:[%s585_s1 + $0xb0] sm:$0xff] %v251_v30  ;;  %254 = vst [vmem:[%s585_s1 + $0x170] sm:$0xff] %v253_v31  ;;  %v256_v33 = vld [vmem:[%s584_s0 + $0xc0] sm:$0xff]  ;;  %v258_v34 = vld [vmem:[%s584_s0 + $0x18] sm:$0xff] }
  0x12   :  { %255 = vst [vmem:[%s585_s1 + $0x10] sm:$0xff] %v129_v32  ;;  %v260_v35 = vld [vmem:[%s584_s0 + $0xd8] sm:$0xff]  ;;  %257 = vst [vmem:[%s585_s1 + $0xd0] sm:$0xff] %v256_v33  ;;  %v262_v36 = vld [vmem:[%s584_s0 + $0x30] sm:$0xff] }
  0x13   :  { %259 = vst [vmem:[%s585_s1 + $0x28] sm:$0xff] %v258_v34  ;;  %261 = vst [vmem:[%s585_s1 + $0xe8] sm:$0xff] %v260_v35  ;;  %v264_v37 = vld [vmem:[%s584_s0 + $0xf0] sm:$0xff]  ;;  %v266_v38 = vld [vmem:[%s584_s0 + $0x48] sm:$0xff] }
  0x14   :  { %263 = vst [vmem:[%s585_s1 + $0x40] sm:$0xff] %v262_v36  ;;  %265 = vst [vmem:[%s585_s1 + $0x100] sm:$0xff] %v264_v37  ;;  %v268_v39 = vld [vmem:[%s584_s0 + $0x108] sm:$0xff]  ;;  %v270_v40 = vld [vmem:[%s584_s0 + $0x60] sm:$0xff] }
  0x15   :  { %267 = vst [vmem:[%s585_s1 + $0x58] sm:$0xff] %v266_v38  ;;  %v272_v41 = vld [vmem:[%s584_s0 + $0x120] sm:$0xff]  ;;  %269 = vst [vmem:[%s585_s1 + $0x118] sm:$0xff] %v268_v39  ;;  %v274_v42 = vld [vmem:[%s584_s0 + $0x78] sm:$0xff] }
  0x16   :  { %271 = vst [vmem:[%s585_s1 + $0x70] sm:$0xff] %v270_v40  ;;  %273 = vst [vmem:[%s585_s1 + $0x130] sm:$0xff] %v272_v41  ;;  %v276_v43 = vld [vmem:[%s584_s0 + $0x138] sm:$0xff]  ;;  %v278_v44 = vld [vmem:[%s584_s0 + $0x90] sm:$0xff] }
  0x17   :  { %275 = vst [vmem:[%s585_s1 + $0x88] sm:$0xff] %v274_v42  ;;  %277 = vst [vmem:[%s585_s1 + $0x148] sm:$0xff] %v276_v43  ;;  %v280_v45 = vld [vmem:[%s584_s0 + $0x150] sm:$0xff]  ;;  %v282_v46 = vld [vmem:[%s584_s0 + $0xa8] sm:$0xff] }
  0x18   :  { %279 = vst [vmem:[%s585_s1 + $0xa0] sm:$0xff] %v278_v44  ;;  %v284_v47 = vld [vmem:[%s584_s0 + $0x168] sm:$0xff]  ;;  %281 = vst [vmem:[%s585_s1 + $0x160] sm:$0xff] %v280_v45 }
  0x19   :  { %283 = vst [vmem:[%s585_s1 + $0xb8] sm:$0xff] %v282_v46  ;;  %285 = vst [vmem:[%s585_s1 + $0x178] sm:$0xff] %v284_v47 }

// kernel: _lambda_.10
= control target key start
LH: loop header
LB: loop body
LE: loop exit
PB: predicated region body
PF: predicated region fallthrough
CT: control target
= control target key end

     0   :  { %s993_s24 = smov 0   ;;  %s995_s25 = smov 0   ;;  %s1059_s0 = inlined_call_operand.vmem [shape: f32[2,8,512], index: 0, kind: input, shape index: {}]   ;;  %s1060_s1 = inlined_call_operand.vmem [shape: f32[8,8], index: 1, kind: input, shape index: {}]   ;;  %s1061_s2 = inlined_call_operand.vmem [shape: f32[8,1], index: 2, kind: input, shape index: {}]   ;;  %s1062_s3 = inlined_call_operand.vmem [shape: f32[2,8,512], index: 3, kind: input, shape index: {}]   ;;  %s1063_s4 = inlined_call_operand.vmem [shape: f32[2,8,512], index: 4, kind: input, shape index: {}]   ;;  %s1064_s5 = inlined_call_operand.vmem [shape: f32[2,8,512], index: 5, kind: output, shape index: {0}]   ;;  %s1065_s6 = inlined_call_operand.vmem [shape: f32[2,1,128], index: 6, kind: output, shape index: {1}]   ;;  %s1066_s7 = inlined_call_operand.vmem [shape: f32[2,1,128], index: 7, kind: output, shape index: {2}]  }
   0x1   :  { %s997_s26 = smov 0  }
   0x2 LB: > { %s30_s27 = sadd.s32 1, %s944_s25  ;;  %p861_p0 = scmp.ge.s32.totalorder %s948_s26, 1  ;;  %s948_s26 = sphi %s997_s26, %s18_s26   ;;  %s944_s25 = sphi %s995_s25, %s1068_s25   ;;  %s940_s24 = sphi %s993_s24, %s1067_s24  }
   0x3   : > { %p32_p1 = scmp.ge.s32.totalorder %s30_s27, 2  ;;  %p297_p2 = scmp.lt.s32.totalorder %s948_s26, 3 }
   0x5   : > { %s1070_s27 = smov (%p32_p1, %s30_s27), 0  ;;  %p298_p3 = pnand %p861_p0, %p297_p2 }
   0x6   : > { %p362_p4 = scmp.lt.s32.totalorder (!%p298_p3), %s940_s24, 1  ;;  %vm411_vm0 = vcmask (!%p298_p3), 0   ;;  %v950_v0 = vmov (!%p298_p3), 0.0   ;;  %v419_v1 = vld [vmem:[%s1061_s2] sm:$0xff] (!%p298_p3)  ;;  %v951_v2 = vmov (!%p298_p3), 0   ;;  %vm425_vm1 = vcmask (!%p298_p3), 64512  }
   0x7   : > { %301 = sbr.rel (%p298_p3) target bundleno = 609 (0x261), region = 40  ;;  %412 = vst.msk [vmem:[#allocation2] sm:$0x1] (!%p298_p3), %vm411_vm0, %v950_v0  ;;  %413 = vst.msk [vmem:[#allocation3] sm:$0x1] (!%p298_p3), %vm411_vm0, %v950_v0  ;;  %493 = vmatprep.mubr.f32.mxu0 (!%p298_p3), %v950_v0  ;;  %564 = vmatprep.mubr.f32.mxu1 (!%p298_p3), %v950_v0  ;;  %v414_v3 = vld [vmem:[%s1060_s1] sm:$0xff] (!%p298_p3) }
   0x8   : > { %915 = vset.pattern.permute.xlu0 (!%p298_p3), %v951_v2  ;;  %s952_s14 = smov (!%p298_p3), 0.0  }
   0x9   : > { %422 = vperm.xlu0 (!%p298_p3), %915, %v419_v1  }
   0xe   : > { %s1072_s24 = smov (!%p362_p4, %s940_s24), 1 }
   0xf   : > { %s1019_s30 = sshll.u32 %s1072_s24, 5  ;;  %s403_s8 = scalar_lea.vmem %s1065_s6, %s1072_s24 }
  0x10   : > { %s369_s10 = scalar_lea.vmem %s1059_s0, %s1019_s30  ;;  %s379_s15 = scalar_lea.vmem %s1062_s3, %s1019_s30 }
  0x11   : > { %v416_v4 = vld [vmem:[%s369_s10 + $0x8] sm:$0xff]  ;;  %v418_v5 = vld [vmem:[%s369_s10 + $0x18] sm:$0xff]  ;;  %v415_v6 = vld [vmem:[%s369_s10] sm:$0xff]  ;;  %s389_s18 = scalar_lea.vmem %s1063_s4, %s1019_s30  ;;  %s399_s21 = scalar_lea.vmem %s1064_s5, %s1019_s30 }
  0x12   : > { %429 = vmatprep.subr.mxu0 %v416_v4  ;;  %500 = vmatprep.subr.mxu1 %v418_v5  ;;  %v417_v7 = vld [vmem:[%s369_s10 + $0x10] sm:$0xff]  ;;  %v571_v10 = vld [vmem:[%s379_s15] sm:$0xff]  ;;  %v572_v16 = vld [vmem:[%s379_s15 + $0x8] sm:$0xff]  ;;  %s406_s19 = scalar_lea.vmem %s1066_s7, %s1072_s24 }
  0x13   : > { %430 = vmatpush1.msra.mxu0 %v415_v6  ;;  %501 = vmatpush1.msra.mxu1 %v417_v7  ;;  %v573_v12 = vld [vmem:[%s379_s15 + $0x10] sm:$0xff]  ;;  %v574_v18 = vld [vmem:[%s379_s15 + $0x18] sm:$0xff]  ;;  %v579_v19 = vld [vmem:[%s389_s18] sm:$0xff] }
  0x14   : > { %870 = vmatmul.mubr.msk.f32.vlgmr.msra.gmra.mrb[0].mxu0 %vm425_vm1, %v414_v3  ;;  %871 = vmatmul.mubr.msk.f32.vlgmr.msra.gmra.mrb[0].mxu1 %vm425_vm1, %v414_v3  ;;  %v581_v20 = vld [vmem:[%s389_s18 + $0x10] sm:$0xff]  ;;  %v580_v25 = vld [vmem:[%s389_s18 + $0x8] sm:$0xff]  ;;  %v582_v26 = vld [vmem:[%s389_s18 + $0x18] sm:$0xff] }
  0x88   : > { %v423_v8 = vpop.permute.xlu0 %422 }
  0xe7   : > { %v495_v9 = vpop.f32.mrb[0].mxu0  ;;  %v566_v11 = vpop.f32.mrb[0].mxu1 }
  0xe8   : > { %v496_v13 = vadd.f32 %v495_v9, %v423_v8  ;;  %v567_v14 = vadd.f32 %v566_v11, %v423_v8  ;;  %v497_v15 = vpop.f32.mrb[1].mxu0  ;;  %v568_v17 = vpop.f32.mrb[1].mxu1 }
  0xe9   : > { %v498_v21 = vadd.f32 %v497_v15, %v423_v8  ;;  %v569_v22 = vadd.f32 %v568_v17, %v423_v8 }
  0xea   : > { %v575_v23 = vadd.f32 %v571_v10, %v496_v13  ;;  %v577_v24 = vadd.f32 %v573_v12, %v567_v14 }
  0xeb   : > { %v576_v27 = vadd.f32 %v572_v16, %v498_v21  ;;  %v578_v28 = vadd.f32 %v574_v18, %v569_v22 }
  0xec   : > { %v583_v29 = vadd.f32 %v579_v19, %v575_v23  ;;  %v585_v30 = vadd.f32 %v581_v20, %v577_v24 }
  0xed   : > { %v584_v31 = vadd.f32 %v580_v25, %v576_v27  ;;  %v586_v32 = vadd.f32 %v582_v26, %v578_v28 }
  0xee   : > { %v591_v33 = vmul.f32 0.044715, %v583_v29  ;;  %v593_v34 = vmul.f32 0.044715, %v585_v30  ;;  %v587_v55 = vmul.f32 0.5, %v583_v29  ;;  %v589_v61 = vmul.f32 0.5, %v585_v30 }
  0xef   : > { %v592_v35 = vmul.f32 0.044715, %v584_v31  ;;  %v594_v36 = vmul.f32 0.044715, %v586_v32  ;;  %v588_v58 = vmul.f32 0.5, %v584_v31  ;;  %v590_v0 = vmul.f32 0.5, %v586_v32 }
  0xf0   : > { %v595_v37 = vmul.f32 %v591_v33, %v583_v29  ;;  %v597_v38 = vmul.f32 %v593_v34, %v585_v30 }
  0xf1   : > { %v596_v39 = vmul.f32 %v592_v35, %v584_v31  ;;  %v598_v40 = vmul.f32 %v594_v36, %v586_v32 }
  0xf2   : > { %v599_v41 = vmul.f32 %v595_v37, %v583_v29  ;;  %v601_v42 = vmul.f32 %v597_v38, %v585_v30 }
  0xf3   : > { %v600_v43 = vmul.f32 %v596_v39, %v584_v31  ;;  %v602_v44 = vmul.f32 %v598_v40, %v586_v32 }
  0xf4   : > { %v603_v45 = vadd.f32 %v599_v41, %v583_v29  ;;  %v605_v46 = vadd.f32 %v601_v42, %v585_v30  ;;  %v627_v29 = vld [vmem:[#allocation2] sm:$0x1] }
  0xf5   : > { %v604_v47 = vadd.f32 %v600_v43, %v584_v31  ;;  %v606_v48 = vadd.f32 %v602_v44, %v586_v32  ;;  %v644_v31 = vld [vmem:[#allocation3] sm:$0x1] }
  0xf6   : > { %v607_v49 = vmul.f32 0.7978846, %v603_v45  ;;  %v609_v50 = vmul.f32 0.7978846, %v605_v46 }
  0xf7   : > { %v608_v51 = vmul.f32 0.7978846, %v604_v47  ;;  %v610_v52 = vmul.f32 0.7978846, %v606_v48 }
  0xf8   : > { %916 = vtanh.f32 %v607_v49 }
  0xf9   : > { %918 = vtanh.f32 %v608_v51 }
  0xfa   : > { %920 = vtanh.f32 %v609_v50 }
  0xfb   : > { %922 = vtanh.f32 %v610_v52 }
 0x102   : > { %v917_v53 = vpop.eup %916 }
 0x103   : > { %v919_v54 = vpop.eup %918  ;;  %v615_v56 = vadd.f32 1.0, %v917_v53 }
 0x104   : > { %v921_v57 = vpop.eup %920  ;;  %v616_v59 = vadd.f32 1.0, %v919_v54 }
 0x105   : > { %v923_v60 = vpop.eup %922  ;;  %v617_v62 = vadd.f32 1.0, %v921_v57  ;;  %v619_v63 = vmul.f32 %v615_v56, %v587_v55 }
 0x106   : > { %v618_v1 = vadd.f32 1.0, %v923_v60  ;;  %v620_v2 = vmul.f32 %v616_v59, %v588_v58 }
 0x107   : > { %v621_v3 = vmul.f32 %v617_v62, %v589_v61  ;;  %623 = vst [vmem:[%s399_s21] sm:$0xff] %v619_v63  ;;  %v645_v4 = vmul.f32 %v619_v63, %v619_v63 }
 0x108   : > { %v622_v5 = vmul.f32 %v618_v1, %v590_v0  ;;  %624 = vst [vmem:[%s399_s21 + $0x8] sm:$0xff] %v620_v2  ;;  %v628_v6 = vadd.f32 %v620_v2, %v619_v63  ;;  %v646_v7 = vmul.f32 %v620_v2, %v620_v2 }
 0x109   : > { %625 = vst [vmem:[%s399_s21 + $0x10] sm:$0xff] %v621_v3  ;;  %v647_v9 = vmul.f32 %v621_v3, %v621_v3 }
 0x10a   : > { %626 = vst [vmem:[%s399_s21 + $0x18] sm:$0xff] %v622_v5  ;;  %v629_v8 = vadd.f32 %v628_v6, %v621_v3  ;;  %v649_v10 = vadd.f32 %v646_v7, %v645_v4  ;;  %v648_v12 = vmul.f32 %v622_v5, %v622_v5 }
 0x10c   : > { %v630_v11 = vadd.f32 %v629_v8, %v622_v5  ;;  %v650_v13 = vadd.f32 %v649_v10, %v647_v9 }
 0x10e   : > { %631 = vadd.xlane.f32.xlu0 %v630_v11  ;;  %v651_v14 = vadd.f32 %v650_v13, %v648_v12 }
 0x110   : > { %652 = vadd.xlane.f32.xlu1 %v651_v14 }
 0x19b   : > { %v632_v15 = vpop.xlane.xlu0 %631 }
 0x19c   : > { %v633_v16 = vrot.slane %v632_v15, 4 }
 0x19d   : > { %v653_v17 = vpop.xlane.xlu1 %652 }
 0x19e   : > { %v634_v18 = vadd.f32 %v633_v16, %v632_v15  ;;  %v654_v19 = vrot.slane %v653_v17, 4 }
 0x1a0   : > { %v635_v20 = vrot.slane %v634_v18, 2  ;;  %v655_v21 = vadd.f32 %v654_v19, %v653_v17 }
 0x1a2   : > { %v656_v22 = vrot.slane %v655_v21, 2  ;;  %v636_v23 = vadd.f32 %v635_v20, %v634_v18 }
 0x1a4   : > { %v657_v24 = vadd.f32 %v656_v22, %v655_v21  ;;  %v637_v25 = vrot.slane %v636_v23, 1 }
 0x1a6   : > { %v638_v26 = vadd.f32 %v637_v25, %v636_v23  ;;  %v658_v27 = vrot.slane %v657_v24, 1 }
 0x1a8   : > { %878 = vpush %v638_v26  ;;  %v659_v28 = vadd.f32 %v658_v27, %v657_v24 }
 0x1aa   : > { %880 = vpush %v659_v28 }
 0x1d9   : > { %s879_s22 = spop %878 }
 0x1da   : > { %v640_v30 = vstv %s879_s22 }
 0x1db   : > { %v641_v32 = vadd.f32 %v640_v30, %v627_v29  ;;  %s881_s23 = spop %880 }
 0x1dc   : > { %v661_v33 = vstv %s881_s23 }
 0x1dd   : > { %643 = vst.msk [vmem:[#allocation2] sm:$0x1] %vm411_vm0, %v641_v32  ;;  %v662_v34 = vadd.f32 %v661_v33, %v644_v31 }
 0x1df   : > { %663 = vst.msk [vmem:[#allocation3] sm:$0x1] %vm411_vm0, %v662_v34 }
 0x1e4   : > { %v667_v35 = vld [vmem:[#allocation2] sm:$0x1] }
 0x1e5   : > { %882 = vpush %v667_v35 }
 0x1e6   : > { %v670_v36 = vld [vmem:[#allocation3] sm:$0x1] }
 0x1e7   : > { %884 = vpush %v670_v36 }
 0x216   : > { %s883_s28 = spop %882 }
 0x217   : > { %s669_s9 = smul.f32 0.00024414063, %s883_s28 }
 0x218   : > { %s885_s10 = spop %884 }
 0x219   : > { %s673_s11 = smul.f32 %s669_s9, %s669_s9  ;;  %v680_v37 = vstv %s669_s9 }
 0x21a   : > { %681 = vst [vmem:[%s403_s8] sm:$0x1] %v680_v37  ;;  %s672_s12 = smul.f32 0.00024414063, %s885_s10 }
 0x21c   : > { %s674_s13 = ssub.f32 %s672_s12, %s673_s11 }
 0x21e   : > { %s675_s15 = smax.f32 %s952_s14, %s674_s13 }
 0x21f   : > { %s676_s16 = sadd.f32 1e-05, %s675_s15 }
 0x221   : > { %v677_v38 = vstv %s676_s16 }
 0x222   : > { %924 = vrsqrt.f32 %v677_v38 }
 0x22c   : > { %v925_v39 = vpop.eup %924 }
 0x22d   : > { %886 = vpush %v925_v39 }
 0x25e   : > { %s887_s20 = spop %886 }
 0x25f   : > { %v682_v40 = vstv %s887_s20 }
 0x260   : > { %683 = vst [vmem:[%s406_s19] sm:$0x1] %v682_v40 }
 0x261 PF: > { %s18_s26 = sadd.s32 1, %s948_s26   ;;  %s1067_s24 = smov %s944_s25 }
 0x262   : > { %p15_p5 = scmp.ge.s32.totalorder %s18_s26, 4   ;;  %s1068_s25 = smov %s1070_s27 }
 0x264   :  { %17 = sbr.rel (!%p15_p5) target bundleno = 2 (0x2), region = 108 }

// kernel: _lambda_.12
= control target key start
LH: loop header
LB: loop body
LE: loop exit
PB: predicated region body
PF: predicated region fallthrough
CT: control target
= control target key end

     0   :  { %s1176_s18 = smov 0   ;;  %s1178_s19 = smov 0   ;;  %s1391_s0 = inlined_call_operand.vmem [shape: f32[4,8,2,27], index: 0, kind: input, shape index: {}]   ;;  %s1392_s1 = inlined_call_operand.vmem [shape: f32[4,8,2,27], index: 1, kind: input, shape index: {}]   ;;  %s1393_s2 = inlined_call_operand.vmem [shape: f32[4,8,8,27], index: 2, kind: input, shape index: {}]   ;;  %s1394_s3 = inlined_call_operand.vmem [shape: f32[4,8,8,27], index: 3, kind: input, shape index: {}]   ;;  %s1395_s4 = inlined_call_operand.vmem [shape: f32[4,2,8,27], index: 4, kind: output, shape index: {0}]   ;;  %s1396_s5 = inlined_call_operand.vmem [shape: f32[4,2,8,27], index: 5, kind: output, shape index: {1}]  }
   0x1   :  { %s1180_s20 = smov 0  }
   0x2 LB: > { %s35_s21 = sadd.s32 1, %s1140_s19  ;;  %p987_p0 = scmp.ge.s32.totalorder %s1144_s20, 1  ;;  %s1144_s20 = sphi %s1180_s20, %s16_s20   ;;  %s1140_s19 = sphi %s1178_s19, %s1398_s19   ;;  %s1136_s18 = sphi %s1176_s18, %s1397_s18  }
   0x3   : > { %p37_p1 = scmp.ge.s32.totalorder %s35_s21, 4  ;;  %p277_p2 = scmp.lt.s32.totalorder %s1144_s20, 5 }
   0x5   : > { %s1400_s21 = smov (%p37_p1, %s35_s21), 0  ;;  %p278_p3 = pnand %p987_p0, %p277_p2 }
   0x6   : > { %p355_p4 = scmp.lt.s32.totalorder (!%p278_p3), %s1136_s18, 3  ;;  %vm603_vm0 = vcmask (!%p278_p3), 220160  }
   0x7   : > { %281 = sbr.rel (%p278_p3) target bundleno = 64 (0x40), region = 36 }
   0xe   : > { %s1402_s18 = smov (!%p355_p4, %s1136_s18), 3 }
   0xf   : > { %s1194_s22 = sshll.u32 %s1402_s18, 4  ;;  %s1094_s23 = sshll.u32 %s1402_s18, 6 }
  0x10   : > { %s1200_s26 = scalar_lea.vmem %s1391_s0, %s1194_s22  ;;  %s1206_s29 = scalar_lea.vmem %s1392_s1, %s1194_s22 }
  0x11   : > { %s1211_s7 = scalar_lea.vmem %s1393_s2, %s1094_s23  ;;  %s1216_s10 = scalar_lea.vmem %s1394_s3, %s1094_s23  ;;  %v1000_v0 = vld [vmem:[%s1200_s26] ss:$0 sm:$0xff]  ;;  %v1006_v2 = vld [vmem:[%s1200_s26 + $0x2] ss:$0 sm:$0xff]  ;;  %v1012_v13 = vld [vmem:[%s1200_s26 + $0x4] ss:$0 sm:$0xff] }
  0x12   : > { %v1001_v1 = vld [vmem:[%s1206_s29] ss:$0 sm:$0xff]  ;;  %v1007_v5 = vld [vmem:[%s1206_s29 + $0x2] ss:$0 sm:$0xff]  ;;  %v1231_v8 = vld [vmem:[%s1211_s7 + $0x8] sm:$0xff]  ;;  %s1351_s13 = scalar_lea.vmem %s1395_s4, %s1194_s22  ;;  %s1357_s16 = scalar_lea.vmem %s1396_s5, %s1194_s22 }
  0x13   : > { %v1222_v3 = vld [vmem:[%s1211_s7] sm:$0xff]  ;;  %v1234_v9 = vld [vmem:[%s1216_s10 + $0x8] sm:$0xff]  ;;  %v447_v12 = vmul.f32 %v1006_v2, %v1231_v8  ;;  %v1241_v14 = vld [vmem:[%s1211_s7 + $0x10] sm:$0xff]  ;;  %v457_v20 = vmul.f32 %v1007_v5, %v1231_v8 }
  0x14   : > { %v1225_v4 = vld [vmem:[%s1216_s10] sm:$0xff]  ;;  %v423_v6 = vmul.f32 %v1000_v0, %v1222_v3  ;;  %v433_v11 = vmul.f32 %v1001_v1, %v1222_v3  ;;  %v1244_v15 = vld [vmem:[%s1216_s10 + $0x10] sm:$0xff]  ;;  %v455_v16 = vmul.f32 %v1006_v2, %v1234_v9  ;;  %v453_v18 = vmul.f32 %v1007_v5, %v1234_v9  ;;  %v1254_v27 = vld [vmem:[%s1211_s7 + $0x18] sm:$0xff] }
  0x15   : > { %v429_v7 = vmul.f32 %v1001_v1, %v1225_v4  ;;  %v431_v10 = vmul.f32 %v1000_v0, %v1225_v4  ;;  %v1013_v21 = vld [vmem:[%s1206_s29 + $0x4] ss:$0 sm:$0xff]  ;;  %v471_v23 = vmul.f32 %v1012_v13, %v1241_v14  ;;  %v479_v25 = vmul.f32 %v1012_v13, %v1244_v15  ;;  %v1018_v26 = vld [vmem:[%s1200_s26 + $0x6] ss:$0 sm:$0xff]  ;;  %v1257_v28 = vld [vmem:[%s1216_s10 + $0x18] sm:$0xff] }
  0x16   : > { %v477_v30 = vmul.f32 %v1013_v21, %v1244_v15  ;;  %v1019_v31 = vld [vmem:[%s1206_s29 + $0x6] ss:$0 sm:$0xff]  ;;  %v481_v33 = vmul.f32 %v1013_v21, %v1241_v14  ;;  %v1024_v34 = vld [vmem:[%s1200_s26 + $0x8] ss:$0 sm:$0xff]  ;;  %v495_v36 = vmul.f32 %v1018_v26, %v1254_v27  ;;  %v503_v40 = vmul.f32 %v1018_v26, %v1257_v28  ;;  %v1044_v41 = vld [vmem:[%s1200_s26 + $0x1] ss:$0 sm:$0xff] }
  0x17   : > { %v430_v17 = vsub.f32 %v423_v6, %v429_v7  ;;  %v434_v19 = vadd.f32 %v433_v11, %v431_v10  ;;  %v1265_v37 = vld [vmem:[%s1211_s7 + $0x20] sm:$0xff]  ;;  %v501_v42 = vmul.f32 %v1019_v31, %v1257_v28  ;;  %v505_v43 = vmul.f32 %v1019_v31, %v1254_v27  ;;  %v1025_v48 = vld [vmem:[%s1206_s29 + $0x8] ss:$0 sm:$0xff]  ;;  %v1030_v53 = vld [vmem:[%s1200_s26 + $0xa] ss:$0 sm:$0xff] }
  0x18   : > { %v1268_v38 = vld [vmem:[%s1216_s10 + $0x20] sm:$0xff]  ;;  %v614_v50 = vmul.f32 %v1044_v41, %v1222_v3  ;;  %v519_v52 = vmul.f32 %v1024_v34, %v1265_v37  ;;  %v1286_v58 = vld [vmem:[%s1211_s7 + $0x28] sm:$0xff]  ;;  %v529_v1 = vmul.f32 %v1025_v48, %v1265_v37 }
  0x19   : > { %v448_v22 = vadd.f32 %v447_v12, %v430_v17  ;;  %v456_v24 = vadd.f32 %v455_v16, %v434_v19  ;;  %v1045_v44 = vld [vmem:[%s1206_s29 + $0x1] ss:$0 sm:$0xff]  ;;  %v1050_v45 = vld [vmem:[%s1200_s26 + $0x3] ss:$0 sm:$0xff]  ;;  %v527_v54 = vmul.f32 %v1024_v34, %v1268_v38  ;;  %v1056_v56 = vld [vmem:[%s1200_s26 + $0x5] ss:$0 sm:$0xff]  ;;  %v525_v0 = vmul.f32 %v1025_v48, %v1268_v38 }
  0x1a   : > { %v1051_v46 = vld [vmem:[%s1206_s29 + $0x3] ss:$0 sm:$0xff]  ;;  %v620_v51 = vmul.f32 %v1045_v44, %v1225_v4  ;;  %v634_v55 = vmul.f32 %v1050_v45, %v1231_v8  ;;  %v1289_v59 = vld [vmem:[%s1216_s10 + $0x28] sm:$0xff]  ;;  %v1057_v63 = vld [vmem:[%s1206_s29 + $0x5] ss:$0 sm:$0xff]  ;;  %v654_v10 = vmul.f32 %v1056_v56, %v1241_v14  ;;  %v543_v11 = vmul.f32 %v1030_v53, %v1286_v58 }
  0x1b   : > { %v454_v29 = vsub.f32 %v448_v22, %v453_v18  ;;  %v458_v32 = vadd.f32 %v457_v20, %v456_v24  ;;  %v640_v62 = vmul.f32 %v1051_v46, %v1234_v9  ;;  %v1031_v5 = vld [vmem:[%s1206_s29 + $0xa] ss:$0 sm:$0xff]  ;;  %v551_v12 = vmul.f32 %v1030_v53, %v1289_v59  ;;  %v1062_v16 = vld [vmem:[%s1200_s26 + $0x7] ss:$0 sm:$0xff]  ;;  %v1036_v18 = vld [vmem:[%s1200_s26 + $0xc] ss:$0 sm:$0xff] }
  0x1c   : > { %v621_v61 = vsub.f32 %v614_v50, %v620_v51  ;;  %v660_v13 = vmul.f32 %v1057_v63, %v1244_v15  ;;  %v1303_v19 = vld [vmem:[%s1211_s7 + $0x30] sm:$0xff]  ;;  %v549_v24 = vmul.f32 %v1031_v5, %v1289_v59  ;;  %v1063_v26 = vld [vmem:[%s1206_s29 + $0x7] ss:$0 sm:$0xff]  ;;  %v1069_v50 = vld [vmem:[%s1206_s29 + $0x9] ss:$0 sm:$0xff] }
  0x1d   : > { %v472_v35 = vadd.f32 %v471_v23, %v454_v29  ;;  %v480_v39 = vadd.f32 %v479_v25, %v458_v32  ;;  %v1306_v20 = vld [vmem:[%s1216_s10 + $0x30] sm:$0xff]  ;;  %v622_v23 = vmul.f32 %v1044_v41, %v1225_v4  ;;  %v553_v25 = vmul.f32 %v1031_v5, %v1286_v58  ;;  %v1037_v32 = vld [vmem:[%s1206_s29 + $0xc] ss:$0 sm:$0xff] }
  0x1e   : > { %v635_v7 = vadd.f32 %v634_v55, %v621_v61  ;;  %v624_v29 = vmul.f32 %v1045_v44, %v1222_v3  ;;  %v567_v4 = vmul.f32 %v1036_v18, %v1303_v19  ;;  %v644_v41 = vmul.f32 %v1051_v46, %v1231_v8  ;;  %v1042_v3 = vld [vmem:[%s1200_s26 + $0xe] ss:$0 sm:$0xff]  ;;  %v1074_v61 = vld [vmem:[%s1200_s26 + $0xb] ss:$0 sm:$0xff] }
  0x1f   : > { %v478_v47 = vsub.f32 %v472_v35, %v477_v30  ;;  %v482_v49 = vadd.f32 %v481_v33, %v480_v39  ;;  %v642_v30 = vmul.f32 %v1050_v45, %v1234_v9  ;;  %v674_v35 = vmul.f32 %v1062_v16, %v1254_v27  ;;  %v1068_v39 = vld [vmem:[%s1200_s26 + $0x9] ss:$0 sm:$0xff]  ;;  %v1325_v9 = vld [vmem:[%s1216_s10 + $0x38] sm:$0xff]  ;;  %v1043_v46 = vld [vmem:[%s1206_s29 + $0xe] ss:$0 sm:$0xff] }
  0x20   : > { %v641_v22 = vsub.f32 %v635_v7, %v640_v62  ;;  %v573_v48 = vmul.f32 %v1037_v32, %v1306_v20  ;;  %v694_v55 = vmul.f32 %v1068_v39, %v1265_v37  ;;  %v1075_v7 = vld [vmem:[%s1206_s29 + $0xb] ss:$0 sm:$0xff] }
  0x21   : > { %v496_v57 = vadd.f32 %v495_v36, %v478_v47  ;;  %v504_v60 = vadd.f32 %v503_v40, %v482_v49  ;;  %v575_v36 = vmul.f32 %v1036_v18, %v1306_v20  ;;  %v625_v40 = vadd.f32 %v624_v29, %v622_v23 }
  0x22   : > { %v655_v34 = vadd.f32 %v654_v10, %v641_v22  ;;  %v680_v47 = vmul.f32 %v1063_v26, %v1257_v28  ;;  %v577_v49 = vmul.f32 %v1037_v32, %v1303_v19  ;;  %v1086_v32 = vld [vmem:[%s1200_s26 + $0xf] ss:$0 sm:$0xff] }
  0x23   : > { %v502_v2 = vsub.f32 %v496_v57, %v501_v42  ;;  %v506_v6 = vadd.f32 %v505_v43, %v504_v60  ;;  %v1322_v43 = vld [vmem:[%s1211_s7 + $0x38] sm:$0xff]  ;;  %v643_v51 = vadd.f32 %v642_v30, %v625_v40  ;;  %v599_v60 = vmul.f32 %v1042_v3, %v1325_v9 }
  0x24   : > { %v661_v45 = vsub.f32 %v655_v34, %v660_v13  ;;  %v591_v57 = vmul.f32 %v1042_v3, %v1322_v43  ;;  %v704_v34 = vmul.f32 %v1069_v50, %v1265_v37  ;;  %v724_v3 = vmul.f32 %v1075_v7, %v1286_v58 }
  0x25   : > { %v520_v17 = vadd.f32 %v519_v52, %v502_v2  ;;  %v528_v21 = vadd.f32 %v527_v54, %v506_v6  ;;  %v662_v52 = vmul.f32 %v1056_v56, %v1244_v15  ;;  %v645_v62 = vadd.f32 %v644_v41, %v643_v51 }
  0x26   : > { %v675_v54 = vadd.f32 %v674_v35, %v661_v45  ;;  %v700_v15 = vmul.f32 %v1069_v50, %v1268_v38  ;;  %v597_v56 = vmul.f32 %v1043_v46, %v1325_v9  ;;  %v601_v6 = vmul.f32 %v1043_v46, %v1322_v43 }
  0x27   : > { %v526_v31 = vsub.f32 %v520_v17, %v525_v0  ;;  %v530_v33 = vadd.f32 %v529_v1, %v528_v21  ;;  %v664_v0 = vmul.f32 %v1057_v63, %v1241_v14  ;;  %v663_v10 = vadd.f32 %v662_v52, %v645_v62  ;;  %v1080_v63 = vld [vmem:[%s1200_s26 + $0xd] ss:$0 sm:$0xff] }
  0x28   : > { %v681_v5 = vsub.f32 %v675_v54, %v680_v47  ;;  %v714_v14 = vmul.f32 %v1074_v61, %v1286_v58  ;;  %v684_v21 = vmul.f32 %v1063_v26, %v1254_v27  ;;  %v1081_v27 = vld [vmem:[%s1206_s29 + $0xd] ss:$0 sm:$0xff]  ;;  %v754_v41 = vmul.f32 %v1086_v32, %v1322_v43 }
  0x29   : > { %v544_v42 = vadd.f32 %v543_v11, %v526_v31  ;;  %v552_v44 = vadd.f32 %v551_v12, %v530_v33  ;;  %v682_v11 = vmul.f32 %v1062_v16, %v1257_v28  ;;  %v665_v18 = vadd.f32 %v664_v0, %v663_v10 }
  0x2a   : > { %v695_v17 = vadd.f32 %v694_v55, %v681_v5  ;;  %v702_v16 = vmul.f32 %v1068_v39, %v1268_v38  ;;  %v734_v31 = vmul.f32 %v1080_v63, %v1303_v19  ;;  %v722_v38 = vmul.f32 %v1074_v61, %v1289_v59 }
  0x2b   : > { %v550_v8 = vsub.f32 %v544_v42, %v549_v24  ;;  %v554_v53 = vadd.f32 %v553_v25, %v552_v44  ;;  %v720_v25 = vmul.f32 %v1075_v7, %v1289_v59  ;;  %v683_v28 = vadd.f32 %v682_v11, %v665_v18 }
  0x2c   : > { %v701_v24 = vsub.f32 %v695_v17, %v700_v15  ;;  %v742_v47 = vmul.f32 %v1080_v63, %v1306_v20  ;;  %v744_v50 = vmul.f32 %v1081_v27, %v1303_v19  ;;  %v762_v59 = vmul.f32 %v1086_v32, %v1325_v9 }
  0x2d   : > { %v568_v1 = vadd.f32 %v567_v4, %v550_v8  ;;  %v576_v2 = vadd.f32 %v575_v36, %v554_v53  ;;  %v685_v33 = vadd.f32 %v684_v21, %v683_v28  ;;  %v740_v4 = vmul.f32 %v1081_v27, %v1306_v20  ;;  %v1087_v36 = vld [vmem:[%s1206_s29 + $0xf] ss:$0 sm:$0xff] }
  0x2e   : > { %v715_v30 = vadd.f32 %v714_v14, %v701_v24  ;;  %v760_v44 = vmul.f32 %v1087_v36, %v1325_v9  ;;  %v764_v58 = vmul.f32 %v1087_v36, %v1322_v43 }
  0x2f   : > { %v574_v12 = vsub.f32 %v568_v1, %v573_v48  ;;  %v578_v13 = vadd.f32 %v577_v49, %v576_v2  ;;  %v703_v40 = vadd.f32 %v702_v16, %v685_v33 }
  0x30   : > { %v721_v35 = vsub.f32 %v715_v30, %v720_v25 }
  0x31   : > { %v592_v22 = vadd.f32 %v591_v57, %v574_v12  ;;  %v600_v23 = vadd.f32 %v599_v60, %v578_v13  ;;  %v705_v42 = vadd.f32 %v704_v34, %v703_v40 }
  0x32   : > { %v735_v39 = vadd.f32 %v734_v31, %v721_v35 }
  0x33   : > { %v598_v26 = vsub.f32 %v592_v22, %v597_v56  ;;  %v602_v29 = vadd.f32 %v601_v6, %v600_v23  ;;  %v723_v45 = vadd.f32 %v722_v38, %v705_v42 }
  0x34   : > { %v741_v37 = vsub.f32 %v735_v39, %v740_v4 }
  0x35   : > { %604 = vst.msk [vmem:[%s1351_s13] sm:$0xff] %vm603_vm0, %v598_v26  ;;  %605 = vst.msk [vmem:[%s1357_s16] sm:$0xff] %vm603_vm0, %v602_v29  ;;  %v725_v49 = vadd.f32 %v724_v3, %v723_v45 }
  0x36   : > { %v755_v48 = vadd.f32 %v754_v41, %v741_v37 }
  0x37   : > { %v743_v52 = vadd.f32 %v742_v47, %v725_v49 }
  0x38   : > { %v761_v51 = vsub.f32 %v755_v48, %v760_v44 }
  0x39   : > { %v745_v8 = vadd.f32 %v744_v50, %v743_v52 }
  0x3a   : > { %1088 = vst.msk [vmem:[%s1351_s13 + $0x8] sm:$0xff] %vm603_vm0, %v761_v51 }
  0x3b   : > { %v763_v46 = vadd.f32 %v762_v59, %v745_v8 }
  0x3d   : > { %v765_v53 = vadd.f32 %v764_v58, %v763_v46 }
  0x3f   : > { %1089 = vst.msk [vmem:[%s1357_s16 + $0x8] sm:$0xff] %vm603_vm0, %v765_v53 }
  0x40 PF: > { %s16_s20 = sadd.s32 1, %s1144_s20   ;;  %s1397_s18 = smov %s1140_s19 }
  0x41   : > { %p13_p5 = scmp.ge.s32.totalorder %s16_s20, 6   ;;  %s1398_s19 = smov %s1400_s21 }
  0x43   :  { %15 = sbr.rel (!%p13_p5) target bundleno = 2 (0x2), region = 117 }

// kernel: _lambda_.13
= control target key start
LH: loop header
LB: loop body
LE: loop exit
PB: predicated region body
PF: predicated region fallthrough
CT: control target
= control target key end

     0   :  { %s784_s18 = smov 0   ;;  %s786_s19 = smov 0   ;;  %s835_s0 = inlined_call_operand.vmem [shape: f32[2,8,512], index: 0, kind: input, shape index: {}]   ;;  %s836_s1 = inlined_call_operand.vmem [shape: f32[8,8], index: 1, kind: input, shape index: {}]   ;;  %s837_s2 = inlined_call_operand.vmem [shape: f32[8,1], index: 2, kind: input, shape index: {}]   ;;  %s838_s3 = inlined_call_operand.vmem [shape: f32[2,8,512], index: 3, kind: input, shape index: {}]   ;;  %s839_s4 = inlined_call_operand.vmem [shape: f32[2,8,512], index: 4, kind: input, shape index: {}]   ;;  %s840_s5 = inlined_call_operand.vmem [shape: f32[2,8,512], index: 5, kind: output, shape index: {}]  }
   0x1   :  { %s788_s20 = smov 0  }
   0x2 LB: > { %s27_s21 = sadd.s32 1, %s746_s19  ;;  %p676_p0 = scmp.ge.s32.totalorder %s750_s20, 1  ;;  %s750_s20 = sphi %s788_s20, %s15_s20   ;;  %s746_s19 = sphi %s786_s19, %s842_s19   ;;  %s742_s18 = sphi %s784_s18, %s841_s18  }
   0x3   : > { %p29_p1 = scmp.ge.s32.totalorder %s27_s21, 2  ;;  %p242_p2 = scmp.lt.s32.totalorder %s750_s20, 3 }
   0x5   : > { %s844_s21 = smov (%p29_p1, %s27_s21), 0  ;;  %p243_p3 = pnand %p676_p0, %p242_p2 }
   0x6   : > { %p297_p4 = scmp.lt.s32.totalorder (!%p243_p3), %s742_s18, 1  ;;  %v341_v0 = vld [vmem:[%s837_s2] sm:$0xff] (!%p243_p3)  ;;  %v752_v1 = vmov (!%p243_p3), 0.0   ;;  %v753_v2 = vmov (!%p243_p3), 0   ;;  %vm347_vm0 = vcmask (!%p243_p3), 64512  }
   0x7   : > { %246 = sbr.rel (%p243_p3) target bundleno = 267 (0x10b), region = 40  ;;  %415 = vmatprep.mubr.f32.mxu0 (!%p243_p3), %v752_v1  ;;  %486 = vmatprep.mubr.f32.mxu1 (!%p243_p3), %v752_v1  ;;  %v336_v3 = vld [vmem:[%s836_s1] sm:$0xff] (!%p243_p3) }
   0x8   : > { %719 = vset.pattern.permute.xlu0 (!%p243_p3), %v753_v2 }
   0x9   : > { %344 = vperm.xlu0 (!%p243_p3), %719, %v341_v0  }
   0xe   : > { %s846_s18 = smov (!%p297_p4, %s742_s18), 1 }
   0xf   : > { %s805_s24 = sshll.u32 %s846_s18, 5 }
  0x10   : > { %s304_s27 = scalar_lea.vmem %s835_s0, %s805_s24  ;;  %s314_s7 = scalar_lea.vmem %s838_s3, %s805_s24 }
  0x11   : > { %v338_v4 = vld [vmem:[%s304_s27 + $0x8] sm:$0xff]  ;;  %v340_v5 = vld [vmem:[%s304_s27 + $0x18] sm:$0xff]  ;;  %v337_v6 = vld [vmem:[%s304_s27] sm:$0xff]  ;;  %s324_s10 = scalar_lea.vmem %s839_s4, %s805_s24  ;;  %s334_s13 = scalar_lea.vmem %s840_s5, %s805_s24 }
  0x12   : > { %351 = vmatprep.subr.mxu0 %v338_v4  ;;  %422 = vmatprep.subr.mxu1 %v340_v5  ;;  %v339_v7 = vld [vmem:[%s304_s27 + $0x10] sm:$0xff]  ;;  %v493_v10 = vld [vmem:[%s314_s7] sm:$0xff]  ;;  %v494_v16 = vld [vmem:[%s314_s7 + $0x8] sm:$0xff] }
  0x13   : > { %352 = vmatpush1.msra.mxu0 %v337_v6  ;;  %423 = vmatpush1.msra.mxu1 %v339_v7  ;;  %v495_v12 = vld [vmem:[%s314_s7 + $0x10] sm:$0xff]  ;;  %v496_v18 = vld [vmem:[%s314_s7 + $0x18] sm:$0xff]  ;;  %v501_v19 = vld [vmem:[%s324_s10] sm:$0xff] }
  0x14   : > { %685 = vmatmul.mubr.msk.f32.vlgmr.msra.gmra.mrb[0].mxu0 %vm347_vm0, %v336_v3  ;;  %686 = vmatmul.mubr.msk.f32.vlgmr.msra.gmra.mrb[0].mxu1 %vm347_vm0, %v336_v3  ;;  %v503_v20 = vld [vmem:[%s324_s10 + $0x10] sm:$0xff]  ;;  %v502_v25 = vld [vmem:[%s324_s10 + $0x8] sm:$0xff]  ;;  %v504_v26 = vld [vmem:[%s324_s10 + $0x18] sm:$0xff] }
  0x88   : > { %v345_v8 = vpop.permute.xlu0 %344 }
  0xe7   : > { %v417_v9 = vpop.f32.mrb[0].mxu0  ;;  %v488_v11 = vpop.f32.mrb[0].mxu1 }
  0xe8   : > { %v418_v13 = vadd.f32 %v417_v9, %v345_v8  ;;  %v489_v14 = vadd.f32 %v488_v11, %v345_v8  ;;  %v419_v15 = vpop.f32.mrb[1].mxu0  ;;  %v490_v17 = vpop.f32.mrb[1].mxu1 }
  0xe9   : > { %v420_v21 = vadd.f32 %v419_v15, %v345_v8  ;;  %v491_v22 = vadd.f32 %v490_v17, %v345_v8 }
  0xea   : > { %v497_v23 = vadd.f32 %v493_v10, %v418_v13  ;;  %v499_v24 = vadd.f32 %v495_v12, %v489_v14 }
  0xeb   : > { %v498_v27 = vadd.f32 %v494_v16, %v420_v21  ;;  %v500_v28 = vadd.f32 %v496_v18, %v491_v22 }
  0xec   : > { %v505_v29 = vadd.f32 %v501_v19, %v497_v23  ;;  %v507_v30 = vadd.f32 %v503_v20, %v499_v24 }
  0xed   : > { %v506_v31 = vadd.f32 %v502_v25, %v498_v27  ;;  %v508_v32 = vadd.f32 %v504_v26, %v500_v28 }
  0xee   : > { %v513_v33 = vmul.f32 0.044715, %v505_v29  ;;  %v515_v34 = vmul.f32 0.044715, %v507_v30  ;;  %v509_v55 = vmul.f32 0.5, %v505_v29  ;;  %v511_v58 = vmul.f32 0.5, %v507_v30 }
  0xef   : > { %v514_v35 = vmul.f32 0.044715, %v506_v31  ;;  %v516_v36 = vmul.f32 0.044715, %v508_v32  ;;  %v510_v62 = vmul.f32 0.5, %v506_v31  ;;  %v512_v1 = vmul.f32 0.5, %v508_v32 }
  0xf0   : > { %v517_v37 = vmul.f32 %v513_v33, %v505_v29  ;;  %v519_v38 = vmul.f32 %v515_v34, %v507_v30 }
  0xf1   : > { %v518_v39 = vmul.f32 %v514_v35, %v506_v31  ;;  %v520_v40 = vmul.f32 %v516_v36, %v508_v32 }
  0xf2   : > { %v521_v41 = vmul.f32 %v517_v37, %v505_v29  ;;  %v523_v42 = vmul.f32 %v519_v38, %v507_v30 }
  0xf3   : > { %v522_v43 = vmul.f32 %v518_v39, %v506_v31  ;;  %v524_v44 = vmul.f32 %v520_v40, %v508_v32 }
  0xf4   : > { %v525_v45 = vadd.f32 %v521_v41, %v505_v29  ;;  %v527_v46 = vadd.f32 %v523_v42, %v507_v30 }
  0xf5   : > { %v526_v47 = vadd.f32 %v522_v43, %v506_v31  ;;  %v528_v48 = vadd.f32 %v524_v44, %v508_v32 }
  0xf6   : > { %v529_v49 = vmul.f32 0.7978846, %v525_v45  ;;  %v531_v50 = vmul.f32 0.7978846, %v527_v46 }
  0xf7   : > { %v530_v51 = vmul.f32 0.7978846, %v526_v47  ;;  %v532_v52 = vmul.f32 0.7978846, %v528_v48 }
  0xf8   : > { %720 = vtanh.f32 %v529_v49 }
  0xf9   : > { %722 = vtanh.f32 %v531_v50 }
  0xfa   : > { %724 = vtanh.f32 %v530_v51 }
  0xfb   : > { %726 = vtanh.f32 %v532_v52 }
 0x102   : > { %v721_v53 = vpop.eup %720 }
 0x103   : > { %v723_v54 = vpop.eup %722  ;;  %v537_v56 = vadd.f32 1.0, %v721_v53 }
 0x104   : > { %v725_v57 = vpop.eup %724  ;;  %v539_v59 = vadd.f32 1.0, %v723_v54 }
 0x105   : > { %v727_v60 = vpop.eup %726  ;;  %v541_v61 = vmul.f32 %v537_v56, %v509_v55  ;;  %v538_v63 = vadd.f32 1.0, %v725_v57 }
 0x106   : > { %v543_v0 = vmul.f32 %v539_v59, %v511_v58  ;;  %v540_v2 = vadd.f32 1.0, %v727_v60 }
 0x107   : > { %545 = vst [vmem:[%s334_s13] sm:$0xff] %v541_v61  ;;  %v542_v3 = vmul.f32 %v538_v63, %v510_v62 }
 0x108   : > { %547 = vst [vmem:[%s334_s13 + $0x10] sm:$0xff] %v543_v0  ;;  %v544_v4 = vmul.f32 %v540_v2, %v512_v1 }
 0x109   : > { %546 = vst [vmem:[%s334_s13 + $0x8] sm:$0xff] %v542_v3 }
 0x10a   : > { %548 = vst [vmem:[%s334_s13 + $0x18] sm:$0xff] %v544_v4 }
 0x10b PF: > { %s15_s20 = sadd.s32 1, %s750_s20   ;;  %s841_s18 = smov %s746_s19 }
 0x10c   : > { %p12_p5 = scmp.ge.s32.totalorder %s15_s20, 4   ;;  %s842_s19 = smov %s844_s21 }
 0x10e   :  { %14 = sbr.rel (!%p12_p5) target bundleno = 2 (0x2), region = 76 }

</bundles_post_ra>
